<compile_context>
chip_gen: v5e
topology: v5e:2x2
jax: 0.10.0
libtpu: 0.0.40
codegen_flags: <defaults>
</compile_context>

<pallas_src>
import functools

import jax
import jax.numpy as jnp
from jax import lax
from jax.experimental import pallas as pl
from jax.experimental.pallas import tpu as pltpu

KSIZE = 7
PAD = (KSIZE - 1) // 2          # 3

ROW_OFF = 8                      # sublane-aligned interior row offset (>= PAD)
COL_OFF = 128                    # lane-aligned interior col offset (>= PAD)
C_CHUNK = 8                      # channel chunk (one sublane tile) for pool / multiply
ROW_STRIP = 64                   # max conv-accumulator strip height (rows)


def _spatial_gate_kernel(w_ref, b_ref, x_ref, o_ref,
                         pad_ref, colwin_ref, flat_ref, *, C, H, W, RS):
    """One batch element per grid step.

    w_ref      : SMEM (2*7*7,) f32   BN-folded conv weight, layout [in_c, kh, kw]
    b_ref      : SMEM (1,) f32       BN-folded bias
    x_ref      : VMEM (1, C, H*W)    input block (lane-dense flat spatial)
    o_ref      : VMEM (1, C, H*W)    output block
    pad_ref    : VMEM (2, PH, PW) f32        zero-haloed pooled maps in (H, W) layout
    colwin_ref : VMEM (RS + 2*PAD, W) f32    lane-aligned per-(c, kj) column window
    flat_ref   : VMEM (2, H*W) f32           flat pooled maps; row 0 reused for scale
    """
    # ---- 1. Channel pool (max / mean over C), lane-dense, chunked over C so
    #         only one (<=8, HW) slice is live at a time (no big f32 upcast
    #         kept live across the conv).
    x_max = None
    x_sum = None
    for c0 in range(0, C, C_CHUNK):
        c1 = min(C, c0 + C_CHUNK)
        chunk = x_ref[0, c0:c1, :].astype(jnp.float32)          # (<=8, HW)
        cmax = jnp.max(chunk, axis=0, keepdims=True)            # (1, HW)
        csum = jnp.sum(chunk, axis=0, keepdims=True)            # (1, HW)
        x_max = cmax if x_max is None else jnp.maximum(x_max, cmax)
        x_sum = csum if x_sum is None else x_sum + csum
    flat_ref[0:1, :] = x_max
    flat_ref[1:2, :] = x_sum * jnp.float32(1.0 / C)

    # ---- 2. Zero only the PAD-wide halo around the pad-buffer interior.
    #         Done every grid step (NOT gated on program_id -- that would be
    #         unsafe under megacore sharding of the batch axis).
    z_h = jnp.zeros((PAD, W + 2 * PAD), jnp.float32)
    z_v = jnp.zeros((H, PAD), jnp.float32)
    for c in range(2):
        pad_ref[c, ROW_OFF - PAD:ROW_OFF, COL_OFF - PAD:COL_OFF + W + PAD] = z_h
        pad_ref[c, ROW_OFF + H:ROW_OFF + H + PAD, COL_OFF - PAD:COL_OFF + W + PAD] = z_h
        pad_ref[c, ROW_OFF:ROW_OFF + H, COL_OFF - PAD:COL_OFF] = z_v
        pad_ref[c, ROW_OFF:ROW_OFF + H, COL_OFF + W:COL_OFF + W + PAD] = z_v

    # ---- 3. Relayout the two tiny pooled maps: flat (1, HW) -> (H, W) interior
    #         of pad_ref (2*H small row moves; the C*H*W tensor is never touched).
    for c in range(2):
        for h in range(H):
            pad_ref[c, ROW_OFF + h:ROW_OFF + h + 1, COL_OFF:COL_OFF + W] = \
                flat_ref[c:c + 1, h * W:(h + 1) * W]

    # ---- 4. 7x7 "same" conv + folded BN + sigmoid, strip-mined over rows so
    #         the accumulator stays small.  The lane shift of each tap column
    #         is hoisted: one lane-shifted column window per (c, kj), then the
    #         7 ki taps are lane-aligned sublane-offset loads + scalar FMA.
    for r0 in range(0, H, RS):
        rh = min(RS, H - r0)
        rs0 = ROW_OFF + r0 - PAD
        acc = jnp.zeros((rh, W), jnp.float32)
        for c in range(2):
            for kj in range(KSIZE):
                cs = COL_OFF + kj - PAD
                colwin_ref[0:rh + 2 * PAD, :] = \
                    pad_ref[c, rs0:rs0 + rh + 2 * PAD, cs:cs + W]
                for ki in range(KSIZE):
                    wv = w_ref[c * KSIZE * KSIZE + ki * KSIZE + kj]
                    acc = acc + wv * colwin_ref[ki:ki + rh, :]
        s2d = jax.nn.sigmoid(acc + b_ref[0])                    # (rh, W) f32
        # Relayout the scale strip back to flat layout.  flat_ref row 0
        # (x_max) is already consumed, so it is reused as the flat scale
        # buffer; colwin_ref is free at this point and used as a staging ref.
        colwin_ref[0:rh, :] = s2d
        for h in range(rh):
            flat_ref[0:1, (r0 + h) * W:(r0 + h + 1) * W] = colwin_ref[h:h + 1, :]

    # ---- 5. Broadcast multiply in the lane-dense flat layout.  x is re-read
    #         from VMEM in <=8-channel chunks (bounded live ranges).
    scale = flat_ref[0:1, :]                                    # (1, HW) f32
    if o_ref.dtype == jnp.float32:
        for c0 in range(0, C, C_CHUNK):
            c1 = min(C, c0 + C_CHUNK)
            o_ref[0, c0:c1, :] = x_ref[0, c0:c1, :] * scale
    else:
        # Low-precision I/O (e.g. bf16): scale is computed in f32 and cast
        # once; the big multiply runs in the I/O dtype.
        scale_lo = scale.astype(o_ref.dtype)
        for c0 in range(0, C, C_CHUNK):
            c1 = min(C, c0 + C_CHUNK)
            o_ref[0, c0:c1, :] = (x_ref[0, c0:c1, :] * scale_lo).astype(o_ref.dtype)


def _round_up(v, m):
    return ((v + m - 1) // m) * m


def _tile_bytes(lead, rows, cols, itemsize):
    """VMEM footprint of a (lead, rows, cols) buffer after (8, 128) tile padding."""
    return lead * _round_up(max(rows, 1), 8) * _round_up(max(cols, 1), 128) * itemsize


def _vmem_capacity_bytes():
    try:
        info = pltpu.get_tpu_info()
        cap = getattr(info, "vmem_capacity_bytes", None)
        if cap:
            return int(cap)
    except Exception:
        pass
    return 64 * 1024 * 1024   # conservative fallback (v7x per-core VMEM)


def spatial_gate(x, conv_w, bn_gamma, bn_beta, bn_mean, bn_var, eps=1e-5):
    """x: (N, C, H, W), conv_w: (1, 2, 7, 7), BN params: (1,).  Returns (N, C, H, W)."""
    N, C, H, W = x.shape
    HW = H * W

    # Fold inference-mode BatchNorm into the conv weight / bias.
    s = (bn_gamma / jnp.sqrt(bn_var + eps)).astype(jnp.float32)      # (1,)
    b = (bn_beta - bn_mean * s).astype(jnp.float32)                  # (1,)
    w_folded = conv_w.astype(jnp.float32) * s[:, None, None, None]   # (1, 2, 7, 7)
    w_flat = w_folded.reshape(-1)                                    # (98,)

    # Lane-dense layout: pure reshape (same HBM bytes).
    x_flat = x.reshape(N, C, HW)

    RS = min(ROW_STRIP, H)
    PH = ROW_OFF + H + PAD
    PW = COL_OFF + W + PAD

    # VMEM budget: double-buffered in/out blocks + scratch (+ compiler slack),
    # bounded by the actual device VMEM minus headroom, never below the
    # computed requirement.
    block_in = _tile_bytes(1, C, HW, x.dtype.itemsize)
    block_out = block_in
    scratch_bytes = (_tile_bytes(2, PH, PW, 4)
                     + _tile_bytes(1, RS + 2 * PAD, W, 4)
                     + _tile_bytes(1, 2, HW, 4))
    required = 2 * (block_in + block_out) + scratch_bytes + (2 << 20)
    cap = _vmem_capacity_bytes() - (8 << 20)
    vmem_limit = int(max(required, cap))

    kernel = functools.partial(_spatial_gate_kernel, C=C, H=H, W=W, RS=RS)
    out_flat = pl.pallas_call(
        kernel,
        out_shape=jax.ShapeDtypeStruct((N, C, HW), x.dtype),
        grid=(N,),
        in_specs=[
            pl.BlockSpec(memory_space=pltpu.SMEM),                  # folded weight
            pl.BlockSpec(memory_space=pltpu.SMEM),                  # folded bias
            pl.BlockSpec((1, C, HW), lambda n: (n, 0, 0)),          # x (flat)
        ],
        out_specs=pl.BlockSpec((1, C, HW), lambda n: (n, 0, 0)),
        scratch_shapes=[
            pltpu.VMEM((2, PH, PW), jnp.float32),                   # padded pooled maps
            pltpu.VMEM((RS + 2 * PAD, W), jnp.float32),             # per-(c,kj) column window
            pltpu.VMEM((2, HW), jnp.float32),                       # flat pooled maps / scale
        ],
        compiler_params=pltpu.CompilerParams(
            dimension_semantics=("parallel",),
            vmem_limit_bytes=vmem_limit),
    )(w_flat, b, x_flat)
    return out_flat.reshape(N, C, H, W)


def spatial_gate_ref(x, conv_w, bn_gamma, bn_beta, bn_mean, bn_var, eps=1e-5):
    """Pure-JAX reference mirroring the PyTorch module (BN in eval mode)."""
    x_max = jnp.max(x, axis=1, keepdims=True)
    x_mean = jnp.mean(x, axis=1, keepdims=True)
    xc = jnp.concatenate([x_max, x_mean], axis=1)                # (N, 2, H, W)
    conv = lax.conv_general_dilated(
        xc, conv_w, window_strides=(1, 1), padding=((PAD, PAD), (PAD, PAD)),
        dimension_numbers=("NCHW", "OIHW", "NCHW"),
        precision=lax.Precision.HIGHEST)
    bn = ((conv - bn_mean[None, :, None, None])
          / jnp.sqrt(bn_var[None, :, None, None] + eps)
          * bn_gamma[None, :, None, None] + bn_beta[None, :, None, None])
    return x * jax.nn.sigmoid(bn)


if __name__ == "__main__":
    key = jax.random.PRNGKey(0)
    kx, kw, kx2 = jax.random.split(key, 3)

    # Conv2d(2, 1, kernel_size=7, bias=False): weight (1, 2, 7, 7).
    fan_in = 2 * KSIZE * KSIZE
    bound = 1.0 / (fan_in ** 0.5)
    conv_w = jax.random.uniform(kw, (1, 2, KSIZE, KSIZE),
                                minval=-bound, maxval=bound, dtype=jnp.float32)

    # BatchNorm2d(1) in eval mode with non-trivial running stats / affine params
    # so the BN folding is actually exercised.
    bn_gamma = jnp.full((1,), 1.3, jnp.float32)
    bn_beta = jnp.full((1,), 0.2, jnp.float32)
    bn_mean = jnp.full((1,), 0.05, jnp.float32)
    bn_var = jnp.full((1,), 0.8, jnp.float32)

    # Primary small test: N=2, C=4, 16x16.
    N, C, H, W = 2, 4, 16, 16
    x = jax.random.normal(kx, (N, C, H, W), dtype=jnp.float32)
    out = spatial_gate(x, conv_w, bn_gamma, bn_beta, bn_mean, bn_var)
    jax.block_until_ready(out)
    ref = spatial_gate_ref(x, conv_w, bn_gamma, bn_beta, bn_mean, bn_var)
    assert out.shape == x.shape and out.dtype == x.dtype
    err = float(jnp.max(jnp.abs(out - ref)))
    assert jnp.allclose(out, ref, atol=2e-3, rtol=2e-3), err

    # Second tiny test: C > 8 (channel-chunk remainder) and H*W not a
    # multiple of 128 (masked tail stores).
    x2 = jax.random.normal(kx2, (1, 12, 10, 12), dtype=jnp.float32)
    out2 = spatial_gate(x2, conv_w, bn_gamma, bn_beta, bn_mean, bn_var)
    jax.block_until_ready(out2)
    ref2 = spatial_gate_ref(x2, conv_w, bn_gamma, bn_beta, bn_mean, bn_var)
    err2 = float(jnp.max(jnp.abs(out2 - ref2)))
    assert jnp.allclose(out2, ref2, atol=2e-3, rtol=2e-3), err2

    print("KERNEL_OK")
</pallas_src>

<mosaic_0001>
module attributes {stable_mosaic.version = 11 : i64} {
  func.func @_spatial_gate_kernel(%arg0: i32, %arg1: memref<98xf32, #tpu.memory_space<smem>>, %arg2: memref<1xf32, #tpu.memory_space<smem>>, %arg3: memref<1x4x256xf32, #tpu.memory_space<vmem>>, %arg4: memref<1x4x256xf32, #tpu.memory_space<vmem>>, %arg5: memref<2x27x147xf32, #tpu.memory_space<vmem>>, %arg6: memref<22x16xf32, #tpu.memory_space<vmem>>, %arg7: memref<2x256xf32, #tpu.memory_space<vmem>>) attributes {dimension_semantics = [#tpu.dimension_semantics<parallel>], iteration_bounds = array<i64: 2>, scalar_prefetch = 0 : i64, scratch_operands = 3 : i64, tpu.core_type = #tpu.core_type<tc>, window_params = [{transform_indices = @transform_0, window_bounds = array<i64: 98>}, {transform_indices = @transform_1, window_bounds = array<i64: 1>}, {transform_indices = @transform_2, window_bounds = array<i64: 1, 4, 256>}, {transform_indices = @transform_3, window_bounds = array<i64: 1, 4, 256>}]} {
    %c0 = arith.constant 0 : index
    %c0_0 = arith.constant 0 : index
    %c0_1 = arith.constant 0 : index
    %0 = vector.load %arg3[%c0, %c0_0, %c0_1] : memref<1x4x256xf32, #tpu.memory_space<vmem>>, vector<1x4x256xf32>
    %1 = vector.shape_cast %0 : vector<1x4x256xf32> to vector<4x256xf32>
    %cst = arith.constant dense<0xFF800000> : vector<256xf32>
    %2 = vector.multi_reduction <maximumf>, %1, %cst [0] : vector<4x256xf32> to vector<256xf32>
    %3 = vector.shape_cast %2 : vector<256xf32> to vector<1x256xf32>
    %cst_2 = arith.constant dense<0.000000e+00> : vector<256xf32>
    %4 = vector.multi_reduction <add>, %1, %cst_2 [0] : vector<4x256xf32> to vector<256xf32>
    %5 = vector.shape_cast %4 : vector<256xf32> to vector<1x256xf32>
    %c0_3 = arith.constant 0 : index
    %c0_4 = arith.constant 0 : index
    %6 = vector.load %arg7[%c0_3, %c0_4] : memref<2x256xf32, #tpu.memory_space<vmem>>, vector<1x256xf32>
    tpu.vector_store %arg7[%c0_3, %c0_4], %3 {strides = array<i32>} : memref<2x256xf32, #tpu.memory_space<vmem>>, vector<1x256xf32>,
    %cst_5 = arith.constant 2.500000e-01 : f32
    %7 = vector.broadcast %cst_5 : f32 to vector<1x256xf32>
    %8 = arith.mulf %5, %7 : vector<1x256xf32>
    %c1 = arith.constant 1 : index
    %c0_6 = arith.constant 0 : index
    %9 = vector.load %arg7[%c1, %c0_6] : memref<2x256xf32, #tpu.memory_space<vmem>>, vector<1x256xf32>
    tpu.vector_store %arg7[%c1, %c0_6], %8 {strides = array<i32>} : memref<2x256xf32, #tpu.memory_space<vmem>>, vector<1x256xf32>,
    %cst_7 = arith.constant 0.000000e+00 : f32
    %10 = vector.broadcast %cst_7 : f32 to vector<3x22xf32>
    %cst_8 = arith.constant 0.000000e+00 : f32
    %11 = vector.broadcast %cst_8 : f32 to vector<16x3xf32>
    %c0_9 = arith.constant 0 : index
    %c5 = arith.constant 5 : index
    %c125 = arith.constant 125 : index
    %12 = vector.load %arg5[%c0_9, %c5, %c125] : memref<2x27x147xf32, #tpu.memory_space<vmem>>, vector<1x3x22xf32>
    %13 = vector.shape_cast %12 : vector<1x3x22xf32> to vector<3x22xf32>
    %14 = vector.shape_cast %10 : vector<3x22xf32> to vector<1x3x22xf32>
    tpu.vector_store %arg5[%c0_9, %c5, %c125], %14 {strides = array<i32>} : memref<2x27x147xf32, #tpu.memory_space<vmem>>, vector<1x3x22xf32>,
    %c0_10 = arith.constant 0 : index
    %c24 = arith.constant 24 : index
    %c125_11 = arith.constant 125 : index
    %15 = vector.load %arg5[%c0_10, %c24, %c125_11] : memref<2x27x147xf32, #tpu.memory_space<vmem>>, vector<1x3x22xf32>
    %16 = vector.shape_cast %15 : vector<1x3x22xf32> to vector<3x22xf32>
    %17 = vector.shape_cast %10 : vector<3x22xf32> to vector<1x3x22xf32>
    tpu.vector_store %arg5[%c0_10, %c24, %c125_11], %17 {strides = array<i32>} : memref<2x27x147xf32, #tpu.memory_space<vmem>>, vector<1x3x22xf32>,
    %c0_12 = arith.constant 0 : index
    %c8 = arith.constant 8 : index
    %c125_13 = arith.constant 125 : index
    %18 = vector.load %arg5[%c0_12, %c8, %c125_13] : memref<2x27x147xf32, #tpu.memory_space<vmem>>, vector<1x16x3xf32>
    %19 = vector.shape_cast %18 : vector<1x16x3xf32> to vector<16x3xf32>
    %20 = vector.shape_cast %11 : vector<16x3xf32> to vector<1x16x3xf32>
    tpu.vector_store %arg5[%c0_12, %c8, %c125_13], %20 {strides = array<i32>} : memref<2x27x147xf32, #tpu.memory_space<vmem>>, vector<1x16x3xf32>,
    %c0_14 = arith.constant 0 : index
    %c8_15 = arith.constant 8 : index
    %c144 = arith.constant 144 : index
    %21 = vector.load %arg5[%c0_14, %c8_15, %c144] : memref<2x27x147xf32, #tpu.memory_space<vmem>>, vector<1x16x3xf32>
    %22 = vector.shape_cast %21 : vector<1x16x3xf32> to vector<16x3xf32>
    %23 = vector.shape_cast %11 : vector<16x3xf32> to vector<1x16x3xf32>
    tpu.vector_store %arg5[%c0_14, %c8_15, %c144], %23 {strides = array<i32>} : memref<2x27x147xf32, #tpu.memory_space<vmem>>, vector<1x16x3xf32>,
    %c1_16 = arith.constant 1 : index
    %c5_17 = arith.constant 5 : index
    %c125_18 = arith.constant 125 : index
    %24 = vector.load %arg5[%c1_16, %c5_17, %c125_18] : memref<2x27x147xf32, #tpu.memory_space<vmem>>, vector<1x3x22xf32>
    %25 = vector.shape_cast %24 : vector<1x3x22xf32> to vector<3x22xf32>
    %26 = vector.shape_cast %10 : vector<3x22xf32> to vector<1x3x22xf32>
    tpu.vector_store %arg5[%c1_16, %c5_17, %c125_18], %26 {strides = array<i32>} : memref<2x27x147xf32, #tpu.memory_space<vmem>>, vector<1x3x22xf32>,
    %c1_19 = arith.constant 1 : index
    %c24_20 = arith.constant 24 : index
    %c125_21 = arith.constant 125 : index
    %27 = vector.load %arg5[%c1_19, %c24_20, %c125_21] : memref<2x27x147xf32, #tpu.memory_space<vmem>>, vector<1x3x22xf32>
    %28 = vector.shape_cast %27 : vector<1x3x22xf32> to vector<3x22xf32>
    %29 = vector.shape_cast %10 : vector<3x22xf32> to vector<1x3x22xf32>
    tpu.vector_store %arg5[%c1_19, %c24_20, %c125_21], %29 {strides = array<i32>} : memref<2x27x147xf32, #tpu.memory_space<vmem>>, vector<1x3x22xf32>,
    %c1_22 = arith.constant 1 : index
    %c8_23 = arith.constant 8 : index
    %c125_24 = arith.constant 125 : index
    %30 = vector.load %arg5[%c1_22, %c8_23, %c125_24] : memref<2x27x147xf32, #tpu.memory_space<vmem>>, vector<1x16x3xf32>
    %31 = vector.shape_cast %30 : vector<1x16x3xf32> to vector<16x3xf32>
    %32 = vector.shape_cast %11 : vector<16x3xf32> to vector<1x16x3xf32>
    tpu.vector_store %arg5[%c1_22, %c8_23, %c125_24], %32 {strides = array<i32>} : memref<2x27x147xf32, #tpu.memory_space<vmem>>, vector<1x16x3xf32>,
    %c1_25 = arith.constant 1 : index
    %c8_26 = arith.constant 8 : index
    %c144_27 = arith.constant 144 : index
    %33 = vector.load %arg5[%c1_25, %c8_26, %c144_27] : memref<2x27x147xf32, #tpu.memory_space<vmem>>, vector<1x16x3xf32>
    %34 = vector.shape_cast %33 : vector<1x16x3xf32> to vector<16x3xf32>
    %35 = vector.shape_cast %11 : vector<16x3xf32> to vector<1x16x3xf32>
    tpu.vector_store %arg5[%c1_25, %c8_26, %c144_27], %35 {strides = array<i32>} : memref<2x27x147xf32, #tpu.memory_space<vmem>>, vector<1x16x3xf32>,
    %c0_28 = arith.constant 0 : index
    %c0_29 = arith.constant 0 : index
    %36 = vector.load %arg7[%c0_28, %c0_29] : memref<2x256xf32, #tpu.memory_space<vmem>>, vector<1x16xf32>
    %c0_30 = arith.constant 0 : index
    %c8_31 = arith.constant 8 : index
    %c128 = arith.constant 128 : index
    %37 = vector.load %arg5[%c0_30, %c8_31, %c128] : memref<2x27x147xf32, #tpu.memory_space<vmem>>, vector<1x1x16xf32>
    %38 = vector.shape_cast %37 : vector<1x1x16xf32> to vector<1x16xf32>
    %39 = vector.shape_cast %36 : vector<1x16xf32> to vector<1x1x16xf32>
    tpu.vector_store %arg5[%c0_30, %c8_31, %c128], %39 {strides = array<i32>} : memref<2x27x147xf32, #tpu.memory_space<vmem>>, vector<1x1x16xf32>,
    %c0_32 = arith.constant 0 : index
    %c16 = arith.constant 16 : index
    %40 = vector.load %arg7[%c0_32, %c16] : memref<2x256xf32, #tpu.memory_space<vmem>>, vector<1x16xf32>
    %c0_33 = arith.constant 0 : index
    %c9 = arith.constant 9 : index
    %c128_34 = arith.constant 128 : index
    %41 = vector.load %arg5[%c0_33, %c9, %c128_34] : memref<2x27x147xf32, #tpu.memory_space<vmem>>, vector<1x1x16xf32>
    %42 = vector.shape_cast %41 : vector<1x1x16xf32> to vector<1x16xf32>
    %43 = vector.shape_cast %40 : vector<1x16xf32> to vector<1x1x16xf32>
    tpu.vector_store %arg5[%c0_33, %c9, %c128_34], %43 {strides = array<i32>} : memref<2x27x147xf32, #tpu.memory_space<vmem>>, vector<1x1x16xf32>,
    %c0_35 = arith.constant 0 : index
    %c32 = arith.constant 32 : index
    %44 = vector.load %arg7[%c0_35, %c32] : memref<2x256xf32, #tpu.memory_space<vmem>>, vector<1x16xf32>
    %c0_36 = arith.constant 0 : index
    %c10 = arith.constant 10 : index
    %c128_37 = arith.constant 128 : index
    %45 = vector.load %arg5[%c0_36, %c10, %c128_37] : memref<2x27x147xf32, #tpu.memory_space<vmem>>, vector<1x1x16xf32>
    %46 = vector.shape_cast %45 : vector<1x1x16xf32> to vector<1x16xf32>
    %47 = vector.shape_cast %44 : vector<1x16xf32> to vector<1x1x16xf32>
    tpu.vector_store %arg5[%c0_36, %c10, %c128_37], %47 {strides = array<i32>} : memref<2x27x147xf32, #tpu.memory_space<vmem>>, vector<1x1x16xf32>,
    %c0_38 = arith.constant 0 : index
    %c48 = arith.constant 48 : index
    %48 = vector.load %arg7[%c0_38, %c48] : memref<2x256xf32, #tpu.memory_space<vmem>>, vector<1x16xf32>
    %c0_39 = arith.constant 0 : index
    %c11 = arith.constant 11 : index
    %c128_40 = arith.constant 128 : index
    %49 = vector.load %arg5[%c0_39, %c11, %c128_40] : memref<2x27x147xf32, #tpu.memory_space<vmem>>, vector<1x1x16xf32>
    %50 = vector.shape_cast %49 : vector<1x1x16xf32> to vector<1x16xf32>
    %51 = vector.shape_cast %48 : vector<1x16xf32> to vector<1x1x16xf32>
    tpu.vector_store %arg5[%c0_39, %c11, %c128_40], %51 {strides = array<i32>} : memref<2x27x147xf32, #tpu.memory_space<vmem>>, vector<1x1x16xf32>,
    %c0_41 = arith.constant 0 : index
    %c64 = arith.constant 64 : index
    %52 = vector.load %arg7[%c0_41, %c64] : memref<2x256xf32, #tpu.memory_space<vmem>>, vector<1x16xf32>
    %c0_42 = arith.constant 0 : index
    %c12 = arith.constant 12 : index
    %c128_43 = arith.constant 128 : index
    %53 = vector.load %arg5[%c0_42, %c12, %c128_43] : memref<2x27x147xf32, #tpu.memory_space<vmem>>, vector<1x1x16xf32>
    %54 = vector.shape_cast %53 : vector<1x1x16xf32> to vector<1x16xf32>
    %55 = vector.shape_cast %52 : vector<1x16xf32> to vector<1x1x16xf32>
    tpu.vector_store %arg5[%c0_42, %c12, %c128_43], %55 {strides = array<i32>} : memref<2x27x147xf32, #tpu.memory_space<vmem>>, vector<1x1x16xf32>,
    %c0_44 = arith.constant 0 : index
    %c80 = arith.constant 80 : index
    %56 = vector.load %arg7[%c0_44, %c80] : memref<2x256xf32, #tpu.memory_space<vmem>>, vector<1x16xf32>
    %c0_45 = arith.constant 0 : index
    %c13 = arith.constant 13 : index
    %c128_46 = arith.constant 128 : index
    %57 = vector.load %arg5[%c0_45, %c13, %c128_46] : memref<2x27x147xf32, #tpu.memory_space<vmem>>, vector<1x1x16xf32>
    %58 = vector.shape_cast %57 : vector<1x1x16xf32> to vector<1x16xf32>
    %59 = vector.shape_cast %56 : vector<1x16xf32> to vector<1x1x16xf32>
    tpu.vector_store %arg5[%c0_45, %c13, %c128_46], %59 {strides = array<i32>} : memref<2x27x147xf32, #tpu.memory_space<vmem>>, vector<1x1x16xf32>,
    %c0_47 = arith.constant 0 : index
    %c96 = arith.constant 96 : index
    %60 = vector.load %arg7[%c0_47, %c96] : memref<2x256xf32, #tpu.memory_space<vmem>>, vector<1x16xf32>
    %c0_48 = arith.constant 0 : index
    %c14 = arith.constant 14 : index
    %c128_49 = arith.constant 128 : index
    %61 = vector.load %arg5[%c0_48, %c14, %c128_49] : memref<2x27x147xf32, #tpu.memory_space<vmem>>, vector<1x1x16xf32>
    %62 = vector.shape_cast %61 : vector<1x1x16xf32> to vector<1x16xf32>
    %63 = vector.shape_cast %60 : vector<1x16xf32> to vector<1x1x16xf32>
    tpu.vector_store %arg5[%c0_48, %c14, %c128_49], %63 {strides = array<i32>} : memref<2x27x147xf32, #tpu.memory_space<vmem>>, vector<1x1x16xf32>,
    %c0_50 = arith.constant 0 : index
    %c112 = arith.constant 112 : index
    %64 = vector.load %arg7[%c0_50, %c112] : memref<2x256xf32, #tpu.memory_space<vmem>>, vector<1x16xf32>
    %c0_51 = arith.constant 0 : index
    %c15 = arith.constant 15 : index
    %c128_52 = arith.constant 128 : index
    %65 = vector.load %arg5[%c0_51, %c15, %c128_52] : memref<2x27x147xf32, #tpu.memory_space<vmem>>, vector<1x1x16xf32>
    %66 = vector.shape_cast %65 : vector<1x1x16xf32> to vector<1x16xf32>
    %67 = vector.shape_cast %64 : vector<1x16xf32> to vector<1x1x16xf32>
    tpu.vector_store %arg5[%c0_51, %c15, %c128_52], %67 {strides = array<i32>} : memref<2x27x147xf32, #tpu.memory_space<vmem>>, vector<1x1x16xf32>,
    %c0_53 = arith.constant 0 : index
    %c128_54 = arith.constant 128 : index
    %68 = vector.load %arg7[%c0_53, %c128_54] : memref<2x256xf32, #tpu.memory_space<vmem>>, vector<1x16xf32>
    %c0_55 = arith.constant 0 : index
    %c16_56 = arith.constant 16 : index
    %c128_57 = arith.constant 128 : index
    %69 = vector.load %arg5[%c0_55, %c16_56, %c128_57] : memref<2x27x147xf32, #tpu.memory_space<vmem>>, vector<1x1x16xf32>
    %70 = vector.shape_cast %69 : vector<1x1x16xf32> to vector<1x16xf32>
    %71 = vector.shape_cast %68 : vector<1x16xf32> to vector<1x1x16xf32>
    tpu.vector_store %arg5[%c0_55, %c16_56, %c128_57], %71 {strides = array<i32>} : memref<2x27x147xf32, #tpu.memory_space<vmem>>, vector<1x1x16xf32>,
    %c0_58 = arith.constant 0 : index
    %c144_59 = arith.constant 144 : index
    %72 = vector.load %arg7[%c0_58, %c144_59] : memref<2x256xf32, #tpu.memory_space<vmem>>, vector<1x16xf32>
    %c0_60 = arith.constant 0 : index
    %c17 = arith.constant 17 : index
    %c128_61 = arith.constant 128 : index
    %73 = vector.load %arg5[%c0_60, %c17, %c128_61] : memref<2x27x147xf32, #tpu.memory_space<vmem>>, vector<1x1x16xf32>
    %74 = vector.shape_cast %73 : vector<1x1x16xf32> to vector<1x16xf32>
    %75 = vector.shape_cast %72 : vector<1x16xf32> to vector<1x1x16xf32>
    tpu.vector_store %arg5[%c0_60, %c17, %c128_61], %75 {strides = array<i32>} : memref<2x27x147xf32, #tpu.memory_space<vmem>>, vector<1x1x16xf32>,
    %c0_62 = arith.constant 0 : index
    %c160 = arith.constant 160 : index
    %76 = vector.load %arg7[%c0_62, %c160] : memref<2x256xf32, #tpu.memory_space<vmem>>, vector<1x16xf32>
    %c0_63 = arith.constant 0 : index
    %c18 = arith.constant 18 : index
    %c128_64 = arith.constant 128 : index
    %77 = vector.load %arg5[%c0_63, %c18, %c128_64] : memref<2x27x147xf32, #tpu.memory_space<vmem>>, vector<1x1x16xf32>
    %78 = vector.shape_cast %77 : vector<1x1x16xf32> to vector<1x16xf32>
    %79 = vector.shape_cast %76 : vector<1x16xf32> to vector<1x1x16xf32>
    tpu.vector_store %arg5[%c0_63, %c18, %c128_64], %79 {strides = array<i32>} : memref<2x27x147xf32, #tpu.memory_space<vmem>>, vector<1x1x16xf32>,
    %c0_65 = arith.constant 0 : index
    %c176 = arith.constant 176 : index
    %80 = vector.load %arg7[%c0_65, %c176] : memref<2x256xf32, #tpu.memory_space<vmem>>, vector<1x16xf32>
    %c0_66 = arith.constant 0 : index
    %c19 = arith.constant 19 : index
    %c128_67 = arith.constant 128 : index
    %81 = vector.load %arg5[%c0_66, %c19, %c128_67] : memref<2x27x147xf32, #tpu.memory_space<vmem>>, vector<1x1x16xf32>
    %82 = vector.shape_cast %81 : vector<1x1x16xf32> to vector<1x16xf32>
    %83 = vector.shape_cast %80 : vector<1x16xf32> to vector<1x1x16xf32>
    tpu.vector_store %arg5[%c0_66, %c19, %c128_67], %83 {strides = array<i32>} : memref<2x27x147xf32, #tpu.memory_space<vmem>>, vector<1x1x16xf32>,
    %c0_68 = arith.constant 0 : index
    %c192 = arith.constant 192 : index
    %84 = vector.load %arg7[%c0_68, %c192] : memref<2x256xf32, #tpu.memory_space<vmem>>, vector<1x16xf32>
    %c0_69 = arith.constant 0 : index
    %c20 = arith.constant 20 : index
    %c128_70 = arith.constant 128 : index
    %85 = vector.load %arg5[%c0_69, %c20, %c128_70] : memref<2x27x147xf32, #tpu.memory_space<vmem>>, vector<1x1x16xf32>
    %86 = vector.shape_cast %85 : vector<1x1x16xf32> to vector<1x16xf32>
    %87 = vector.shape_cast %84 : vector<1x16xf32> to vector<1x1x16xf32>
    tpu.vector_store %arg5[%c0_69, %c20, %c128_70], %87 {strides = array<i32>} : memref<2x27x147xf32, #tpu.memory_space<vmem>>, vector<1x1x16xf32>,
    %c0_71 = arith.constant 0 : index
    %c208 = arith.constant 208 : index
    %88 = vector.load %arg7[%c0_71, %c208] : memref<2x256xf32, #tpu.memory_space<vmem>>, vector<1x16xf32>
    %c0_72 = arith.constant 0 : index
    %c21 = arith.constant 21 : index
    %c128_73 = arith.constant 128 : index
    %89 = vector.load %arg5[%c0_72, %c21, %c128_73] : memref<2x27x147xf32, #tpu.memory_space<vmem>>, vector<1x1x16xf32>
    %90 = vector.shape_cast %89 : vector<1x1x16xf32> to vector<1x16xf32>
    %91 = vector.shape_cast %88 : vector<1x16xf32> to vector<1x1x16xf32>
    tpu.vector_store %arg5[%c0_72, %c21, %c128_73], %91 {strides = array<i32>} : memref<2x27x147xf32, #tpu.memory_space<vmem>>, vector<1x1x16xf32>,
    %c0_74 = arith.constant 0 : index
    %c224 = arith.constant 224 : index
    %92 = vector.load %arg7[%c0_74, %c224] : memref<2x256xf32, #tpu.memory_space<vmem>>, vector<1x16xf32>
    %c0_75 = arith.constant 0 : index
    %c22 = arith.constant 22 : index
    %c128_76 = arith.constant 128 : index
    %93 = vector.load %arg5[%c0_75, %c22, %c128_76] : memref<2x27x147xf32, #tpu.memory_space<vmem>>, vector<1x1x16xf32>
    %94 = vector.shape_cast %93 : vector<1x1x16xf32> to vector<1x16xf32>
    %95 = vector.shape_cast %92 : vector<1x16xf32> to vector<1x1x16xf32>
    tpu.vector_store %arg5[%c0_75, %c22, %c128_76], %95 {strides = array<i32>} : memref<2x27x147xf32, #tpu.memory_space<vmem>>, vector<1x1x16xf32>,
    %c0_77 = arith.constant 0 : index
    %c240 = arith.constant 240 : index
    %96 = vector.load %arg7[%c0_77, %c240] : memref<2x256xf32, #tpu.memory_space<vmem>>, vector<1x16xf32>
    %c0_78 = arith.constant 0 : index
    %c23 = arith.constant 23 : index
    %c128_79 = arith.constant 128 : index
    %97 = vector.load %arg5[%c0_78, %c23, %c128_79] : memref<2x27x147xf32, #tpu.memory_space<vmem>>, vector<1x1x16xf32>
    %98 = vector.shape_cast %97 : vector<1x1x16xf32> to vector<1x16xf32>
    %99 = vector.shape_cast %96 : vector<1x16xf32> to vector<1x1x16xf32>
    tpu.vector_store %arg5[%c0_78, %c23, %c128_79], %99 {strides = array<i32>} : memref<2x27x147xf32, #tpu.memory_space<vmem>>, vector<1x1x16xf32>,
    %c1_80 = arith.constant 1 : index
    %c0_81 = arith.constant 0 : index
    %100 = vector.load %arg7[%c1_80, %c0_81] : memref<2x256xf32, #tpu.memory_space<vmem>>, vector<1x16xf32>
    %c1_82 = arith.constant 1 : index
    %c8_83 = arith.constant 8 : index
    %c128_84 = arith.constant 128 : index
    %101 = vector.load %arg5[%c1_82, %c8_83, %c128_84] : memref<2x27x147xf32, #tpu.memory_space<vmem>>, vector<1x1x16xf32>
    %102 = vector.shape_cast %101 : vector<1x1x16xf32> to vector<1x16xf32>
    %103 = vector.shape_cast %100 : vector<1x16xf32> to vector<1x1x16xf32>
    tpu.vector_store %arg5[%c1_82, %c8_83, %c128_84], %103 {strides = array<i32>} : memref<2x27x147xf32, #tpu.memory_space<vmem>>, vector<1x1x16xf32>,
    %c1_85 = arith.constant 1 : index
    %c16_86 = arith.constant 16 : index
    %104 = vector.load %arg7[%c1_85, %c16_86] : memref<2x256xf32, #tpu.memory_space<vmem>>, vector<1x16xf32>
    %c1_87 = arith.constant 1 : index
    %c9_88 = arith.constant 9 : index
    %c128_89 = arith.constant 128 : index
    %105 = vector.load %arg5[%c1_87, %c9_88, %c128_89] : memref<2x27x147xf32, #tpu.memory_space<vmem>>, vector<1x1x16xf32>
    %106 = vector.shape_cast %105 : vector<1x1x16xf32> to vector<1x16xf32>
    %107 = vector.shape_cast %104 : vector<1x16xf32> to vector<1x1x16xf32>
    tpu.vector_store %arg5[%c1_87, %c9_88, %c128_89], %107 {strides = array<i32>} : memref<2x27x147xf32, #tpu.memory_space<vmem>>, vector<1x1x16xf32>,
    %c1_90 = arith.constant 1 : index
    %c32_91 = arith.constant 32 : index
    %108 = vector.load %arg7[%c1_90, %c32_91] : memref<2x256xf32, #tpu.memory_space<vmem>>, vector<1x16xf32>
    %c1_92 = arith.constant 1 : index
    %c10_93 = arith.constant 10 : index
    %c128_94 = arith.constant 128 : index
    %109 = vector.load %arg5[%c1_92, %c10_93, %c128_94] : memref<2x27x147xf32, #tpu.memory_space<vmem>>, vector<1x1x16xf32>
    %110 = vector.shape_cast %109 : vector<1x1x16xf32> to vector<1x16xf32>
    %111 = vector.shape_cast %108 : vector<1x16xf32> to vector<1x1x16xf32>
    tpu.vector_store %arg5[%c1_92, %c10_93, %c128_94], %111 {strides = array<i32>} : memref<2x27x147xf32, #tpu.memory_space<vmem>>, vector<1x1x16xf32>,
    %c1_95 = arith.constant 1 : index
    %c48_96 = arith.constant 48 : index
    %112 = vector.load %arg7[%c1_95, %c48_96] : memref<2x256xf32, #tpu.memory_space<vmem>>, vector<1x16xf32>
    %c1_97 = arith.constant 1 : index
    %c11_98 = arith.constant 11 : index
    %c128_99 = arith.constant 128 : index
    %113 = vector.load %arg5[%c1_97, %c11_98, %c128_99] : memref<2x27x147xf32, #tpu.memory_space<vmem>>, vector<1x1x16xf32>
    %114 = vector.shape_cast %113 : vector<1x1x16xf32> to vector<1x16xf32>
    %115 = vector.shape_cast %112 : vector<1x16xf32> to vector<1x1x16xf32>
    tpu.vector_store %arg5[%c1_97, %c11_98, %c128_99], %115 {strides = array<i32>} : memref<2x27x147xf32, #tpu.memory_space<vmem>>, vector<1x1x16xf32>,
    %c1_100 = arith.constant 1 : index
    %c64_101 = arith.constant 64 : index
    %116 = vector.load %arg7[%c1_100, %c64_101] : memref<2x256xf32, #tpu.memory_space<vmem>>, vector<1x16xf32>
    %c1_102 = arith.constant 1 : index
    %c12_103 = arith.constant 12 : index
    %c128_104 = arith.constant 128 : index
    %117 = vector.load %arg5[%c1_102, %c12_103, %c128_104] : memref<2x27x147xf32, #tpu.memory_space<vmem>>, vector<1x1x16xf32>
    %118 = vector.shape_cast %117 : vector<1x1x16xf32> to vector<1x16xf32>
    %119 = vector.shape_cast %116 : vector<1x16xf32> to vector<1x1x16xf32>
    tpu.vector_store %arg5[%c1_102, %c12_103, %c128_104], %119 {strides = array<i32>} : memref<2x27x147xf32, #tpu.memory_space<vmem>>, vector<1x1x16xf32>,
    %c1_105 = arith.constant 1 : index
    %c80_106 = arith.constant 80 : index
    %120 = vector.load %arg7[%c1_105, %c80_106] : memref<2x256xf32, #tpu.memory_space<vmem>>, vector<1x16xf32>
    %c1_107 = arith.constant 1 : index
    %c13_108 = arith.constant 13 : index
    %c128_109 = arith.constant 128 : index
    %121 = vector.load %arg5[%c1_107, %c13_108, %c128_109] : memref<2x27x147xf32, #tpu.memory_space<vmem>>, vector<1x1x16xf32>
    %122 = vector.shape_cast %121 : vector<1x1x16xf32> to vector<1x16xf32>
    %123 = vector.shape_cast %120 : vector<1x16xf32> to vector<1x1x16xf32>
    tpu.vector_store %arg5[%c1_107, %c13_108, %c128_109], %123 {strides = array<i32>} : memref<2x27x147xf32, #tpu.memory_space<vmem>>, vector<1x1x16xf32>,
    %c1_110 = arith.constant 1 : index
    %c96_111 = arith.constant 96 : index
    %124 = vector.load %arg7[%c1_110, %c96_111] : memref<2x256xf32, #tpu.memory_space<vmem>>, vector<1x16xf32>
    %c1_112 = arith.constant 1 : index
    %c14_113 = arith.constant 14 : index
    %c128_114 = arith.constant 128 : index
    %125 = vector.load %arg5[%c1_112, %c14_113, %c128_114] : memref<2x27x147xf32, #tpu.memory_space<vmem>>, vector<1x1x16xf32>
    %126 = vector.shape_cast %125 : vector<1x1x16xf32> to vector<1x16xf32>
    %127 = vector.shape_cast %124 : vector<1x16xf32> to vector<1x1x16xf32>
    tpu.vector_store %arg5[%c1_112, %c14_113, %c128_114], %127 {strides = array<i32>} : memref<2x27x147xf32, #tpu.memory_space<vmem>>, vector<1x1x16xf32>,
    %c1_115 = arith.constant 1 : index
    %c112_116 = arith.constant 112 : index
    %128 = vector.load %arg7[%c1_115, %c112_116] : memref<2x256xf32, #tpu.memory_space<vmem>>, vector<1x16xf32>
    %c1_117 = arith.constant 1 : index
    %c15_118 = arith.constant 15 : index
    %c128_119 = arith.constant 128 : index
    %129 = vector.load %arg5[%c1_117, %c15_118, %c128_119] : memref<2x27x147xf32, #tpu.memory_space<vmem>>, vector<1x1x16xf32>
    %130 = vector.shape_cast %129 : vector<1x1x16xf32> to vector<1x16xf32>
    %131 = vector.shape_cast %128 : vector<1x16xf32> to vector<1x1x16xf32>
    tpu.vector_store %arg5[%c1_117, %c15_118, %c128_119], %131 {strides = array<i32>} : memref<2x27x147xf32, #tpu.memory_space<vmem>>, vector<1x1x16xf32>,
    %c1_120 = arith.constant 1 : index
    %c128_121 = arith.constant 128 : index
    %132 = vector.load %arg7[%c1_120, %c128_121] : memref<2x256xf32, #tpu.memory_space<vmem>>, vector<1x16xf32>
    %c1_122 = arith.constant 1 : index
    %c16_123 = arith.constant 16 : index
    %c128_124 = arith.constant 128 : index
    %133 = vector.load %arg5[%c1_122, %c16_123, %c128_124] : memref<2x27x147xf32, #tpu.memory_space<vmem>>, vector<1x1x16xf32>
    %134 = vector.shape_cast %133 : vector<1x1x16xf32> to vector<1x16xf32>
    %135 = vector.shape_cast %132 : vector<1x16xf32> to vector<1x1x16xf32>
    tpu.vector_store %arg5[%c1_122, %c16_123, %c128_124], %135 {strides = array<i32>} : memref<2x27x147xf32, #tpu.memory_space<vmem>>, vector<1x1x16xf32>,
    %c1_125 = arith.constant 1 : index
    %c144_126 = arith.constant 144 : index
    %136 = vector.load %arg7[%c1_125, %c144_126] : memref<2x256xf32, #tpu.memory_space<vmem>>, vector<1x16xf32>
    %c1_127 = arith.constant 1 : index
    %c17_128 = arith.constant 17 : index
    %c128_129 = arith.constant 128 : index
    %137 = vector.load %arg5[%c1_127, %c17_128, %c128_129] : memref<2x27x147xf32, #tpu.memory_space<vmem>>, vector<1x1x16xf32>
    %138 = vector.shape_cast %137 : vector<1x1x16xf32> to vector<1x16xf32>
    %139 = vector.shape_cast %136 : vector<1x16xf32> to vector<1x1x16xf32>
    tpu.vector_store %arg5[%c1_127, %c17_128, %c128_129], %139 {strides = array<i32>} : memref<2x27x147xf32, #tpu.memory_space<vmem>>, vector<1x1x16xf32>,
    %c1_130 = arith.constant 1 : index
    %c160_131 = arith.constant 160 : index
    %140 = vector.load %arg7[%c1_130, %c160_131] : memref<2x256xf32, #tpu.memory_space<vmem>>, vector<1x16xf32>
    %c1_132 = arith.constant 1 : index
    %c18_133 = arith.constant 18 : index
    %c128_134 = arith.constant 128 : index
    %141 = vector.load %arg5[%c1_132, %c18_133, %c128_134] : memref<2x27x147xf32, #tpu.memory_space<vmem>>, vector<1x1x16xf32>
    %142 = vector.shape_cast %141 : vector<1x1x16xf32> to vector<1x16xf32>
    %143 = vector.shape_cast %140 : vector<1x16xf32> to vector<1x1x16xf32>
    tpu.vector_store %arg5[%c1_132, %c18_133, %c128_134], %143 {strides = array<i32>} : memref<2x27x147xf32, #tpu.memory_space<vmem>>, vector<1x1x16xf32>,
    %c1_135 = arith.constant 1 : index
    %c176_136 = arith.constant 176 : index
    %144 = vector.load %arg7[%c1_135, %c176_136] : memref<2x256xf32, #tpu.memory_space<vmem>>, vector<1x16xf32>
    %c1_137 = arith.constant 1 : index
    %c19_138 = arith.constant 19 : index
    %c128_139 = arith.constant 128 : index
    %145 = vector.load %arg5[%c1_137, %c19_138, %c128_139] : memref<2x27x147xf32, #tpu.memory_space<vmem>>, vector<1x1x16xf32>
    %146 = vector.shape_cast %145 : vector<1x1x16xf32> to vector<1x16xf32>
    %147 = vector.shape_cast %144 : vector<1x16xf32> to vector<1x1x16xf32>
    tpu.vector_store %arg5[%c1_137, %c19_138, %c128_139], %147 {strides = array<i32>} : memref<2x27x147xf32, #tpu.memory_space<vmem>>, vector<1x1x16xf32>,
    %c1_140 = arith.constant 1 : index
    %c192_141 = arith.constant 192 : index
    %148 = vector.load %arg7[%c1_140, %c192_141] : memref<2x256xf32, #tpu.memory_space<vmem>>, vector<1x16xf32>
    %c1_142 = arith.constant 1 : index
    %c20_143 = arith.constant 20 : index
    %c128_144 = arith.constant 128 : index
    %149 = vector.load %arg5[%c1_142, %c20_143, %c128_144] : memref<2x27x147xf32, #tpu.memory_space<vmem>>, vector<1x1x16xf32>
    %150 = vector.shape_cast %149 : vector<1x1x16xf32> to vector<1x16xf32>
    %151 = vector.shape_cast %148 : vector<1x16xf32> to vector<1x1x16xf32>
    tpu.vector_store %arg5[%c1_142, %c20_143, %c128_144], %151 {strides = array<i32>} : memref<2x27x147xf32, #tpu.memory_space<vmem>>, vector<1x1x16xf32>,
    %c1_145 = arith.constant 1 : index
    %c208_146 = arith.constant 208 : index
    %152 = vector.load %arg7[%c1_145, %c208_146] : memref<2x256xf32, #tpu.memory_space<vmem>>, vector<1x16xf32>
    %c1_147 = arith.constant 1 : index
    %c21_148 = arith.constant 21 : index
    %c128_149 = arith.constant 128 : index
    %153 = vector.load %arg5[%c1_147, %c21_148, %c128_149] : memref<2x27x147xf32, #tpu.memory_space<vmem>>, vector<1x1x16xf32>
    %154 = vector.shape_cast %153 : vector<1x1x16xf32> to vector<1x16xf32>
    %155 = vector.shape_cast %152 : vector<1x16xf32> to vector<1x1x16xf32>
    tpu.vector_store %arg5[%c1_147, %c21_148, %c128_149], %155 {strides = array<i32>} : memref<2x27x147xf32, #tpu.memory_space<vmem>>, vector<1x1x16xf32>,
    %c1_150 = arith.constant 1 : index
    %c224_151 = arith.constant 224 : index
    %156 = vector.load %arg7[%c1_150, %c224_151] : memref<2x256xf32, #tpu.memory_space<vmem>>, vector<1x16xf32>
    %c1_152 = arith.constant 1 : index
    %c22_153 = arith.constant 22 : index
    %c128_154 = arith.constant 128 : index
    %157 = vector.load %arg5[%c1_152, %c22_153, %c128_154] : memref<2x27x147xf32, #tpu.memory_space<vmem>>, vector<1x1x16xf32>
    %158 = vector.shape_cast %157 : vector<1x1x16xf32> to vector<1x16xf32>
    %159 = vector.shape_cast %156 : vector<1x16xf32> to vector<1x1x16xf32>
    tpu.vector_store %arg5[%c1_152, %c22_153, %c128_154], %159 {strides = array<i32>} : memref<2x27x147xf32, #tpu.memory_space<vmem>>, vector<1x1x16xf32>,
    %c1_155 = arith.constant 1 : index
    %c240_156 = arith.constant 240 : index
    %160 = vector.load %arg7[%c1_155, %c240_156] : memref<2x256xf32, #tpu.memory_space<vmem>>, vector<1x16xf32>
    %c1_157 = arith.constant 1 : index
    %c23_158 = arith.constant 23 : index
    %c128_159 = arith.constant 128 : index
    %161 = vector.load %arg5[%c1_157, %c23_158, %c128_159] : memref<2x27x147xf32, #tpu.memory_space<vmem>>, vector<1x1x16xf32>
    %162 = vector.shape_cast %161 : vector<1x1x16xf32> to vector<1x16xf32>
    %163 = vector.shape_cast %160 : vector<1x16xf32> to vector<1x1x16xf32>
    tpu.vector_store %arg5[%c1_157, %c23_158, %c128_159], %163 {strides = array<i32>} : memref<2x27x147xf32, #tpu.memory_space<vmem>>, vector<1x1x16xf32>,
    %cst_160 = arith.constant 0.000000e+00 : f32
    %164 = vector.broadcast %cst_160 : f32 to vector<16x16xf32>
    %c0_161 = arith.constant 0 : index
    %c5_162 = arith.constant 5 : index
    %c125_163 = arith.constant 125 : index
    %165 = vector.load %arg5[%c0_161, %c5_162, %c125_163] : memref<2x27x147xf32, #tpu.memory_space<vmem>>, vector<1x22x16xf32>
    %166 = vector.shape_cast %165 : vector<1x22x16xf32> to vector<22x16xf32>
    %c0_164 = arith.constant 0 : index
    %c0_165 = arith.constant 0 : index
    %167 = vector.load %arg6[%c0_164, %c0_165] : memref<22x16xf32, #tpu.memory_space<vmem>>, vector<22x16xf32>
    tpu.vector_store %arg6[%c0_164, %c0_165], %166 {strides = array<i32>} : memref<22x16xf32, #tpu.memory_space<vmem>>, vector<22x16xf32>,
    %c0_166 = arith.constant 0 : index
    %168 = memref.load %arg1[%c0_166] : memref<98xf32, #tpu.memory_space<smem>>
    %c0_167 = arith.constant 0 : index
    %c0_168 = arith.constant 0 : index
    %169 = vector.load %arg6[%c0_167, %c0_168] : memref<22x16xf32, #tpu.memory_space<vmem>>, vector<16x16xf32>
    %170 = vector.broadcast %168 : f32 to vector<16x16xf32>
    %171 = arith.mulf %170, %169 : vector<16x16xf32>
    %172 = arith.addf %164, %171 : vector<16x16xf32>
    %c7 = arith.constant 7 : index
    %173 = memref.load %arg1[%c7] : memref<98xf32, #tpu.memory_space<smem>>
    %c1_169 = arith.constant 1 : index
    %c0_170 = arith.constant 0 : index
    %174 = vector.load %arg6[%c1_169, %c0_170] : memref<22x16xf32, #tpu.memory_space<vmem>>, vector<16x16xf32>
    %175 = vector.broadcast %173 : f32 to vector<16x16xf32>
    %176 = arith.mulf %175, %174 : vector<16x16xf32>
    %177 = arith.addf %172, %176 : vector<16x16xf32>
    %c14_171 = arith.constant 14 : index
    %178 = memref.load %arg1[%c14_171] : memref<98xf32, #tpu.memory_space<smem>>
    %c2 = arith.constant 2 : index
    %c0_172 = arith.constant 0 : index
    %179 = vector.load %arg6[%c2, %c0_172] : memref<22x16xf32, #tpu.memory_space<vmem>>, vector<16x16xf32>
    %180 = vector.broadcast %178 : f32 to vector<16x16xf32>
    %181 = arith.mulf %180, %179 : vector<16x16xf32>
    %182 = arith.addf %177, %181 : vector<16x16xf32>
    %c21_173 = arith.constant 21 : index
    %183 = memref.load %arg1[%c21_173] : memref<98xf32, #tpu.memory_space<smem>>
    %c3 = arith.constant 3 : index
    %c0_174 = arith.constant 0 : index
    %184 = vector.load %arg6[%c3, %c0_174] : memref<22x16xf32, #tpu.memory_space<vmem>>, vector<16x16xf32>
    %185 = vector.broadcast %183 : f32 to vector<16x16xf32>
    %186 = arith.mulf %185, %184 : vector<16x16xf32>
    %187 = arith.addf %182, %186 : vector<16x16xf32>
    %c28 = arith.constant 28 : index
    %188 = memref.load %arg1[%c28] : memref<98xf32, #tpu.memory_space<smem>>
    %c4 = arith.constant 4 : index
    %c0_175 = arith.constant 0 : index
    %189 = vector.load %arg6[%c4, %c0_175] : memref<22x16xf32, #tpu.memory_space<vmem>>, vector<16x16xf32>
    %190 = vector.broadcast %188 : f32 to vector<16x16xf32>
    %191 = arith.mulf %190, %189 : vector<16x16xf32>
    %192 = arith.addf %187, %191 : vector<16x16xf32>
    %c35 = arith.constant 35 : index
    %193 = memref.load %arg1[%c35] : memref<98xf32, #tpu.memory_space<smem>>
    %c5_176 = arith.constant 5 : index
    %c0_177 = arith.constant 0 : index
    %194 = vector.load %arg6[%c5_176, %c0_177] : memref<22x16xf32, #tpu.memory_space<vmem>>, vector<16x16xf32>
    %195 = vector.broadcast %193 : f32 to vector<16x16xf32>
    %196 = arith.mulf %195, %194 : vector<16x16xf32>
    %197 = arith.addf %192, %196 : vector<16x16xf32>
    %c42 = arith.constant 42 : index
    %198 = memref.load %arg1[%c42] : memref<98xf32, #tpu.memory_space<smem>>
    %c6 = arith.constant 6 : index
    %c0_178 = arith.constant 0 : index
    %199 = vector.load %arg6[%c6, %c0_178] : memref<22x16xf32, #tpu.memory_space<vmem>>, vector<16x16xf32>
    %200 = vector.broadcast %198 : f32 to vector<16x16xf32>
    %201 = arith.mulf %200, %199 : vector<16x16xf32>
    %202 = arith.addf %197, %201 : vector<16x16xf32>
    %c0_179 = arith.constant 0 : index
    %c5_180 = arith.constant 5 : index
    %c126 = arith.constant 126 : index
    %203 = vector.load %arg5[%c0_179, %c5_180, %c126] : memref<2x27x147xf32, #tpu.memory_space<vmem>>, vector<1x22x16xf32>
    %204 = vector.shape_cast %203 : vector<1x22x16xf32> to vector<22x16xf32>
    %c0_181 = arith.constant 0 : index
    %c0_182 = arith.constant 0 : index
    %205 = vector.load %arg6[%c0_181, %c0_182] : memref<22x16xf32, #tpu.memory_space<vmem>>, vector<22x16xf32>
    tpu.vector_store %arg6[%c0_181, %c0_182], %204 {strides = array<i32>} : memref<22x16xf32, #tpu.memory_space<vmem>>, vector<22x16xf32>,
    %c1_183 = arith.constant 1 : index
    %206 = memref.load %arg1[%c1_183] : memref<98xf32, #tpu.memory_space<smem>>
    %c0_184 = arith.constant 0 : index
    %c0_185 = arith.constant 0 : index
    %207 = vector.load %arg6[%c0_184, %c0_185] : memref<22x16xf32, #tpu.memory_space<vmem>>, vector<16x16xf32>
    %208 = vector.broadcast %206 : f32 to vector<16x16xf32>
    %209 = arith.mulf %208, %207 : vector<16x16xf32>
    %210 = arith.addf %202, %209 : vector<16x16xf32>
    %c8_186 = arith.constant 8 : index
    %211 = memref.load %arg1[%c8_186] : memref<98xf32, #tpu.memory_space<smem>>
    %c1_187 = arith.constant 1 : index
    %c0_188 = arith.constant 0 : index
    %212 = vector.load %arg6[%c1_187, %c0_188] : memref<22x16xf32, #tpu.memory_space<vmem>>, vector<16x16xf32>
    %213 = vector.broadcast %211 : f32 to vector<16x16xf32>
    %214 = arith.mulf %213, %212 : vector<16x16xf32>
    %215 = arith.addf %210, %214 : vector<16x16xf32>
    %c15_189 = arith.constant 15 : index
    %216 = memref.load %arg1[%c15_189] : memref<98xf32, #tpu.memory_space<smem>>
    %c2_190 = arith.constant 2 : index
    %c0_191 = arith.constant 0 : index
    %217 = vector.load %arg6[%c2_190, %c0_191] : memref<22x16xf32, #tpu.memory_space<vmem>>, vector<16x16xf32>
    %218 = vector.broadcast %216 : f32 to vector<16x16xf32>
    %219 = arith.mulf %218, %217 : vector<16x16xf32>
    %220 = arith.addf %215, %219 : vector<16x16xf32>
    %c22_192 = arith.constant 22 : index
    %221 = memref.load %arg1[%c22_192] : memref<98xf32, #tpu.memory_space<smem>>
    %c3_193 = arith.constant 3 : index
    %c0_194 = arith.constant 0 : index
    %222 = vector.load %arg6[%c3_193, %c0_194] : memref<22x16xf32, #tpu.memory_space<vmem>>, vector<16x16xf32>
    %223 = vector.broadcast %221 : f32 to vector<16x16xf32>
    %224 = arith.mulf %223, %222 : vector<16x16xf32>
    %225 = arith.addf %220, %224 : vector<16x16xf32>
    %c29 = arith.constant 29 : index
    %226 = memref.load %arg1[%c29] : memref<98xf32, #tpu.memory_space<smem>>
    %c4_195 = arith.constant 4 : index
    %c0_196 = arith.constant 0 : index
    %227 = vector.load %arg6[%c4_195, %c0_196] : memref<22x16xf32, #tpu.memory_space<vmem>>, vector<16x16xf32>
    %228 = vector.broadcast %226 : f32 to vector<16x16xf32>
    %229 = arith.mulf %228, %227 : vector<16x16xf32>
    %230 = arith.addf %225, %229 : vector<16x16xf32>
    %c36 = arith.constant 36 : index
    %231 = memref.load %arg1[%c36] : memref<98xf32, #tpu.memory_space<smem>>
    %c5_197 = arith.constant 5 : index
    %c0_198 = arith.constant 0 : index
    %232 = vector.load %arg6[%c5_197, %c0_198] : memref<22x16xf32, #tpu.memory_space<vmem>>, vector<16x16xf32>
    %233 = vector.broadcast %231 : f32 to vector<16x16xf32>
    %234 = arith.mulf %233, %232 : vector<16x16xf32>
    %235 = arith.addf %230, %234 : vector<16x16xf32>
    %c43 = arith.constant 43 : index
    %236 = memref.load %arg1[%c43] : memref<98xf32, #tpu.memory_space<smem>>
    %c6_199 = arith.constant 6 : index
    %c0_200 = arith.constant 0 : index
    %237 = vector.load %arg6[%c6_199, %c0_200] : memref<22x16xf32, #tpu.memory_space<vmem>>, vector<16x16xf32>
    %238 = vector.broadcast %236 : f32 to vector<16x16xf32>
    %239 = arith.mulf %238, %237 : vector<16x16xf32>
    %240 = arith.addf %235, %239 : vector<16x16xf32>
    %c0_201 = arith.constant 0 : index
    %c5_202 = arith.constant 5 : index
    %c127 = arith.constant 127 : index
    %241 = vector.load %arg5[%c0_201, %c5_202, %c127] : memref<2x27x147xf32, #tpu.memory_space<vmem>>, vector<1x22x16xf32>
    %242 = vector.shape_cast %241 : vector<1x22x16xf32> to vector<22x16xf32>
    %c0_203 = arith.constant 0 : index
    %c0_204 = arith.constant 0 : index
    %243 = vector.load %arg6[%c0_203, %c0_204] : memref<22x16xf32, #tpu.memory_space<vmem>>, vector<22x16xf32>
    tpu.vector_store %arg6[%c0_203, %c0_204], %242 {strides = array<i32>} : memref<22x16xf32, #tpu.memory_space<vmem>>, vector<22x16xf32>,
    %c2_205 = arith.constant 2 : index
    %244 = memref.load %arg1[%c2_205] : memref<98xf32, #tpu.memory_space<smem>>
    %c0_206 = arith.constant 0 : index
    %c0_207 = arith.constant 0 : index
    %245 = vector.load %arg6[%c0_206, %c0_207] : memref<22x16xf32, #tpu.memory_space<vmem>>, vector<16x16xf32>
    %246 = vector.broadcast %244 : f32 to vector<16x16xf32>
    %247 = arith.mulf %246, %245 : vector<16x16xf32>
    %248 = arith.addf %240, %247 : vector<16x16xf32>
    %c9_208 = arith.constant 9 : index
    %249 = memref.load %arg1[%c9_208] : memref<98xf32, #tpu.memory_space<smem>>
    %c1_209 = arith.constant 1 : index
    %c0_210 = arith.constant 0 : index
    %250 = vector.load %arg6[%c1_209, %c0_210] : memref<22x16xf32, #tpu.memory_space<vmem>>, vector<16x16xf32>
    %251 = vector.broadcast %249 : f32 to vector<16x16xf32>
    %252 = arith.mulf %251, %250 : vector<16x16xf32>
    %253 = arith.addf %248, %252 : vector<16x16xf32>
    %c16_211 = arith.constant 16 : index
    %254 = memref.load %arg1[%c16_211] : memref<98xf32, #tpu.memory_space<smem>>
    %c2_212 = arith.constant 2 : index
    %c0_213 = arith.constant 0 : index
    %255 = vector.load %arg6[%c2_212, %c0_213] : memref<22x16xf32, #tpu.memory_space<vmem>>, vector<16x16xf32>
    %256 = vector.broadcast %254 : f32 to vector<16x16xf32>
    %257 = arith.mulf %256, %255 : vector<16x16xf32>
    %258 = arith.addf %253, %257 : vector<16x16xf32>
    %c23_214 = arith.constant 23 : index
    %259 = memref.load %arg1[%c23_214] : memref<98xf32, #tpu.memory_space<smem>>
    %c3_215 = arith.constant 3 : index
    %c0_216 = arith.constant 0 : index
    %260 = vector.load %arg6[%c3_215, %c0_216] : memref<22x16xf32, #tpu.memory_space<vmem>>, vector<16x16xf32>
    %261 = vector.broadcast %259 : f32 to vector<16x16xf32>
    %262 = arith.mulf %261, %260 : vector<16x16xf32>
    %263 = arith.addf %258, %262 : vector<16x16xf32>
    %c30 = arith.constant 30 : index
    %264 = memref.load %arg1[%c30] : memref<98xf32, #tpu.memory_space<smem>>
    %c4_217 = arith.constant 4 : index
    %c0_218 = arith.constant 0 : index
    %265 = vector.load %arg6[%c4_217, %c0_218] : memref<22x16xf32, #tpu.memory_space<vmem>>, vector<16x16xf32>
    %266 = vector.broadcast %264 : f32 to vector<16x16xf32>
    %267 = arith.mulf %266, %265 : vector<16x16xf32>
    %268 = arith.addf %263, %267 : vector<16x16xf32>
    %c37 = arith.constant 37 : index
    %269 = memref.load %arg1[%c37] : memref<98xf32, #tpu.memory_space<smem>>
    %c5_219 = arith.constant 5 : index
    %c0_220 = arith.constant 0 : index
    %270 = vector.load %arg6[%c5_219, %c0_220] : memref<22x16xf32, #tpu.memory_space<vmem>>, vector<16x16xf32>
    %271 = vector.broadcast %269 : f32 to vector<16x16xf32>
    %272 = arith.mulf %271, %270 : vector<16x16xf32>
    %273 = arith.addf %268, %272 : vector<16x16xf32>
    %c44 = arith.constant 44 : index
    %274 = memref.load %arg1[%c44] : memref<98xf32, #tpu.memory_space<smem>>
    %c6_221 = arith.constant 6 : index
    %c0_222 = arith.constant 0 : index
    %275 = vector.load %arg6[%c6_221, %c0_222] : memref<22x16xf32, #tpu.memory_space<vmem>>, vector<16x16xf32>
    %276 = vector.broadcast %274 : f32 to vector<16x16xf32>
    %277 = arith.mulf %276, %275 : vector<16x16xf32>
    %278 = arith.addf %273, %277 : vector<16x16xf32>
    %c0_223 = arith.constant 0 : index
    %c5_224 = arith.constant 5 : index
    %c128_225 = arith.constant 128 : index
    %279 = vector.load %arg5[%c0_223, %c5_224, %c128_225] : memref<2x27x147xf32, #tpu.memory_space<vmem>>, vector<1x22x16xf32>
    %280 = vector.shape_cast %279 : vector<1x22x16xf32> to vector<22x16xf32>
    %c0_226 = arith.constant 0 : index
    %c0_227 = arith.constant 0 : index
    %281 = vector.load %arg6[%c0_226, %c0_227] : memref<22x16xf32, #tpu.memory_space<vmem>>, vector<22x16xf32>
    tpu.vector_store %arg6[%c0_226, %c0_227], %280 {strides = array<i32>} : memref<22x16xf32, #tpu.memory_space<vmem>>, vector<22x16xf32>,
    %c3_228 = arith.constant 3 : index
    %282 = memref.load %arg1[%c3_228] : memref<98xf32, #tpu.memory_space<smem>>
    %c0_229 = arith.constant 0 : index
    %c0_230 = arith.constant 0 : index
    %283 = vector.load %arg6[%c0_229, %c0_230] : memref<22x16xf32, #tpu.memory_space<vmem>>, vector<16x16xf32>
    %284 = vector.broadcast %282 : f32 to vector<16x16xf32>
    %285 = arith.mulf %284, %283 : vector<16x16xf32>
    %286 = arith.addf %278, %285 : vector<16x16xf32>
    %c10_231 = arith.constant 10 : index
    %287 = memref.load %arg1[%c10_231] : memref<98xf32, #tpu.memory_space<smem>>
    %c1_232 = arith.constant 1 : index
    %c0_233 = arith.constant 0 : index
    %288 = vector.load %arg6[%c1_232, %c0_233] : memref<22x16xf32, #tpu.memory_space<vmem>>, vector<16x16xf32>
    %289 = vector.broadcast %287 : f32 to vector<16x16xf32>
    %290 = arith.mulf %289, %288 : vector<16x16xf32>
    %291 = arith.addf %286, %290 : vector<16x16xf32>
    %c17_234 = arith.constant 17 : index
    %292 = memref.load %arg1[%c17_234] : memref<98xf32, #tpu.memory_space<smem>>
    %c2_235 = arith.constant 2 : index
    %c0_236 = arith.constant 0 : index
    %293 = vector.load %arg6[%c2_235, %c0_236] : memref<22x16xf32, #tpu.memory_space<vmem>>, vector<16x16xf32>
    %294 = vector.broadcast %292 : f32 to vector<16x16xf32>
    %295 = arith.mulf %294, %293 : vector<16x16xf32>
    %296 = arith.addf %291, %295 : vector<16x16xf32>
    %c24_237 = arith.constant 24 : index
    %297 = memref.load %arg1[%c24_237] : memref<98xf32, #tpu.memory_space<smem>>
    %c3_238 = arith.constant 3 : index
    %c0_239 = arith.constant 0 : index
    %298 = vector.load %arg6[%c3_238, %c0_239] : memref<22x16xf32, #tpu.memory_space<vmem>>, vector<16x16xf32>
    %299 = vector.broadcast %297 : f32 to vector<16x16xf32>
    %300 = arith.mulf %299, %298 : vector<16x16xf32>
    %301 = arith.addf %296, %300 : vector<16x16xf32>
    %c31 = arith.constant 31 : index
    %302 = memref.load %arg1[%c31] : memref<98xf32, #tpu.memory_space<smem>>
    %c4_240 = arith.constant 4 : index
    %c0_241 = arith.constant 0 : index
    %303 = vector.load %arg6[%c4_240, %c0_241] : memref<22x16xf32, #tpu.memory_space<vmem>>, vector<16x16xf32>
    %304 = vector.broadcast %302 : f32 to vector<16x16xf32>
    %305 = arith.mulf %304, %303 : vector<16x16xf32>
    %306 = arith.addf %301, %305 : vector<16x16xf32>
    %c38 = arith.constant 38 : index
    %307 = memref.load %arg1[%c38] : memref<98xf32, #tpu.memory_space<smem>>
    %c5_242 = arith.constant 5 : index
    %c0_243 = arith.constant 0 : index
    %308 = vector.load %arg6[%c5_242, %c0_243] : memref<22x16xf32, #tpu.memory_space<vmem>>, vector<16x16xf32>
    %309 = vector.broadcast %307 : f32 to vector<16x16xf32>
    %310 = arith.mulf %309, %308 : vector<16x16xf32>
    %311 = arith.addf %306, %310 : vector<16x16xf32>
    %c45 = arith.constant 45 : index
    %312 = memref.load %arg1[%c45] : memref<98xf32, #tpu.memory_space<smem>>
    %c6_244 = arith.constant 6 : index
    %c0_245 = arith.constant 0 : index
    %313 = vector.load %arg6[%c6_244, %c0_245] : memref<22x16xf32, #tpu.memory_space<vmem>>, vector<16x16xf32>
    %314 = vector.broadcast %312 : f32 to vector<16x16xf32>
    %315 = arith.mulf %314, %313 : vector<16x16xf32>
    %316 = arith.addf %311, %315 : vector<16x16xf32>
    %c0_246 = arith.constant 0 : index
    %c5_247 = arith.constant 5 : index
    %c129 = arith.constant 129 : index
    %317 = vector.load %arg5[%c0_246, %c5_247, %c129] : memref<2x27x147xf32, #tpu.memory_space<vmem>>, vector<1x22x16xf32>
    %318 = vector.shape_cast %317 : vector<1x22x16xf32> to vector<22x16xf32>
    %c0_248 = arith.constant 0 : index
    %c0_249 = arith.constant 0 : index
    %319 = vector.load %arg6[%c0_248, %c0_249] : memref<22x16xf32, #tpu.memory_space<vmem>>, vector<22x16xf32>
    tpu.vector_store %arg6[%c0_248, %c0_249], %318 {strides = array<i32>} : memref<22x16xf32, #tpu.memory_space<vmem>>, vector<22x16xf32>,
    %c4_250 = arith.constant 4 : index
    %320 = memref.load %arg1[%c4_250] : memref<98xf32, #tpu.memory_space<smem>>
    %c0_251 = arith.constant 0 : index
    %c0_252 = arith.constant 0 : index
    %321 = vector.load %arg6[%c0_251, %c0_252] : memref<22x16xf32, #tpu.memory_space<vmem>>, vector<16x16xf32>
    %322 = vector.broadcast %320 : f32 to vector<16x16xf32>
    %323 = arith.mulf %322, %321 : vector<16x16xf32>
    %324 = arith.addf %316, %323 : vector<16x16xf32>
    %c11_253 = arith.constant 11 : index
    %325 = memref.load %arg1[%c11_253] : memref<98xf32, #tpu.memory_space<smem>>
    %c1_254 = arith.constant 1 : index
    %c0_255 = arith.constant 0 : index
    %326 = vector.load %arg6[%c1_254, %c0_255] : memref<22x16xf32, #tpu.memory_space<vmem>>, vector<16x16xf32>
    %327 = vector.broadcast %325 : f32 to vector<16x16xf32>
    %328 = arith.mulf %327, %326 : vector<16x16xf32>
    %329 = arith.addf %324, %328 : vector<16x16xf32>
    %c18_256 = arith.constant 18 : index
    %330 = memref.load %arg1[%c18_256] : memref<98xf32, #tpu.memory_space<smem>>
    %c2_257 = arith.constant 2 : index
    %c0_258 = arith.constant 0 : index
    %331 = vector.load %arg6[%c2_257, %c0_258] : memref<22x16xf32, #tpu.memory_space<vmem>>, vector<16x16xf32>
    %332 = vector.broadcast %330 : f32 to vector<16x16xf32>
    %333 = arith.mulf %332, %331 : vector<16x16xf32>
    %334 = arith.addf %329, %333 : vector<16x16xf32>
    %c25 = arith.constant 25 : index
    %335 = memref.load %arg1[%c25] : memref<98xf32, #tpu.memory_space<smem>>
    %c3_259 = arith.constant 3 : index
    %c0_260 = arith.constant 0 : index
    %336 = vector.load %arg6[%c3_259, %c0_260] : memref<22x16xf32, #tpu.memory_space<vmem>>, vector<16x16xf32>
    %337 = vector.broadcast %335 : f32 to vector<16x16xf32>
    %338 = arith.mulf %337, %336 : vector<16x16xf32>
    %339 = arith.addf %334, %338 : vector<16x16xf32>
    %c32_261 = arith.constant 32 : index
    %340 = memref.load %arg1[%c32_261] : memref<98xf32, #tpu.memory_space<smem>>
    %c4_262 = arith.constant 4 : index
    %c0_263 = arith.constant 0 : index
    %341 = vector.load %arg6[%c4_262, %c0_263] : memref<22x16xf32, #tpu.memory_space<vmem>>, vector<16x16xf32>
    %342 = vector.broadcast %340 : f32 to vector<16x16xf32>
    %343 = arith.mulf %342, %341 : vector<16x16xf32>
    %344 = arith.addf %339, %343 : vector<16x16xf32>
    %c39 = arith.constant 39 : index
    %345 = memref.load %arg1[%c39] : memref<98xf32, #tpu.memory_space<smem>>
    %c5_264 = arith.constant 5 : index
    %c0_265 = arith.constant 0 : index
    %346 = vector.load %arg6[%c5_264, %c0_265] : memref<22x16xf32, #tpu.memory_space<vmem>>, vector<16x16xf32>
    %347 = vector.broadcast %345 : f32 to vector<16x16xf32>
    %348 = arith.mulf %347, %346 : vector<16x16xf32>
    %349 = arith.addf %344, %348 : vector<16x16xf32>
    %c46 = arith.constant 46 : index
    %350 = memref.load %arg1[%c46] : memref<98xf32, #tpu.memory_space<smem>>
    %c6_266 = arith.constant 6 : index
    %c0_267 = arith.constant 0 : index
    %351 = vector.load %arg6[%c6_266, %c0_267] : memref<22x16xf32, #tpu.memory_space<vmem>>, vector<16x16xf32>
    %352 = vector.broadcast %350 : f32 to vector<16x16xf32>
    %353 = arith.mulf %352, %351 : vector<16x16xf32>
    %354 = arith.addf %349, %353 : vector<16x16xf32>
    %c0_268 = arith.constant 0 : index
    %c5_269 = arith.constant 5 : index
    %c130 = arith.constant 130 : index
    %355 = vector.load %arg5[%c0_268, %c5_269, %c130] : memref<2x27x147xf32, #tpu.memory_space<vmem>>, vector<1x22x16xf32>
    %356 = vector.shape_cast %355 : vector<1x22x16xf32> to vector<22x16xf32>
    %c0_270 = arith.constant 0 : index
    %c0_271 = arith.constant 0 : index
    %357 = vector.load %arg6[%c0_270, %c0_271] : memref<22x16xf32, #tpu.memory_space<vmem>>, vector<22x16xf32>
    tpu.vector_store %arg6[%c0_270, %c0_271], %356 {strides = array<i32>} : memref<22x16xf32, #tpu.memory_space<vmem>>, vector<22x16xf32>,
    %c5_272 = arith.constant 5 : index
    %358 = memref.load %arg1[%c5_272] : memref<98xf32, #tpu.memory_space<smem>>
    %c0_273 = arith.constant 0 : index
    %c0_274 = arith.constant 0 : index
    %359 = vector.load %arg6[%c0_273, %c0_274] : memref<22x16xf32, #tpu.memory_space<vmem>>, vector<16x16xf32>
    %360 = vector.broadcast %358 : f32 to vector<16x16xf32>
    %361 = arith.mulf %360, %359 : vector<16x16xf32>
    %362 = arith.addf %354, %361 : vector<16x16xf32>
    %c12_275 = arith.constant 12 : index
    %363 = memref.load %arg1[%c12_275] : memref<98xf32, #tpu.memory_space<smem>>
    %c1_276 = arith.constant 1 : index
    %c0_277 = arith.constant 0 : index
    %364 = vector.load %arg6[%c1_276, %c0_277] : memref<22x16xf32, #tpu.memory_space<vmem>>, vector<16x16xf32>
    %365 = vector.broadcast %363 : f32 to vector<16x16xf32>
    %366 = arith.mulf %365, %364 : vector<16x16xf32>
    %367 = arith.addf %362, %366 : vector<16x16xf32>
    %c19_278 = arith.constant 19 : index
    %368 = memref.load %arg1[%c19_278] : memref<98xf32, #tpu.memory_space<smem>>
    %c2_279 = arith.constant 2 : index
    %c0_280 = arith.constant 0 : index
    %369 = vector.load %arg6[%c2_279, %c0_280] : memref<22x16xf32, #tpu.memory_space<vmem>>, vector<16x16xf32>
    %370 = vector.broadcast %368 : f32 to vector<16x16xf32>
    %371 = arith.mulf %370, %369 : vector<16x16xf32>
    %372 = arith.addf %367, %371 : vector<16x16xf32>
    %c26 = arith.constant 26 : index
    %373 = memref.load %arg1[%c26] : memref<98xf32, #tpu.memory_space<smem>>
    %c3_281 = arith.constant 3 : index
    %c0_282 = arith.constant 0 : index
    %374 = vector.load %arg6[%c3_281, %c0_282] : memref<22x16xf32, #tpu.memory_space<vmem>>, vector<16x16xf32>
    %375 = vector.broadcast %373 : f32 to vector<16x16xf32>
    %376 = arith.mulf %375, %374 : vector<16x16xf32>
    %377 = arith.addf %372, %376 : vector<16x16xf32>
    %c33 = arith.constant 33 : index
    %378 = memref.load %arg1[%c33] : memref<98xf32, #tpu.memory_space<smem>>
    %c4_283 = arith.constant 4 : index
    %c0_284 = arith.constant 0 : index
    %379 = vector.load %arg6[%c4_283, %c0_284] : memref<22x16xf32, #tpu.memory_space<vmem>>, vector<16x16xf32>
    %380 = vector.broadcast %378 : f32 to vector<16x16xf32>
    %381 = arith.mulf %380, %379 : vector<16x16xf32>
    %382 = arith.addf %377, %381 : vector<16x16xf32>
    %c40 = arith.constant 40 : index
    %383 = memref.load %arg1[%c40] : memref<98xf32, #tpu.memory_space<smem>>
    %c5_285 = arith.constant 5 : index
    %c0_286 = arith.constant 0 : index
    %384 = vector.load %arg6[%c5_285, %c0_286] : memref<22x16xf32, #tpu.memory_space<vmem>>, vector<16x16xf32>
    %385 = vector.broadcast %383 : f32 to vector<16x16xf32>
    %386 = arith.mulf %385, %384 : vector<16x16xf32>
    %387 = arith.addf %382, %386 : vector<16x16xf32>
    %c47 = arith.constant 47 : index
    %388 = memref.load %arg1[%c47] : memref<98xf32, #tpu.memory_space<smem>>
    %c6_287 = arith.constant 6 : index
    %c0_288 = arith.constant 0 : index
    %389 = vector.load %arg6[%c6_287, %c0_288] : memref<22x16xf32, #tpu.memory_space<vmem>>, vector<16x16xf32>
    %390 = vector.broadcast %388 : f32 to vector<16x16xf32>
    %391 = arith.mulf %390, %389 : vector<16x16xf32>
    %392 = arith.addf %387, %391 : vector<16x16xf32>
    %c0_289 = arith.constant 0 : index
    %c5_290 = arith.constant 5 : index
    %c131 = arith.constant 131 : index
    %393 = vector.load %arg5[%c0_289, %c5_290, %c131] : memref<2x27x147xf32, #tpu.memory_space<vmem>>, vector<1x22x16xf32>
    %394 = vector.shape_cast %393 : vector<1x22x16xf32> to vector<22x16xf32>
    %c0_291 = arith.constant 0 : index
    %c0_292 = arith.constant 0 : index
    %395 = vector.load %arg6[%c0_291, %c0_292] : memref<22x16xf32, #tpu.memory_space<vmem>>, vector<22x16xf32>
    tpu.vector_store %arg6[%c0_291, %c0_292], %394 {strides = array<i32>} : memref<22x16xf32, #tpu.memory_space<vmem>>, vector<22x16xf32>,
    %c6_293 = arith.constant 6 : index
    %396 = memref.load %arg1[%c6_293] : memref<98xf32, #tpu.memory_space<smem>>
    %c0_294 = arith.constant 0 : index
    %c0_295 = arith.constant 0 : index
    %397 = vector.load %arg6[%c0_294, %c0_295] : memref<22x16xf32, #tpu.memory_space<vmem>>, vector<16x16xf32>
    %398 = vector.broadcast %396 : f32 to vector<16x16xf32>
    %399 = arith.mulf %398, %397 : vector<16x16xf32>
    %400 = arith.addf %392, %399 : vector<16x16xf32>
    %c13_296 = arith.constant 13 : index
    %401 = memref.load %arg1[%c13_296] : memref<98xf32, #tpu.memory_space<smem>>
    %c1_297 = arith.constant 1 : index
    %c0_298 = arith.constant 0 : index
    %402 = vector.load %arg6[%c1_297, %c0_298] : memref<22x16xf32, #tpu.memory_space<vmem>>, vector<16x16xf32>
    %403 = vector.broadcast %401 : f32 to vector<16x16xf32>
    %404 = arith.mulf %403, %402 : vector<16x16xf32>
    %405 = arith.addf %400, %404 : vector<16x16xf32>
    %c20_299 = arith.constant 20 : index
    %406 = memref.load %arg1[%c20_299] : memref<98xf32, #tpu.memory_space<smem>>
    %c2_300 = arith.constant 2 : index
    %c0_301 = arith.constant 0 : index
    %407 = vector.load %arg6[%c2_300, %c0_301] : memref<22x16xf32, #tpu.memory_space<vmem>>, vector<16x16xf32>
    %408 = vector.broadcast %406 : f32 to vector<16x16xf32>
    %409 = arith.mulf %408, %407 : vector<16x16xf32>
    %410 = arith.addf %405, %409 : vector<16x16xf32>
    %c27 = arith.constant 27 : index
    %411 = memref.load %arg1[%c27] : memref<98xf32, #tpu.memory_space<smem>>
    %c3_302 = arith.constant 3 : index
    %c0_303 = arith.constant 0 : index
    %412 = vector.load %arg6[%c3_302, %c0_303] : memref<22x16xf32, #tpu.memory_space<vmem>>, vector<16x16xf32>
    %413 = vector.broadcast %411 : f32 to vector<16x16xf32>
    %414 = arith.mulf %413, %412 : vector<16x16xf32>
    %415 = arith.addf %410, %414 : vector<16x16xf32>
    %c34 = arith.constant 34 : index
    %416 = memref.load %arg1[%c34] : memref<98xf32, #tpu.memory_space<smem>>
    %c4_304 = arith.constant 4 : index
    %c0_305 = arith.constant 0 : index
    %417 = vector.load %arg6[%c4_304, %c0_305] : memref<22x16xf32, #tpu.memory_space<vmem>>, vector<16x16xf32>
    %418 = vector.broadcast %416 : f32 to vector<16x16xf32>
    %419 = arith.mulf %418, %417 : vector<16x16xf32>
    %420 = arith.addf %415, %419 : vector<16x16xf32>
    %c41 = arith.constant 41 : index
    %421 = memref.load %arg1[%c41] : memref<98xf32, #tpu.memory_space<smem>>
    %c5_306 = arith.constant 5 : index
    %c0_307 = arith.constant 0 : index
    %422 = vector.load %arg6[%c5_306, %c0_307] : memref<22x16xf32, #tpu.memory_space<vmem>>, vector<16x16xf32>
    %423 = vector.broadcast %421 : f32 to vector<16x16xf32>
    %424 = arith.mulf %423, %422 : vector<16x16xf32>
    %425 = arith.addf %420, %424 : vector<16x16xf32>
    %c48_308 = arith.constant 48 : index
    %426 = memref.load %arg1[%c48_308] : memref<98xf32, #tpu.memory_space<smem>>
    %c6_309 = arith.constant 6 : index
    %c0_310 = arith.constant 0 : index
    %427 = vector.load %arg6[%c6_309, %c0_310] : memref<22x16xf32, #tpu.memory_space<vmem>>, vector<16x16xf32>
    %428 = vector.broadcast %426 : f32 to vector<16x16xf32>
    %429 = arith.mulf %428, %427 : vector<16x16xf32>
    %430 = arith.addf %425, %429 : vector<16x16xf32>
    %c1_311 = arith.constant 1 : index
    %c5_312 = arith.constant 5 : index
    %c125_313 = arith.constant 125 : index
    %431 = vector.load %arg5[%c1_311, %c5_312, %c125_313] : memref<2x27x147xf32, #tpu.memory_space<vmem>>, vector<1x22x16xf32>
    %432 = vector.shape_cast %431 : vector<1x22x16xf32> to vector<22x16xf32>
    %c0_314 = arith.constant 0 : index
    %c0_315 = arith.constant 0 : index
    %433 = vector.load %arg6[%c0_314, %c0_315] : memref<22x16xf32, #tpu.memory_space<vmem>>, vector<22x16xf32>
    tpu.vector_store %arg6[%c0_314, %c0_315], %432 {strides = array<i32>} : memref<22x16xf32, #tpu.memory_space<vmem>>, vector<22x16xf32>,
    %c49 = arith.constant 49 : index
    %434 = memref.load %arg1[%c49] : memref<98xf32, #tpu.memory_space<smem>>
    %c0_316 = arith.constant 0 : index
    %c0_317 = arith.constant 0 : index
    %435 = vector.load %arg6[%c0_316, %c0_317] : memref<22x16xf32, #tpu.memory_space<vmem>>, vector<16x16xf32>
    %436 = vector.broadcast %434 : f32 to vector<16x16xf32>
    %437 = arith.mulf %436, %435 : vector<16x16xf32>
    %438 = arith.addf %430, %437 : vector<16x16xf32>
    %c56 = arith.constant 56 : index
    %439 = memref.load %arg1[%c56] : memref<98xf32, #tpu.memory_space<smem>>
    %c1_318 = arith.constant 1 : index
    %c0_319 = arith.constant 0 : index
    %440 = vector.load %arg6[%c1_318, %c0_319] : memref<22x16xf32, #tpu.memory_space<vmem>>, vector<16x16xf32>
    %441 = vector.broadcast %439 : f32 to vector<16x16xf32>
    %442 = arith.mulf %441, %440 : vector<16x16xf32>
    %443 = arith.addf %438, %442 : vector<16x16xf32>
    %c63 = arith.constant 63 : index
    %444 = memref.load %arg1[%c63] : memref<98xf32, #tpu.memory_space<smem>>
    %c2_320 = arith.constant 2 : index
    %c0_321 = arith.constant 0 : index
    %445 = vector.load %arg6[%c2_320, %c0_321] : memref<22x16xf32, #tpu.memory_space<vmem>>, vector<16x16xf32>
    %446 = vector.broadcast %444 : f32 to vector<16x16xf32>
    %447 = arith.mulf %446, %445 : vector<16x16xf32>
    %448 = arith.addf %443, %447 : vector<16x16xf32>
    %c70 = arith.constant 70 : index
    %449 = memref.load %arg1[%c70] : memref<98xf32, #tpu.memory_space<smem>>
    %c3_322 = arith.constant 3 : index
    %c0_323 = arith.constant 0 : index
    %450 = vector.load %arg6[%c3_322, %c0_323] : memref<22x16xf32, #tpu.memory_space<vmem>>, vector<16x16xf32>
    %451 = vector.broadcast %449 : f32 to vector<16x16xf32>
    %452 = arith.mulf %451, %450 : vector<16x16xf32>
    %453 = arith.addf %448, %452 : vector<16x16xf32>
    %c77 = arith.constant 77 : index
    %454 = memref.load %arg1[%c77] : memref<98xf32, #tpu.memory_space<smem>>
    %c4_324 = arith.constant 4 : index
    %c0_325 = arith.constant 0 : index
    %455 = vector.load %arg6[%c4_324, %c0_325] : memref<22x16xf32, #tpu.memory_space<vmem>>, vector<16x16xf32>
    %456 = vector.broadcast %454 : f32 to vector<16x16xf32>
    %457 = arith.mulf %456, %455 : vector<16x16xf32>
    %458 = arith.addf %453, %457 : vector<16x16xf32>
    %c84 = arith.constant 84 : index
    %459 = memref.load %arg1[%c84] : memref<98xf32, #tpu.memory_space<smem>>
    %c5_326 = arith.constant 5 : index
    %c0_327 = arith.constant 0 : index
    %460 = vector.load %arg6[%c5_326, %c0_327] : memref<22x16xf32, #tpu.memory_space<vmem>>, vector<16x16xf32>
    %461 = vector.broadcast %459 : f32 to vector<16x16xf32>
    %462 = arith.mulf %461, %460 : vector<16x16xf32>
    %463 = arith.addf %458, %462 : vector<16x16xf32>
    %c91 = arith.constant 91 : index
    %464 = memref.load %arg1[%c91] : memref<98xf32, #tpu.memory_space<smem>>
    %c6_328 = arith.constant 6 : index
    %c0_329 = arith.constant 0 : index
    %465 = vector.load %arg6[%c6_328, %c0_329] : memref<22x16xf32, #tpu.memory_space<vmem>>, vector<16x16xf32>
    %466 = vector.broadcast %464 : f32 to vector<16x16xf32>
    %467 = arith.mulf %466, %465 : vector<16x16xf32>
    %468 = arith.addf %463, %467 : vector<16x16xf32>
    %c1_330 = arith.constant 1 : index
    %c5_331 = arith.constant 5 : index
    %c126_332 = arith.constant 126 : index
    %469 = vector.load %arg5[%c1_330, %c5_331, %c126_332] : memref<2x27x147xf32, #tpu.memory_space<vmem>>, vector<1x22x16xf32>
    %470 = vector.shape_cast %469 : vector<1x22x16xf32> to vector<22x16xf32>
    %c0_333 = arith.constant 0 : index
    %c0_334 = arith.constant 0 : index
    %471 = vector.load %arg6[%c0_333, %c0_334] : memref<22x16xf32, #tpu.memory_space<vmem>>, vector<22x16xf32>
    tpu.vector_store %arg6[%c0_333, %c0_334], %470 {strides = array<i32>} : memref<22x16xf32, #tpu.memory_space<vmem>>, vector<22x16xf32>,
    %c50 = arith.constant 50 : index
    %472 = memref.load %arg1[%c50] : memref<98xf32, #tpu.memory_space<smem>>
    %c0_335 = arith.constant 0 : index
    %c0_336 = arith.constant 0 : index
    %473 = vector.load %arg6[%c0_335, %c0_336] : memref<22x16xf32, #tpu.memory_space<vmem>>, vector<16x16xf32>
    %474 = vector.broadcast %472 : f32 to vector<16x16xf32>
    %475 = arith.mulf %474, %473 : vector<16x16xf32>
    %476 = arith.addf %468, %475 : vector<16x16xf32>
    %c57 = arith.constant 57 : index
    %477 = memref.load %arg1[%c57] : memref<98xf32, #tpu.memory_space<smem>>
    %c1_337 = arith.constant 1 : index
    %c0_338 = arith.constant 0 : index
    %478 = vector.load %arg6[%c1_337, %c0_338] : memref<22x16xf32, #tpu.memory_space<vmem>>, vector<16x16xf32>
    %479 = vector.broadcast %477 : f32 to vector<16x16xf32>
    %480 = arith.mulf %479, %478 : vector<16x16xf32>
    %481 = arith.addf %476, %480 : vector<16x16xf32>
    %c64_339 = arith.constant 64 : index
    %482 = memref.load %arg1[%c64_339] : memref<98xf32, #tpu.memory_space<smem>>
    %c2_340 = arith.constant 2 : index
    %c0_341 = arith.constant 0 : index
    %483 = vector.load %arg6[%c2_340, %c0_341] : memref<22x16xf32, #tpu.memory_space<vmem>>, vector<16x16xf32>
    %484 = vector.broadcast %482 : f32 to vector<16x16xf32>
    %485 = arith.mulf %484, %483 : vector<16x16xf32>
    %486 = arith.addf %481, %485 : vector<16x16xf32>
    %c71 = arith.constant 71 : index
    %487 = memref.load %arg1[%c71] : memref<98xf32, #tpu.memory_space<smem>>
    %c3_342 = arith.constant 3 : index
    %c0_343 = arith.constant 0 : index
    %488 = vector.load %arg6[%c3_342, %c0_343] : memref<22x16xf32, #tpu.memory_space<vmem>>, vector<16x16xf32>
    %489 = vector.broadcast %487 : f32 to vector<16x16xf32>
    %490 = arith.mulf %489, %488 : vector<16x16xf32>
    %491 = arith.addf %486, %490 : vector<16x16xf32>
    %c78 = arith.constant 78 : index
    %492 = memref.load %arg1[%c78] : memref<98xf32, #tpu.memory_space<smem>>
    %c4_344 = arith.constant 4 : index
    %c0_345 = arith.constant 0 : index
    %493 = vector.load %arg6[%c4_344, %c0_345] : memref<22x16xf32, #tpu.memory_space<vmem>>, vector<16x16xf32>
    %494 = vector.broadcast %492 : f32 to vector<16x16xf32>
    %495 = arith.mulf %494, %493 : vector<16x16xf32>
    %496 = arith.addf %491, %495 : vector<16x16xf32>
    %c85 = arith.constant 85 : index
    %497 = memref.load %arg1[%c85] : memref<98xf32, #tpu.memory_space<smem>>
    %c5_346 = arith.constant 5 : index
    %c0_347 = arith.constant 0 : index
    %498 = vector.load %arg6[%c5_346, %c0_347] : memref<22x16xf32, #tpu.memory_space<vmem>>, vector<16x16xf32>
    %499 = vector.broadcast %497 : f32 to vector<16x16xf32>
    %500 = arith.mulf %499, %498 : vector<16x16xf32>
    %501 = arith.addf %496, %500 : vector<16x16xf32>
    %c92 = arith.constant 92 : index
    %502 = memref.load %arg1[%c92] : memref<98xf32, #tpu.memory_space<smem>>
    %c6_348 = arith.constant 6 : index
    %c0_349 = arith.constant 0 : index
    %503 = vector.load %arg6[%c6_348, %c0_349] : memref<22x16xf32, #tpu.memory_space<vmem>>, vector<16x16xf32>
    %504 = vector.broadcast %502 : f32 to vector<16x16xf32>
    %505 = arith.mulf %504, %503 : vector<16x16xf32>
    %506 = arith.addf %501, %505 : vector<16x16xf32>
    %c1_350 = arith.constant 1 : index
    %c5_351 = arith.constant 5 : index
    %c127_352 = arith.constant 127 : index
    %507 = vector.load %arg5[%c1_350, %c5_351, %c127_352] : memref<2x27x147xf32, #tpu.memory_space<vmem>>, vector<1x22x16xf32>
    %508 = vector.shape_cast %507 : vector<1x22x16xf32> to vector<22x16xf32>
    %c0_353 = arith.constant 0 : index
    %c0_354 = arith.constant 0 : index
    %509 = vector.load %arg6[%c0_353, %c0_354] : memref<22x16xf32, #tpu.memory_space<vmem>>, vector<22x16xf32>
    tpu.vector_store %arg6[%c0_353, %c0_354], %508 {strides = array<i32>} : memref<22x16xf32, #tpu.memory_space<vmem>>, vector<22x16xf32>,
    %c51 = arith.constant 51 : index
    %510 = memref.load %arg1[%c51] : memref<98xf32, #tpu.memory_space<smem>>
    %c0_355 = arith.constant 0 : index
    %c0_356 = arith.constant 0 : index
    %511 = vector.load %arg6[%c0_355, %c0_356] : memref<22x16xf32, #tpu.memory_space<vmem>>, vector<16x16xf32>
    %512 = vector.broadcast %510 : f32 to vector<16x16xf32>
    %513 = arith.mulf %512, %511 : vector<16x16xf32>
    %514 = arith.addf %506, %513 : vector<16x16xf32>
    %c58 = arith.constant 58 : index
    %515 = memref.load %arg1[%c58] : memref<98xf32, #tpu.memory_space<smem>>
    %c1_357 = arith.constant 1 : index
    %c0_358 = arith.constant 0 : index
    %516 = vector.load %arg6[%c1_357, %c0_358] : memref<22x16xf32, #tpu.memory_space<vmem>>, vector<16x16xf32>
    %517 = vector.broadcast %515 : f32 to vector<16x16xf32>
    %518 = arith.mulf %517, %516 : vector<16x16xf32>
    %519 = arith.addf %514, %518 : vector<16x16xf32>
    %c65 = arith.constant 65 : index
    %520 = memref.load %arg1[%c65] : memref<98xf32, #tpu.memory_space<smem>>
    %c2_359 = arith.constant 2 : index
    %c0_360 = arith.constant 0 : index
    %521 = vector.load %arg6[%c2_359, %c0_360] : memref<22x16xf32, #tpu.memory_space<vmem>>, vector<16x16xf32>
    %522 = vector.broadcast %520 : f32 to vector<16x16xf32>
    %523 = arith.mulf %522, %521 : vector<16x16xf32>
    %524 = arith.addf %519, %523 : vector<16x16xf32>
    %c72 = arith.constant 72 : index
    %525 = memref.load %arg1[%c72] : memref<98xf32, #tpu.memory_space<smem>>
    %c3_361 = arith.constant 3 : index
    %c0_362 = arith.constant 0 : index
    %526 = vector.load %arg6[%c3_361, %c0_362] : memref<22x16xf32, #tpu.memory_space<vmem>>, vector<16x16xf32>
    %527 = vector.broadcast %525 : f32 to vector<16x16xf32>
    %528 = arith.mulf %527, %526 : vector<16x16xf32>
    %529 = arith.addf %524, %528 : vector<16x16xf32>
    %c79 = arith.constant 79 : index
    %530 = memref.load %arg1[%c79] : memref<98xf32, #tpu.memory_space<smem>>
    %c4_363 = arith.constant 4 : index
    %c0_364 = arith.constant 0 : index
    %531 = vector.load %arg6[%c4_363, %c0_364] : memref<22x16xf32, #tpu.memory_space<vmem>>, vector<16x16xf32>
    %532 = vector.broadcast %530 : f32 to vector<16x16xf32>
    %533 = arith.mulf %532, %531 : vector<16x16xf32>
    %534 = arith.addf %529, %533 : vector<16x16xf32>
    %c86 = arith.constant 86 : index
    %535 = memref.load %arg1[%c86] : memref<98xf32, #tpu.memory_space<smem>>
    %c5_365 = arith.constant 5 : index
    %c0_366 = arith.constant 0 : index
    %536 = vector.load %arg6[%c5_365, %c0_366] : memref<22x16xf32, #tpu.memory_space<vmem>>, vector<16x16xf32>
    %537 = vector.broadcast %535 : f32 to vector<16x16xf32>
    %538 = arith.mulf %537, %536 : vector<16x16xf32>
    %539 = arith.addf %534, %538 : vector<16x16xf32>
    %c93 = arith.constant 93 : index
    %540 = memref.load %arg1[%c93] : memref<98xf32, #tpu.memory_space<smem>>
    %c6_367 = arith.constant 6 : index
    %c0_368 = arith.constant 0 : index
    %541 = vector.load %arg6[%c6_367, %c0_368] : memref<22x16xf32, #tpu.memory_space<vmem>>, vector<16x16xf32>
    %542 = vector.broadcast %540 : f32 to vector<16x16xf32>
    %543 = arith.mulf %542, %541 : vector<16x16xf32>
    %544 = arith.addf %539, %543 : vector<16x16xf32>
    %c1_369 = arith.constant 1 : index
    %c5_370 = arith.constant 5 : index
    %c128_371 = arith.constant 128 : index
    %545 = vector.load %arg5[%c1_369, %c5_370, %c128_371] : memref<2x27x147xf32, #tpu.memory_space<vmem>>, vector<1x22x16xf32>
    %546 = vector.shape_cast %545 : vector<1x22x16xf32> to vector<22x16xf32>
    %c0_372 = arith.constant 0 : index
    %c0_373 = arith.constant 0 : index
    %547 = vector.load %arg6[%c0_372, %c0_373] : memref<22x16xf32, #tpu.memory_space<vmem>>, vector<22x16xf32>
    tpu.vector_store %arg6[%c0_372, %c0_373], %546 {strides = array<i32>} : memref<22x16xf32, #tpu.memory_space<vmem>>, vector<22x16xf32>,
    %c52 = arith.constant 52 : index
    %548 = memref.load %arg1[%c52] : memref<98xf32, #tpu.memory_space<smem>>
    %c0_374 = arith.constant 0 : index
    %c0_375 = arith.constant 0 : index
    %549 = vector.load %arg6[%c0_374, %c0_375] : memref<22x16xf32, #tpu.memory_space<vmem>>, vector<16x16xf32>
    %550 = vector.broadcast %548 : f32 to vector<16x16xf32>
    %551 = arith.mulf %550, %549 : vector<16x16xf32>
    %552 = arith.addf %544, %551 : vector<16x16xf32>
    %c59 = arith.constant 59 : index
    %553 = memref.load %arg1[%c59] : memref<98xf32, #tpu.memory_space<smem>>
    %c1_376 = arith.constant 1 : index
    %c0_377 = arith.constant 0 : index
    %554 = vector.load %arg6[%c1_376, %c0_377] : memref<22x16xf32, #tpu.memory_space<vmem>>, vector<16x16xf32>
    %555 = vector.broadcast %553 : f32 to vector<16x16xf32>
    %556 = arith.mulf %555, %554 : vector<16x16xf32>
    %557 = arith.addf %552, %556 : vector<16x16xf32>
    %c66 = arith.constant 66 : index
    %558 = memref.load %arg1[%c66] : memref<98xf32, #tpu.memory_space<smem>>
    %c2_378 = arith.constant 2 : index
    %c0_379 = arith.constant 0 : index
    %559 = vector.load %arg6[%c2_378, %c0_379] : memref<22x16xf32, #tpu.memory_space<vmem>>, vector<16x16xf32>
    %560 = vector.broadcast %558 : f32 to vector<16x16xf32>
    %561 = arith.mulf %560, %559 : vector<16x16xf32>
    %562 = arith.addf %557, %561 : vector<16x16xf32>
    %c73 = arith.constant 73 : index
    %563 = memref.load %arg1[%c73] : memref<98xf32, #tpu.memory_space<smem>>
    %c3_380 = arith.constant 3 : index
    %c0_381 = arith.constant 0 : index
    %564 = vector.load %arg6[%c3_380, %c0_381] : memref<22x16xf32, #tpu.memory_space<vmem>>, vector<16x16xf32>
    %565 = vector.broadcast %563 : f32 to vector<16x16xf32>
    %566 = arith.mulf %565, %564 : vector<16x16xf32>
    %567 = arith.addf %562, %566 : vector<16x16xf32>
    %c80_382 = arith.constant 80 : index
    %568 = memref.load %arg1[%c80_382] : memref<98xf32, #tpu.memory_space<smem>>
    %c4_383 = arith.constant 4 : index
    %c0_384 = arith.constant 0 : index
    %569 = vector.load %arg6[%c4_383, %c0_384] : memref<22x16xf32, #tpu.memory_space<vmem>>, vector<16x16xf32>
    %570 = vector.broadcast %568 : f32 to vector<16x16xf32>
    %571 = arith.mulf %570, %569 : vector<16x16xf32>
    %572 = arith.addf %567, %571 : vector<16x16xf32>
    %c87 = arith.constant 87 : index
    %573 = memref.load %arg1[%c87] : memref<98xf32, #tpu.memory_space<smem>>
    %c5_385 = arith.constant 5 : index
    %c0_386 = arith.constant 0 : index
    %574 = vector.load %arg6[%c5_385, %c0_386] : memref<22x16xf32, #tpu.memory_space<vmem>>, vector<16x16xf32>
    %575 = vector.broadcast %573 : f32 to vector<16x16xf32>
    %576 = arith.mulf %575, %574 : vector<16x16xf32>
    %577 = arith.addf %572, %576 : vector<16x16xf32>
    %c94 = arith.constant 94 : index
    %578 = memref.load %arg1[%c94] : memref<98xf32, #tpu.memory_space<smem>>
    %c6_387 = arith.constant 6 : index
    %c0_388 = arith.constant 0 : index
    %579 = vector.load %arg6[%c6_387, %c0_388] : memref<22x16xf32, #tpu.memory_space<vmem>>, vector<16x16xf32>
    %580 = vector.broadcast %578 : f32 to vector<16x16xf32>
    %581 = arith.mulf %580, %579 : vector<16x16xf32>
    %582 = arith.addf %577, %581 : vector<16x16xf32>
    %c1_389 = arith.constant 1 : index
    %c5_390 = arith.constant 5 : index
    %c129_391 = arith.constant 129 : index
    %583 = vector.load %arg5[%c1_389, %c5_390, %c129_391] : memref<2x27x147xf32, #tpu.memory_space<vmem>>, vector<1x22x16xf32>
    %584 = vector.shape_cast %583 : vector<1x22x16xf32> to vector<22x16xf32>
    %c0_392 = arith.constant 0 : index
    %c0_393 = arith.constant 0 : index
    %585 = vector.load %arg6[%c0_392, %c0_393] : memref<22x16xf32, #tpu.memory_space<vmem>>, vector<22x16xf32>
    tpu.vector_store %arg6[%c0_392, %c0_393], %584 {strides = array<i32>} : memref<22x16xf32, #tpu.memory_space<vmem>>, vector<22x16xf32>,
    %c53 = arith.constant 53 : index
    %586 = memref.load %arg1[%c53] : memref<98xf32, #tpu.memory_space<smem>>
    %c0_394 = arith.constant 0 : index
    %c0_395 = arith.constant 0 : index
    %587 = vector.load %arg6[%c0_394, %c0_395] : memref<22x16xf32, #tpu.memory_space<vmem>>, vector<16x16xf32>
    %588 = vector.broadcast %586 : f32 to vector<16x16xf32>
    %589 = arith.mulf %588, %587 : vector<16x16xf32>
    %590 = arith.addf %582, %589 : vector<16x16xf32>
    %c60 = arith.constant 60 : index
    %591 = memref.load %arg1[%c60] : memref<98xf32, #tpu.memory_space<smem>>
    %c1_396 = arith.constant 1 : index
    %c0_397 = arith.constant 0 : index
    %592 = vector.load %arg6[%c1_396, %c0_397] : memref<22x16xf32, #tpu.memory_space<vmem>>, vector<16x16xf32>
    %593 = vector.broadcast %591 : f32 to vector<16x16xf32>
    %594 = arith.mulf %593, %592 : vector<16x16xf32>
    %595 = arith.addf %590, %594 : vector<16x16xf32>
    %c67 = arith.constant 67 : index
    %596 = memref.load %arg1[%c67] : memref<98xf32, #tpu.memory_space<smem>>
    %c2_398 = arith.constant 2 : index
    %c0_399 = arith.constant 0 : index
    %597 = vector.load %arg6[%c2_398, %c0_399] : memref<22x16xf32, #tpu.memory_space<vmem>>, vector<16x16xf32>
    %598 = vector.broadcast %596 : f32 to vector<16x16xf32>
    %599 = arith.mulf %598, %597 : vector<16x16xf32>
    %600 = arith.addf %595, %599 : vector<16x16xf32>
    %c74 = arith.constant 74 : index
    %601 = memref.load %arg1[%c74] : memref<98xf32, #tpu.memory_space<smem>>
    %c3_400 = arith.constant 3 : index
    %c0_401 = arith.constant 0 : index
    %602 = vector.load %arg6[%c3_400, %c0_401] : memref<22x16xf32, #tpu.memory_space<vmem>>, vector<16x16xf32>
    %603 = vector.broadcast %601 : f32 to vector<16x16xf32>
    %604 = arith.mulf %603, %602 : vector<16x16xf32>
    %605 = arith.addf %600, %604 : vector<16x16xf32>
    %c81 = arith.constant 81 : index
    %606 = memref.load %arg1[%c81] : memref<98xf32, #tpu.memory_space<smem>>
    %c4_402 = arith.constant 4 : index
    %c0_403 = arith.constant 0 : index
    %607 = vector.load %arg6[%c4_402, %c0_403] : memref<22x16xf32, #tpu.memory_space<vmem>>, vector<16x16xf32>
    %608 = vector.broadcast %606 : f32 to vector<16x16xf32>
    %609 = arith.mulf %608, %607 : vector<16x16xf32>
    %610 = arith.addf %605, %609 : vector<16x16xf32>
    %c88 = arith.constant 88 : index
    %611 = memref.load %arg1[%c88] : memref<98xf32, #tpu.memory_space<smem>>
    %c5_404 = arith.constant 5 : index
    %c0_405 = arith.constant 0 : index
    %612 = vector.load %arg6[%c5_404, %c0_405] : memref<22x16xf32, #tpu.memory_space<vmem>>, vector<16x16xf32>
    %613 = vector.broadcast %611 : f32 to vector<16x16xf32>
    %614 = arith.mulf %613, %612 : vector<16x16xf32>
    %615 = arith.addf %610, %614 : vector<16x16xf32>
    %c95 = arith.constant 95 : index
    %616 = memref.load %arg1[%c95] : memref<98xf32, #tpu.memory_space<smem>>
    %c6_406 = arith.constant 6 : index
    %c0_407 = arith.constant 0 : index
    %617 = vector.load %arg6[%c6_406, %c0_407] : memref<22x16xf32, #tpu.memory_space<vmem>>, vector<16x16xf32>
    %618 = vector.broadcast %616 : f32 to vector<16x16xf32>
    %619 = arith.mulf %618, %617 : vector<16x16xf32>
    %620 = arith.addf %615, %619 : vector<16x16xf32>
    %c1_408 = arith.constant 1 : index
    %c5_409 = arith.constant 5 : index
    %c130_410 = arith.constant 130 : index
    %621 = vector.load %arg5[%c1_408, %c5_409, %c130_410] : memref<2x27x147xf32, #tpu.memory_space<vmem>>, vector<1x22x16xf32>
    %622 = vector.shape_cast %621 : vector<1x22x16xf32> to vector<22x16xf32>
    %c0_411 = arith.constant 0 : index
    %c0_412 = arith.constant 0 : index
    %623 = vector.load %arg6[%c0_411, %c0_412] : memref<22x16xf32, #tpu.memory_space<vmem>>, vector<22x16xf32>
    tpu.vector_store %arg6[%c0_411, %c0_412], %622 {strides = array<i32>} : memref<22x16xf32, #tpu.memory_space<vmem>>, vector<22x16xf32>,
    %c54 = arith.constant 54 : index
    %624 = memref.load %arg1[%c54] : memref<98xf32, #tpu.memory_space<smem>>
    %c0_413 = arith.constant 0 : index
    %c0_414 = arith.constant 0 : index
    %625 = vector.load %arg6[%c0_413, %c0_414] : memref<22x16xf32, #tpu.memory_space<vmem>>, vector<16x16xf32>
    %626 = vector.broadcast %624 : f32 to vector<16x16xf32>
    %627 = arith.mulf %626, %625 : vector<16x16xf32>
    %628 = arith.addf %620, %627 : vector<16x16xf32>
    %c61 = arith.constant 61 : index
    %629 = memref.load %arg1[%c61] : memref<98xf32, #tpu.memory_space<smem>>
    %c1_415 = arith.constant 1 : index
    %c0_416 = arith.constant 0 : index
    %630 = vector.load %arg6[%c1_415, %c0_416] : memref<22x16xf32, #tpu.memory_space<vmem>>, vector<16x16xf32>
    %631 = vector.broadcast %629 : f32 to vector<16x16xf32>
    %632 = arith.mulf %631, %630 : vector<16x16xf32>
    %633 = arith.addf %628, %632 : vector<16x16xf32>
    %c68 = arith.constant 68 : index
    %634 = memref.load %arg1[%c68] : memref<98xf32, #tpu.memory_space<smem>>
    %c2_417 = arith.constant 2 : index
    %c0_418 = arith.constant 0 : index
    %635 = vector.load %arg6[%c2_417, %c0_418] : memref<22x16xf32, #tpu.memory_space<vmem>>, vector<16x16xf32>
    %636 = vector.broadcast %634 : f32 to vector<16x16xf32>
    %637 = arith.mulf %636, %635 : vector<16x16xf32>
    %638 = arith.addf %633, %637 : vector<16x16xf32>
    %c75 = arith.constant 75 : index
    %639 = memref.load %arg1[%c75] : memref<98xf32, #tpu.memory_space<smem>>
    %c3_419 = arith.constant 3 : index
    %c0_420 = arith.constant 0 : index
    %640 = vector.load %arg6[%c3_419, %c0_420] : memref<22x16xf32, #tpu.memory_space<vmem>>, vector<16x16xf32>
    %641 = vector.broadcast %639 : f32 to vector<16x16xf32>
    %642 = arith.mulf %641, %640 : vector<16x16xf32>
    %643 = arith.addf %638, %642 : vector<16x16xf32>
    %c82 = arith.constant 82 : index
    %644 = memref.load %arg1[%c82] : memref<98xf32, #tpu.memory_space<smem>>
    %c4_421 = arith.constant 4 : index
    %c0_422 = arith.constant 0 : index
    %645 = vector.load %arg6[%c4_421, %c0_422] : memref<22x16xf32, #tpu.memory_space<vmem>>, vector<16x16xf32>
    %646 = vector.broadcast %644 : f32 to vector<16x16xf32>
    %647 = arith.mulf %646, %645 : vector<16x16xf32>
    %648 = arith.addf %643, %647 : vector<16x16xf32>
    %c89 = arith.constant 89 : index
    %649 = memref.load %arg1[%c89] : memref<98xf32, #tpu.memory_space<smem>>
    %c5_423 = arith.constant 5 : index
    %c0_424 = arith.constant 0 : index
    %650 = vector.load %arg6[%c5_423, %c0_424] : memref<22x16xf32, #tpu.memory_space<vmem>>, vector<16x16xf32>
    %651 = vector.broadcast %649 : f32 to vector<16x16xf32>
    %652 = arith.mulf %651, %650 : vector<16x16xf32>
    %653 = arith.addf %648, %652 : vector<16x16xf32>
    %c96_425 = arith.constant 96 : index
    %654 = memref.load %arg1[%c96_425] : memref<98xf32, #tpu.memory_space<smem>>
    %c6_426 = arith.constant 6 : index
    %c0_427 = arith.constant 0 : index
    %655 = vector.load %arg6[%c6_426, %c0_427] : memref<22x16xf32, #tpu.memory_space<vmem>>, vector<16x16xf32>
    %656 = vector.broadcast %654 : f32 to vector<16x16xf32>
    %657 = arith.mulf %656, %655 : vector<16x16xf32>
    %658 = arith.addf %653, %657 : vector<16x16xf32>
    %c1_428 = arith.constant 1 : index
    %c5_429 = arith.constant 5 : index
    %c131_430 = arith.constant 131 : index
    %659 = vector.load %arg5[%c1_428, %c5_429, %c131_430] : memref<2x27x147xf32, #tpu.memory_space<vmem>>, vector<1x22x16xf32>
    %660 = vector.shape_cast %659 : vector<1x22x16xf32> to vector<22x16xf32>
    %c0_431 = arith.constant 0 : index
    %c0_432 = arith.constant 0 : index
    %661 = vector.load %arg6[%c0_431, %c0_432] : memref<22x16xf32, #tpu.memory_space<vmem>>, vector<22x16xf32>
    tpu.vector_store %arg6[%c0_431, %c0_432], %660 {strides = array<i32>} : memref<22x16xf32, #tpu.memory_space<vmem>>, vector<22x16xf32>,
    %c55 = arith.constant 55 : index
    %662 = memref.load %arg1[%c55] : memref<98xf32, #tpu.memory_space<smem>>
    %c0_433 = arith.constant 0 : index
    %c0_434 = arith.constant 0 : index
    %663 = vector.load %arg6[%c0_433, %c0_434] : memref<22x16xf32, #tpu.memory_space<vmem>>, vector<16x16xf32>
    %664 = vector.broadcast %662 : f32 to vector<16x16xf32>
    %665 = arith.mulf %664, %663 : vector<16x16xf32>
    %666 = arith.addf %658, %665 : vector<16x16xf32>
    %c62 = arith.constant 62 : index
    %667 = memref.load %arg1[%c62] : memref<98xf32, #tpu.memory_space<smem>>
    %c1_435 = arith.constant 1 : index
    %c0_436 = arith.constant 0 : index
    %668 = vector.load %arg6[%c1_435, %c0_436] : memref<22x16xf32, #tpu.memory_space<vmem>>, vector<16x16xf32>
    %669 = vector.broadcast %667 : f32 to vector<16x16xf32>
    %670 = arith.mulf %669, %668 : vector<16x16xf32>
    %671 = arith.addf %666, %670 : vector<16x16xf32>
    %c69 = arith.constant 69 : index
    %672 = memref.load %arg1[%c69] : memref<98xf32, #tpu.memory_space<smem>>
    %c2_437 = arith.constant 2 : index
    %c0_438 = arith.constant 0 : index
    %673 = vector.load %arg6[%c2_437, %c0_438] : memref<22x16xf32, #tpu.memory_space<vmem>>, vector<16x16xf32>
    %674 = vector.broadcast %672 : f32 to vector<16x16xf32>
    %675 = arith.mulf %674, %673 : vector<16x16xf32>
    %676 = arith.addf %671, %675 : vector<16x16xf32>
    %c76 = arith.constant 76 : index
    %677 = memref.load %arg1[%c76] : memref<98xf32, #tpu.memory_space<smem>>
    %c3_439 = arith.constant 3 : index
    %c0_440 = arith.constant 0 : index
    %678 = vector.load %arg6[%c3_439, %c0_440] : memref<22x16xf32, #tpu.memory_space<vmem>>, vector<16x16xf32>
    %679 = vector.broadcast %677 : f32 to vector<16x16xf32>
    %680 = arith.mulf %679, %678 : vector<16x16xf32>
    %681 = arith.addf %676, %680 : vector<16x16xf32>
    %c83 = arith.constant 83 : index
    %682 = memref.load %arg1[%c83] : memref<98xf32, #tpu.memory_space<smem>>
    %c4_441 = arith.constant 4 : index
    %c0_442 = arith.constant 0 : index
    %683 = vector.load %arg6[%c4_441, %c0_442] : memref<22x16xf32, #tpu.memory_space<vmem>>, vector<16x16xf32>
    %684 = vector.broadcast %682 : f32 to vector<16x16xf32>
    %685 = arith.mulf %684, %683 : vector<16x16xf32>
    %686 = arith.addf %681, %685 : vector<16x16xf32>
    %c90 = arith.constant 90 : index
    %687 = memref.load %arg1[%c90] : memref<98xf32, #tpu.memory_space<smem>>
    %c5_443 = arith.constant 5 : index
    %c0_444 = arith.constant 0 : index
    %688 = vector.load %arg6[%c5_443, %c0_444] : memref<22x16xf32, #tpu.memory_space<vmem>>, vector<16x16xf32>
    %689 = vector.broadcast %687 : f32 to vector<16x16xf32>
    %690 = arith.mulf %689, %688 : vector<16x16xf32>
    %691 = arith.addf %686, %690 : vector<16x16xf32>
    %c97 = arith.constant 97 : index
    %692 = memref.load %arg1[%c97] : memref<98xf32, #tpu.memory_space<smem>>
    %c6_445 = arith.constant 6 : index
    %c0_446 = arith.constant 0 : index
    %693 = vector.load %arg6[%c6_445, %c0_446] : memref<22x16xf32, #tpu.memory_space<vmem>>, vector<16x16xf32>
    %694 = vector.broadcast %692 : f32 to vector<16x16xf32>
    %695 = arith.mulf %694, %693 : vector<16x16xf32>
    %696 = arith.addf %691, %695 : vector<16x16xf32>
    %c0_447 = arith.constant 0 : index
    %697 = memref.load %arg2[%c0_447] : memref<1xf32, #tpu.memory_space<smem>>
    %698 = vector.broadcast %697 : f32 to vector<16x16xf32>
    %699 = arith.addf %696, %698 : vector<16x16xf32>
    %700 = arith.negf %699 : vector<16x16xf32>
    %701 = math.exp %700 : vector<16x16xf32>
    %cst_448 = arith.constant 1.000000e+00 : f32
    %702 = vector.broadcast %cst_448 : f32 to vector<16x16xf32>
    %703 = arith.addf %702, %701 : vector<16x16xf32>
    %704 = arith.divf %702, %703 : vector<16x16xf32>
    %c0_449 = arith.constant 0 : index
    %c0_450 = arith.constant 0 : index
    %705 = vector.load %arg6[%c0_449, %c0_450] : memref<22x16xf32, #tpu.memory_space<vmem>>, vector<16x16xf32>
    tpu.vector_store %arg6[%c0_449, %c0_450], %704 {strides = array<i32>} : memref<22x16xf32, #tpu.memory_space<vmem>>, vector<16x16xf32>,
    %c0_451 = arith.constant 0 : index
    %c0_452 = arith.constant 0 : index
    %706 = vector.load %arg6[%c0_451, %c0_452] : memref<22x16xf32, #tpu.memory_space<vmem>>, vector<1x16xf32>
    %c0_453 = arith.constant 0 : index
    %c0_454 = arith.constant 0 : index
    %707 = vector.load %arg7[%c0_453, %c0_454] : memref<2x256xf32, #tpu.memory_space<vmem>>, vector<1x16xf32>
    tpu.vector_store %arg7[%c0_453, %c0_454], %706 {strides = array<i32>} : memref<2x256xf32, #tpu.memory_space<vmem>>, vector<1x16xf32>,
    %c1_455 = arith.constant 1 : index
    %c0_456 = arith.constant 0 : index
    %708 = vector.load %arg6[%c1_455, %c0_456] : memref<22x16xf32, #tpu.memory_space<vmem>>, vector<1x16xf32>
    %c0_457 = arith.constant 0 : index
    %c16_458 = arith.constant 16 : index
    %709 = vector.load %arg7[%c0_457, %c16_458] : memref<2x256xf32, #tpu.memory_space<vmem>>, vector<1x16xf32>
    tpu.vector_store %arg7[%c0_457, %c16_458], %708 {strides = array<i32>} : memref<2x256xf32, #tpu.memory_space<vmem>>, vector<1x16xf32>,
    %c2_459 = arith.constant 2 : index
    %c0_460 = arith.constant 0 : index
    %710 = vector.load %arg6[%c2_459, %c0_460] : memref<22x16xf32, #tpu.memory_space<vmem>>, vector<1x16xf32>
    %c0_461 = arith.constant 0 : index
    %c32_462 = arith.constant 32 : index
    %711 = vector.load %arg7[%c0_461, %c32_462] : memref<2x256xf32, #tpu.memory_space<vmem>>, vector<1x16xf32>
    tpu.vector_store %arg7[%c0_461, %c32_462], %710 {strides = array<i32>} : memref<2x256xf32, #tpu.memory_space<vmem>>, vector<1x16xf32>,
    %c3_463 = arith.constant 3 : index
    %c0_464 = arith.constant 0 : index
    %712 = vector.load %arg6[%c3_463, %c0_464] : memref<22x16xf32, #tpu.memory_space<vmem>>, vector<1x16xf32>
    %c0_465 = arith.constant 0 : index
    %c48_466 = arith.constant 48 : index
    %713 = vector.load %arg7[%c0_465, %c48_466] : memref<2x256xf32, #tpu.memory_space<vmem>>, vector<1x16xf32>
    tpu.vector_store %arg7[%c0_465, %c48_466], %712 {strides = array<i32>} : memref<2x256xf32, #tpu.memory_space<vmem>>, vector<1x16xf32>,
    %c4_467 = arith.constant 4 : index
    %c0_468 = arith.constant 0 : index
    %714 = vector.load %arg6[%c4_467, %c0_468] : memref<22x16xf32, #tpu.memory_space<vmem>>, vector<1x16xf32>
    %c0_469 = arith.constant 0 : index
    %c64_470 = arith.constant 64 : index
    %715 = vector.load %arg7[%c0_469, %c64_470] : memref<2x256xf32, #tpu.memory_space<vmem>>, vector<1x16xf32>
    tpu.vector_store %arg7[%c0_469, %c64_470], %714 {strides = array<i32>} : memref<2x256xf32, #tpu.memory_space<vmem>>, vector<1x16xf32>,
    %c5_471 = arith.constant 5 : index
    %c0_472 = arith.constant 0 : index
    %716 = vector.load %arg6[%c5_471, %c0_472] : memref<22x16xf32, #tpu.memory_space<vmem>>, vector<1x16xf32>
    %c0_473 = arith.constant 0 : index
    %c80_474 = arith.constant 80 : index
    %717 = vector.load %arg7[%c0_473, %c80_474] : memref<2x256xf32, #tpu.memory_space<vmem>>, vector<1x16xf32>
    tpu.vector_store %arg7[%c0_473, %c80_474], %716 {strides = array<i32>} : memref<2x256xf32, #tpu.memory_space<vmem>>, vector<1x16xf32>,
    %c6_475 = arith.constant 6 : index
    %c0_476 = arith.constant 0 : index
    %718 = vector.load %arg6[%c6_475, %c0_476] : memref<22x16xf32, #tpu.memory_space<vmem>>, vector<1x16xf32>
    %c0_477 = arith.constant 0 : index
    %c96_478 = arith.constant 96 : index
    %719 = vector.load %arg7[%c0_477, %c96_478] : memref<2x256xf32, #tpu.memory_space<vmem>>, vector<1x16xf32>
    tpu.vector_store %arg7[%c0_477, %c96_478], %718 {strides = array<i32>} : memref<2x256xf32, #tpu.memory_space<vmem>>, vector<1x16xf32>,
    %c7_479 = arith.constant 7 : index
    %c0_480 = arith.constant 0 : index
    %720 = vector.load %arg6[%c7_479, %c0_480] : memref<22x16xf32, #tpu.memory_space<vmem>>, vector<1x16xf32>
    %c0_481 = arith.constant 0 : index
    %c112_482 = arith.constant 112 : index
    %721 = vector.load %arg7[%c0_481, %c112_482] : memref<2x256xf32, #tpu.memory_space<vmem>>, vector<1x16xf32>
    tpu.vector_store %arg7[%c0_481, %c112_482], %720 {strides = array<i32>} : memref<2x256xf32, #tpu.memory_space<vmem>>, vector<1x16xf32>,
    %c8_483 = arith.constant 8 : index
    %c0_484 = arith.constant 0 : index
    %722 = vector.load %arg6[%c8_483, %c0_484] : memref<22x16xf32, #tpu.memory_space<vmem>>, vector<1x16xf32>
    %c0_485 = arith.constant 0 : index
    %c128_486 = arith.constant 128 : index
    %723 = vector.load %arg7[%c0_485, %c128_486] : memref<2x256xf32, #tpu.memory_space<vmem>>, vector<1x16xf32>
    tpu.vector_store %arg7[%c0_485, %c128_486], %722 {strides = array<i32>} : memref<2x256xf32, #tpu.memory_space<vmem>>, vector<1x16xf32>,
    %c9_487 = arith.constant 9 : index
    %c0_488 = arith.constant 0 : index
    %724 = vector.load %arg6[%c9_487, %c0_488] : memref<22x16xf32, #tpu.memory_space<vmem>>, vector<1x16xf32>
    %c0_489 = arith.constant 0 : index
    %c144_490 = arith.constant 144 : index
    %725 = vector.load %arg7[%c0_489, %c144_490] : memref<2x256xf32, #tpu.memory_space<vmem>>, vector<1x16xf32>
    tpu.vector_store %arg7[%c0_489, %c144_490], %724 {strides = array<i32>} : memref<2x256xf32, #tpu.memory_space<vmem>>, vector<1x16xf32>,
    %c10_491 = arith.constant 10 : index
    %c0_492 = arith.constant 0 : index
    %726 = vector.load %arg6[%c10_491, %c0_492] : memref<22x16xf32, #tpu.memory_space<vmem>>, vector<1x16xf32>
    %c0_493 = arith.constant 0 : index
    %c160_494 = arith.constant 160 : index
    %727 = vector.load %arg7[%c0_493, %c160_494] : memref<2x256xf32, #tpu.memory_space<vmem>>, vector<1x16xf32>
    tpu.vector_store %arg7[%c0_493, %c160_494], %726 {strides = array<i32>} : memref<2x256xf32, #tpu.memory_space<vmem>>, vector<1x16xf32>,
    %c11_495 = arith.constant 11 : index
    %c0_496 = arith.constant 0 : index
    %728 = vector.load %arg6[%c11_495, %c0_496] : memref<22x16xf32, #tpu.memory_space<vmem>>, vector<1x16xf32>
    %c0_497 = arith.constant 0 : index
    %c176_498 = arith.constant 176 : index
    %729 = vector.load %arg7[%c0_497, %c176_498] : memref<2x256xf32, #tpu.memory_space<vmem>>, vector<1x16xf32>
    tpu.vector_store %arg7[%c0_497, %c176_498], %728 {strides = array<i32>} : memref<2x256xf32, #tpu.memory_space<vmem>>, vector<1x16xf32>,
    %c12_499 = arith.constant 12 : index
    %c0_500 = arith.constant 0 : index
    %730 = vector.load %arg6[%c12_499, %c0_500] : memref<22x16xf32, #tpu.memory_space<vmem>>, vector<1x16xf32>
    %c0_501 = arith.constant 0 : index
    %c192_502 = arith.constant 192 : index
    %731 = vector.load %arg7[%c0_501, %c192_502] : memref<2x256xf32, #tpu.memory_space<vmem>>, vector<1x16xf32>
    tpu.vector_store %arg7[%c0_501, %c192_502], %730 {strides = array<i32>} : memref<2x256xf32, #tpu.memory_space<vmem>>, vector<1x16xf32>,
    %c13_503 = arith.constant 13 : index
    %c0_504 = arith.constant 0 : index
    %732 = vector.load %arg6[%c13_503, %c0_504] : memref<22x16xf32, #tpu.memory_space<vmem>>, vector<1x16xf32>
    %c0_505 = arith.constant 0 : index
    %c208_506 = arith.constant 208 : index
    %733 = vector.load %arg7[%c0_505, %c208_506] : memref<2x256xf32, #tpu.memory_space<vmem>>, vector<1x16xf32>
    tpu.vector_store %arg7[%c0_505, %c208_506], %732 {strides = array<i32>} : memref<2x256xf32, #tpu.memory_space<vmem>>, vector<1x16xf32>,
    %c14_507 = arith.constant 14 : index
    %c0_508 = arith.constant 0 : index
    %734 = vector.load %arg6[%c14_507, %c0_508] : memref<22x16xf32, #tpu.memory_space<vmem>>, vector<1x16xf32>
    %c0_509 = arith.constant 0 : index
    %c224_510 = arith.constant 224 : index
    %735 = vector.load %arg7[%c0_509, %c224_510] : memref<2x256xf32, #tpu.memory_space<vmem>>, vector<1x16xf32>
    tpu.vector_store %arg7[%c0_509, %c224_510], %734 {strides = array<i32>} : memref<2x256xf32, #tpu.memory_space<vmem>>, vector<1x16xf32>,
    %c15_511 = arith.constant 15 : index
    %c0_512 = arith.constant 0 : index
    %736 = vector.load %arg6[%c15_511, %c0_512] : memref<22x16xf32, #tpu.memory_space<vmem>>, vector<1x16xf32>
    %c0_513 = arith.constant 0 : index
    %c240_514 = arith.constant 240 : index
    %737 = vector.load %arg7[%c0_513, %c240_514] : memref<2x256xf32, #tpu.memory_space<vmem>>, vector<1x16xf32>
    tpu.vector_store %arg7[%c0_513, %c240_514], %736 {strides = array<i32>} : memref<2x256xf32, #tpu.memory_space<vmem>>, vector<1x16xf32>,
    %c0_515 = arith.constant 0 : index
    %c0_516 = arith.constant 0 : index
    %738 = vector.load %arg7[%c0_515, %c0_516] : memref<2x256xf32, #tpu.memory_space<vmem>>, vector<1x256xf32>
    %c0_517 = arith.constant 0 : index
    %c0_518 = arith.constant 0 : index
    %c0_519 = arith.constant 0 : index
    %739 = vector.load %arg3[%c0_517, %c0_518, %c0_519] : memref<1x4x256xf32, #tpu.memory_space<vmem>>, vector<1x4x256xf32>
    %740 = vector.shape_cast %739 : vector<1x4x256xf32> to vector<4x256xf32>
    %741 = vector.broadcast %738 : vector<1x256xf32> to vector<4x256xf32>
    %742 = arith.mulf %740, %741 : vector<4x256xf32>
    %c0_520 = arith.constant 0 : index
    %c0_521 = arith.constant 0 : index
    %c0_522 = arith.constant 0 : index
    %743 = vector.load %arg4[%c0_520, %c0_521, %c0_522] : memref<1x4x256xf32, #tpu.memory_space<vmem>>, vector<1x4x256xf32>
    %744 = vector.shape_cast %743 : vector<1x4x256xf32> to vector<4x256xf32>
    %745 = vector.shape_cast %742 : vector<4x256xf32> to vector<1x4x256xf32>
    tpu.vector_store %arg4[%c0_520, %c0_521, %c0_522], %745 {strides = array<i32>} : memref<1x4x256xf32, #tpu.memory_space<vmem>>, vector<1x4x256xf32>,
    return
  }
  func.func @transform_0(%arg0: i32) -> i32 {
    %c0_i32 = arith.constant 0 : i32
    %c0_i32_0 = arith.constant 0 : i32
    return %c0_i32 : i32
  }
  func.func @transform_1(%arg0: i32) -> i32 {
    %c0_i32 = arith.constant 0 : i32
    %c0_i32_0 = arith.constant 0 : i32
    return %c0_i32 : i32
  }
  func.func @transform_2(%arg0: i32) -> (i32, i32, i32) {
    %c0_i32 = arith.constant 0 : i32
    %c0_i32_0 = arith.constant 0 : i32
    %c0_i32_1 = arith.constant 0 : i32
    return %arg0, %c0_i32, %c0_i32_0 : i32, i32, i32
  }
  func.func @transform_3(%arg0: i32) -> (i32, i32, i32) {
    %c0_i32 = arith.constant 0 : i32
    %c0_i32_0 = arith.constant 0 : i32
    %c0_i32_1 = arith.constant 0 : i32
    return %arg0, %c0_i32, %c0_i32_0 : i32, i32, i32
  }
}

</mosaic_0001>

<bundles_post_ra>
// kernel: tpu_custom_call.1
= control target key start
LH: loop header
LB: loop body
LE: loop exit
PB: predicated region body
PF: predicated region fallthrough
CT: control target
= control target key end

     0   :  { %s3201_s0 = inlined_call_operand.vmem [shape: f32[98], index: 0, kind: input, shape index: {}]   ;;  %s3202_s1 = inlined_call_operand.<no memory space> [shape: f32[1], index: 1, kind: input, shape index: {}]   ;;  %s3203_s2 = inlined_call_operand.hbm [shape: f32[2,4,256], index: 2, kind: input, shape index: {}]   ;;  %s3204_s3 = inlined_call_operand.hbm [shape: f32[2,4,256], index: 3, kind: output, shape index: {}]  }
   0x1   :  { %8 = sst [smem:[#allocation5]] %s3202_s1 }
   0x2   :  { %9 = vsyncpa [#allocation9], 0 }
   0x3   :  { %10 = vsyncpa [#allocation7], 0 }
   0x4   :  { %12 = vsyncpa [#allocation7 + $0x1], 0 }
   0x5   :  { %13 = vsyncpa [#allocation8], 0 }
   0x6   :  { %15 = vsyncpa [#allocation8 + $0x1], 0  ;;  %s2334_s14 = smov 0   ;;  %s2336_s15 = smov 0  }
   0x7   :  { %s2338_s16 = smov 0   ;;  %s2340_s17 = smov 0  }
   0x8 LB: > { %s2355_s1 = sadd.s32 4294967295, %s2294_s17   ;;  %s1955_s18 = sadd.s32 4294967294, %s2294_s17   ;;  %s2294_s17 = sphi %s2340_s17, %s3227_s17   ;;  %s2290_s16 = sphi %s2338_s16, %s3226_s16   ;;  %s2286_s15 = sphi %s2336_s15, %s3225_s15   ;;  %s2282_s14 = sphi %s2334_s14, %s3224_s14  }
   0x9   : > { %p83_p0 = scmp.ne.s32.totalorder %s2286_s15, %s2282_s14  ;;  %p84_p1 = scmp.eq.s32.totalorder %s2355_s1, 0 }
   0xa   : > { %p107_p2 = scmp.eq.s32.totalorder %s2355_s1, 1  ;;  %p113_p3 = scmp.eq.s32.totalorder %s1955_s18, 1 }
   0xb   : > { %p2364_p4 = por %p84_p1, %p83_p0  ;;  %p1956_p5 = scmp.ge.s32.totalorder %s2294_s17, 1 }
   0xc   : > { %p2369_p6 = por %p113_p3, %p83_p0  ;;  %p120_p7 = scmp.lt.s32.totalorder %s2294_s17, 3 }
   0xd   : > { %s132_s23 = sshll.u32 %s3201_s0, 4  ;;  %s2385_s25 = sadd.s32 1, %s2294_s17   ;;  %s133_s23 = int_to_ptr.vmem [resolvable:$true] %s132_s23 }
   0xe   : > { %p2377_p8 = pnand %p1956_p5, %p120_p7  ;;  %s67_s26 = ssub.s32 %s2294_s17, %s2385_s25 }
   0xf   : > { %p68_p12 = scmp.eq.s32.totalorder %s67_s26, 0  ;;  %s70_s27 = sadd.s32 1, %s2290_s16 }
  0x10   : > { %p2080_p10 = pneg %p2377_p8  ;;  %p77_p13 = scmp.ne.s32.totalorder %s2290_s16, %s2286_s15 }
  0x11   : > { %s2296_s28 = smov [#allocation6]   ;;  %p78_p0 = scmp.eq.s32.totalorder %s2294_s17, 0 }
  0x12   : > { %p2081_p11 = pnand %p2080_p10, %p84_p1  ;;  %p2400_p3 = por %p107_p2, %p77_p13 }
  0x13   : > { %s2395_s29 = scalar_select %p68_p12, %s2290_s16, %s70_s27  }
  0x14   : > { %2083 = dma.vmem_to_smem (!%p2081_p11), %s133_s23, 16, %s2296_s28, [#allocation9]  }
  0x15   : > { %s146_s4 = sand.u32 1, %s2290_s16   ;;  %p79_p5 = por %p78_p0, %p77_p13 }
  0x16   : > { %p2093_p7 = scmp.lt.s32.totalorder %s2294_s17, 2  ;;  %s1959_s5 = sshll.u32 %s146_s4, 3 }
  0x17   : > { %s2070_s6 = sshll.u32 %s2294_s17, 3  ;;  %s150_s11 = scalar_lea.vmem [#allocation10], %s1959_s5 }
  0x18   : > { %s155_s9 = scalar_lea.hbm %s3203_s2, %s2070_s6  ;;  %s159_s12 = sshll.u32 %s150_s11, 4  ;;  %s160_s12 = int_to_ptr.vmem [resolvable:$true] %s159_s12 }
  0x19   : > { %s157_s10 = sshll.u32 %s155_s9, 4  ;;  %p2410_p10 = pnand %p2093_p7, %p79_p5  ;;  %s158_s10 = int_to_ptr.hbm [resolvable:$true] %s157_s10 }
  0x1a   : > { %s147_s18 = scalar_lea.sflag [#allocation7], %s146_s4  ;;  %s2194_s21 = sshra.s32 %s158_s10, 4  ;;  %s2195_s21 = int_to_ptr.hbm [resolvable:$true] %s2194_s21 }
  0x1b   : > { %s2196_s22 = scalar_lea.hbm %s2195_s21, 8  ;;  %p2198_p11 = pneg %p2410_p10 }
  0x1c   : > { %p2197_p2 = scmp.ne.s32.totalorder %s2195_s21, %s2196_s22  ;;  %s2201_s27 = scalar_lea.hbm %s3203_s2, 16 }
  0x1d   : > { %p2202_p0 = scmp.lt.s32.totalorder %s2195_s21, %s3203_s2  ;;  %p2203_p5 = scmp.lt.s32.totalorder %s2201_s27, %s2196_s22 }
  0x1e   : > { %p2199_p12 = pnand %p2198_p11, %p2197_p2 }
  0x1f   : > { %p2204_p7 = por %p2203_p5, %p2202_p0 }
  0x20   : > { %p2200_p13 = pneg %p2199_p12 }
  0x22   : > { %p2205_p9 = pnand %p2204_p7, %p2200_p13 }
  0x24   : > { %2208 = shalt.err (!%p2205_p9)
}
  0x25   : > { %2087 = dma.hbm_to_vmem [thread:$0]  (!%p2410_p10), %s158_s10, 128, %s160_s12, %s147_s18  }
  0x26   : > { %168 = sbr.rel (%p2377_p8) target bundleno = 842 (0x34a), region = 32 }
  0x2b   : > { %2269 = dma.done.wait (%p84_p1), [#allocation9], 16  }
  0x2c   : > { %2271 = vsyncadd (%p84_p1), [#allocation9], 4294967280  ;;  %s2431_s4 = sand.u32 1, %s2286_s15  }
  0x2d   : > { %s3205_s6 = sshll.u32 %s2431_s4, 3  ;;  %s176_s7 = scalar_lea.sflag [#allocation7], %s2431_s4 }
  0x2e   : > { %s2437_s8 = scalar_lea.vmem [#allocation10], %s3205_s6 }
  0x2f   : > { %2273 = dma.done.wait (%p2364_p4), %s176_s7, 128  }
  0x30   : > { %2275 = vsyncadd (%p2364_p4), %s176_s7, 4294967168 }
  0x31   : > { %185 = sfence }
  0x32   : > { %v204_v0 = vld [vmem:[%s2437_s8] sm:$0xff]  ;;  %vm211_vm0 = vcmask 1043456   ;;  %v251_v13 = vlaneseq  ;;  %vm265_vm1 = vcmask 1048557   ;;  %v2297_v16 = vmov 0.0   ;;  %s2298_s19 = smov 3   ;;  %s2299_s24 = smov 80  }
  0x33   : > { %206 = vst [vmem:[#allocation1] ss:$2 sm:$0xff] %v204_v0  ;;  %vm248_vm2 = vcmask 1040384   ;;  %s3206_s9 = smov 112   ;;  %s2301_s10 = smov 48   ;;  %vm267_vm4 = vcmask 154629  }
  0x34   : > { %266 = vst.msk [vmem:[#allocation2] sm:$0xe0] %vm265_vm1, %v2297_v16  ;;  %vm2448_vm3 = vcmp.lt.s32.totalorder %v251_v13, 256  ;;  %s3210_s11 = smov 64   ;;  %s3208_s12 = smov 96   ;;  %vm269_vm5 = vcmask 1043432  }
  0x35   : > { %280 = vst.msk [vmem:[#allocation2 + $0x40] sm:$0xe0] %vm265_vm1, %v2297_v16  ;;  %vm273_vm6 = vcmask 1048552   ;;  %s2304_s13 = smov 32   ;;  %s2305_s18 = smov 16   ;;  %vm271_vm7 = vcmask 149504  }
  0x36   : > { %268 = vst.msk [vmem:[#allocation2 + $0x8] sm:$0xe0] %vm267_vm4, %v2297_v16  ;;  %s2306_s21 = smov 2   ;;  %vm276_vm8 = vcmask 154752   ;;  %vm289_vm9 = vcmask 122880   ;;  %s2307_s22 = smov 1  }
  0x37   : > { %281 = vst.msk [vmem:[#allocation2 + $0x48] sm:$0xe0] %vm267_vm4, %v2297_v16  ;;  %vm525_vm10 = vcmask 23552   ;;  %vm534_vm11 = vcmask 130053   ;;  %vm539_vm12 = vcmask 124928   ;;  %s2308_s23 = smov 127  }
  0x38   : > { %270 = vst.msk [vmem:[#allocation2 + $0x30] sm:$0x7] %vm269_vm5, %v2297_v16  ;;  %s2309_s26 = smov 126   ;;  %vm629_vm13 = vcmask 15360   ;;  %vm730_vm14 = vcmask 7168   ;;  %s2310_s27 = smov 125  }
  0x39   : > { %282 = vst.msk [vmem:[#allocation2 + $0x70] sm:$0x7] %vm269_vm5, %v2297_v16  ;;  %vm536_vm15 = vcmask 130048   ;;  %s2618_s28 = sld [smem:[#allocation6]] }
  0x3a   : > { %v207_v1 = vld.sshfl [vmem:[#allocation1] sm:$0xff pattern:$0x75316420]  ;;  %v208_v2 = vld.sshfl [vmem:[#allocation1 + $0x8] sm:$0xff pattern:$0x75316420] }
  0x3b   : > { %v212_v3 = vsel %vm211_vm0, %v207_v1, -inf  ;;  %v219_v4 = vsel %vm211_vm0, %v208_v2, -inf  ;;  %226 = vst [vmem:[#allocation1] ss:$2 sm:$0xff] %v204_v0  ;;  %v493_v22 = vld [vmem:[#allocation2] sm:$0xe0] }
  0x3c   : > { %v213_v5 = vrot.slane %v212_v3, 4  ;;  %v220_v6 = vrot.slane %v219_v4, 4  ;;  %509 = vrot.lane.b32.xlu2 %v493_v22, %s2298_s19  ;;  %274 = vst.msk [vmem:[#allocation2 + $0x10] sm:$0xff] %vm273_vm6, %v2297_v16  ;;  %v597_v41 = vld [vmem:[#allocation2] sm:$0xe0]  ;;  %s2620_s5 = sld [smem:[#allocation6 + $0x7]] }
  0x3d   : > { %275 = vst.msk [vmem:[#allocation2 + $0x20] sm:$0xff] %vm273_vm6, %v2297_v16  ;;  %v494_v39 = vld [vmem:[#allocation2 + $0x8] sm:$0xe0]  ;;  %v698_v61 = vld [vmem:[#allocation2] sm:$0xe0]  ;;  %s2632_s7 = sld [smem:[#allocation6 + $0xe]] }
  0x3e   : > { %v214_v7 = vmax.f32 %v212_v3, %v213_v5  ;;  %v221_v8 = vmax.f32 %v219_v4, %v220_v6  ;;  %284 = vst.msk [vmem:[#allocation2 + $0x50] sm:$0xff] %vm273_vm6, %v2297_v16  ;;  %v598_v40 = vld [vmem:[#allocation2 + $0x8] sm:$0xe0]  ;;  %s2638_s6 = sld [smem:[#allocation6 + $0x15]] }
  0x3f   : > { %285 = vst.msk [vmem:[#allocation2 + $0x60] sm:$0xff] %vm273_vm6, %v2297_v16  ;;  %v499_v37 = vld [vmem:[#allocation2 + $0x30] sm:$0x7]  ;;  %v699_v60 = vld [vmem:[#allocation2 + $0x8] sm:$0xe0] }
  0x40   : > { %v215_v9 = vrot.slane %v214_v7, 2  ;;  %v222_v10 = vrot.slane %v221_v8, 2  ;;  %272 = vst.msk [vmem:[#allocation2 + $0x38] sm:$0x7] %vm271_vm7, %v2297_v16  ;;  %v603_v43 = vld [vmem:[#allocation2 + $0x30] sm:$0x7] }
  0x41   : > { %283 = vst.msk [vmem:[#allocation2 + $0x78] sm:$0x7] %vm271_vm7, %v2297_v16  ;;  %v704_v6 = vld [vmem:[#allocation2 + $0x30] sm:$0x7] }
  0x42   : > { %v216_v11 = vmax.f32 %v214_v7, %v215_v9  ;;  %v223_v12 = vmax.f32 %v221_v8, %v222_v10  ;;  %277 = vst.msk [vmem:[#allocation2 + $0x18] sm:$0xff] %vm276_vm8, %v2297_v16  ;;  %v228_v45 = vld.sshfl [vmem:[#allocation1 + $0x8] sm:$0xff pattern:$0x75316420] }
  0x43   : > { %v495_v38 = vld [vmem:[#allocation2 + $0x10] sm:$0xff]  ;;  %278 = vst.msk [vmem:[#allocation2 + $0x28] sm:$0xff] %vm276_vm8, %v2297_v16  ;;  %v238_v46 = vsel %vm211_vm0, %v228_v45, 0.0  ;;  %v227_v47 = vld.sshfl [vmem:[#allocation1] sm:$0xff pattern:$0x75316420] }
  0x44   : > { %v217_v14 = vrot.slane %v216_v11, 1  ;;  %v224_v15 = vrot.slane %v223_v12, 1  ;;  %v497_v42 = vld [vmem:[#allocation2 + $0x20] sm:$0xff]  ;;  %286 = vst.msk [vmem:[#allocation2 + $0x58] sm:$0xff] %vm276_vm8, %v2297_v16  ;;  %v239_v48 = vrot.slane %v238_v46, 4  ;;  %v231_v49 = vsel %vm211_vm0, %v227_v47, 0.0 }
  0x45   : > { %287 = vst.msk [vmem:[#allocation2 + $0x68] sm:$0xff] %vm276_vm8, %v2297_v16  ;;  %v232_v50 = vrot.slane %v231_v49, 4 }
  0x46   : > { %v218_v17 = vmax.f32 %v216_v11, %v217_v14  ;;  %v225_v18 = vmax.f32 %v223_v12, %v224_v15  ;;  %v240_v51 = vadd.f32 %v239_v48, %v238_v46 }
  0x47   : > { %v500_v44 = vld [vmem:[#allocation2 + $0x38] sm:$0x7]  ;;  %v233_v52 = vadd.f32 %v232_v50, %v231_v49 }
  0x48   : > { %v247_v19 = vrot.slane %v225_v18, 7  ;;  %v241_v53 = vrot.slane %v240_v51, 2  ;;  %v604_v59 = vld [vmem:[#allocation2 + $0x38] sm:$0x7] }
  0x49   : > { %v234_v54 = vrot.slane %v233_v52, 2  ;;  %v705_v10 = vld [vmem:[#allocation2 + $0x38] sm:$0x7] }
  0x4a   : > { %v249_v21 = vsel %vm248_vm2, %v218_v17, %v247_v19  ;;  %v242_v55 = vadd.f32 %v241_v53, %v240_v51  ;;  %v943_v51 = vld [vmem:[#allocation2 + $0x8] sm:$0xe0] }
  0x4b   : > { %255 = vst.msk [vmem:[#allocation4] ss:$2 sm:$0x3] %vm2448_vm3, %v249_v21  ;;  %v235_v57 = vadd.f32 %v234_v54, %v233_v52 }
  0x4c   : > { %v243_v58 = vrot.slane %v242_v55, 1 }
  0x4d   : > { %v236_v62 = vrot.slane %v235_v57, 1 }
  0x4e   : > { %v244_v63 = vadd.f32 %v243_v58, %v242_v55 }
  0x4f   : > { %v237_v1 = vadd.f32 %v236_v62, %v235_v57  ;;  %v863_v57 = vld [vmem:[#allocation2 + $0x8] sm:$0xe0] }
  0x50   : > { %v257_v2 = vmul.f32 0.25, %v244_v63  ;;  %v1023_v62 = vld [vmem:[#allocation2 + $0x8] sm:$0xe0]  ;;  %v946_v63 = vld [vmem:[#allocation2 + $0x38] sm:$0x7] }
  0x51   : > { %v256_v3 = vmul.f32 0.25, %v237_v1 }
  0x52   : > { %v2143_v23 = vld [vmem:[#allocation4] ss:$0 sm:$0xff]  ;;  %v2147_v29 = vld [vmem:[#allocation4 + $0x2] ss:$0 sm:$0xff]  ;;  %v260_v4 = vrot.slane %v257_v2, 7 }
  0x53   : > { %v2144_v24 = vld [vmem:[#allocation4] ss:$0 sm:$0xff]  ;;  %308 = vrot.lane.b32.xlu1 %v2143_v23, %s2299_s24  ;;  %v2155_v31 = vld [vmem:[#allocation4 + $0x2] ss:$0 sm:$0xff] }
  0x54   : > { %294 = vrot.lane.b32.xlu0 %v2144_v24, %s3206_s9  ;;  %v2151_v25 = vld [vmem:[#allocation4] ss:$0 sm:$0xff]  ;;  %v2149_v32 = vld [vmem:[#allocation4 + $0x2] ss:$0 sm:$0xff]  ;;  %v261_v5 = vsel %vm248_vm2, %v256_v3, %v260_v4 }
  0x55   : > { %v2145_v26 = vld [vmem:[#allocation4] ss:$0 sm:$0xff]  ;;  %322 = vrot.lane.b32.xlu2 %v2151_v25, %s2301_s10  ;;  %v2150_v33 = vld [vmem:[#allocation4 + $0x2] ss:$0 sm:$0xff] }
  0x56   : > { %v2146_v27 = vld [vmem:[#allocation4] ss:$0 sm:$0xff]  ;;  %v2156_v34 = vld [vmem:[#allocation4 + $0x2] ss:$0 sm:$0xff] }
  0x57   : > { %v2154_v28 = vld [vmem:[#allocation4] ss:$0 sm:$0xff]  ;;  %v2152_v35 = vld [vmem:[#allocation4 + $0x2] ss:$0 sm:$0xff] }
  0x58   : > { %v2148_v30 = vld [vmem:[#allocation4] ss:$0 sm:$0xff]  ;;  %v2153_v36 = vld [vmem:[#allocation4 + $0x2] ss:$0 sm:$0xff] }
  0x59   : > { %v288_v56 = vld [vmem:[#allocation4] sm:$0x1]  ;;  %264 = vst.msk [vmem:[#allocation4 + $0x1] ss:$2 sm:$0x3] %vm2448_vm3, %v261_v5 }
  0x5a   : > { %290 = vst.msk [vmem:[#allocation2 + $0x18] sm:$0x1] %vm289_vm9, %v288_v56  ;;  %v340_v7 = vld [vmem:[#allocation4 + $0x2] sm:$0x1] }
  0x5b   : > { %315 = vrot.lane.b32.xlu1 %v2145_v26, %s3210_s11  ;;  %341 = vst.msk [vmem:[#allocation2 + $0x28] sm:$0x1] %vm289_vm9, %v340_v7  ;;  %v1026_v2 = vld [vmem:[#allocation2 + $0x38] sm:$0x7] }
  0x5c   : > { %301 = vrot.lane.b32.xlu0 %v2146_v27, %s3208_s12 }
  0x5d   : > { %329 = vrot.lane.b32.xlu2 %v2154_v28, %s2304_s13 }
  0x60   : > { %v2157_v9 = vld [vmem:[#allocation4 + $0x1] ss:$0 sm:$0xff]  ;;  %v2161_v17 = vld [vmem:[#allocation4 + $0x3] ss:$0 sm:$0xff] }
  0x61   : > { %v2158_v11 = vld [vmem:[#allocation4 + $0x1] ss:$0 sm:$0xff]  ;;  %v2169_v45 = vld [vmem:[#allocation4 + $0x3] ss:$0 sm:$0xff] }
  0x62   : > { %v2159_v13 = vld [vmem:[#allocation4 + $0x1] ss:$0 sm:$0xff]  ;;  %v2170_v50 = vld [vmem:[#allocation4 + $0x3] ss:$0 sm:$0xff] }
  0x63   : > { %345 = vrot.lane.b32.xlu1 %v2147_v29, %s3206_s9  ;;  %v2160_v16 = vld [vmem:[#allocation4 + $0x1] ss:$0 sm:$0xff] }
  0x64   : > { %336 = vrot.lane.b32.xlu0 %v2148_v30, %s2305_s18  ;;  %v2162_v27 = vld [vmem:[#allocation4 + $0x1] ss:$0 sm:$0xff] }
  0x65   : > { %352 = vrot.lane.b32.xlu2 %v2155_v31, %s3208_s12  ;;  %v2163_v31 = vld [vmem:[#allocation4 + $0x1] ss:$0 sm:$0xff] }
  0x66   : > { %v391_v52 = vld [vmem:[#allocation4 + $0x1] sm:$0x1] }
  0x67   : > { %392 = vst.msk [vmem:[#allocation2 + $0x58] sm:$0x1] %vm289_vm9, %v391_v52 }
  0x6b   : > { %366 = vrot.lane.b32.xlu1 %v2149_v32, %s3210_s11 }
  0x6c   : > { %359 = vrot.lane.b32.xlu0 %v2150_v33, %s2299_s24 }
  0x6d   : > { %373 = vrot.lane.b32.xlu2 %v2156_v34, %s2301_s10 }
  0x73   : > { %387 = vrot.lane.b32.xlu1 %v2152_v35, %s2305_s18 }
  0x74   : > { %380 = vrot.lane.b32.xlu0 %v2153_v36, %s2304_s13  ;;  %v2164_v36 = vld [vmem:[#allocation4 + $0x3] ss:$0 sm:$0xff] }
  0x75   : > { %521 = vrot.lane.b32.xlu2 %v499_v37, %s2298_s19  ;;  %v2165_v37 = vld [vmem:[#allocation4 + $0x1] ss:$0 sm:$0xff] }
  0x7b   : > { %513 = vrot.lane.b32.xlu1 %v495_v38, %s2298_s19 }
  0x7c   : > { %511 = vrot.lane.b32.xlu0 %v494_v39, %s2298_s19 }
  0x7d   : > { %615 = vrot.lane.b32.xlu2 %v598_v40, %s2306_s21 }
  0x83   : > { %613 = vrot.lane.b32.xlu1 %v597_v41, %s2306_s21 }
  0x84   : > { %517 = vrot.lane.b32.xlu0 %v497_v42, %s2298_s19 }
  0x85   : > { %621 = vrot.lane.b32.xlu2 %v497_v42, %s2306_s21 }
  0x8b   : > { %625 = vrot.lane.b32.xlu1 %v603_v43, %s2306_s21  ;;  %v2167_v43 = vld [vmem:[#allocation4 + $0x3] ss:$0 sm:$0xff] }
  0x8c   : > { %523 = vrot.lane.b32.xlu0 %v500_v44, %s2298_s19  ;;  %v2168_v44 = vld [vmem:[#allocation4 + $0x3] ss:$0 sm:$0xff] }
  0x8d   : > { %627 = vrot.lane.b32.xlu2 %v604_v59, %s2306_s21 }
  0x93   : > { %716 = vrot.lane.b32.xlu1 %v699_v60, %s2307_s22 }
  0x94   : > { %617 = vrot.lane.b32.xlu0 %v495_v38, %s2306_s21 }
  0x95   : > { %718 = vrot.lane.b32.xlu2 %v495_v38, %s2307_s22  ;;  %v2166_v38 = vld [vmem:[#allocation4 + $0x3] ss:$0 sm:$0xff] }
  0x96   : > { %v2499_v0 = vpop.permute.xlu2 %509 }
  0x9b   : > { %722 = vrot.lane.b32.xlu1 %v497_v42, %s2307_s22 }
  0x9c   : > { %714 = vrot.lane.b32.xlu0 %v698_v61, %s2307_s22  ;;  %v866_v61 = vld [vmem:[#allocation2 + $0x38] sm:$0x7] }
  0x9d   : > { %396 = vrot.lane.b32.xlu2 %v2157_v9, %s3206_s9 }
  0xa3   : > { %728 = vrot.lane.b32.xlu1 %v705_v10, %s2307_s22 }
  0xa4   : > { %726 = vrot.lane.b32.xlu0 %v704_v6, %s2307_s22  ;;  %v442_v6 = vld [vmem:[#allocation4 + $0x3] sm:$0x1] }
  0xa5   : > { %443 = vst.msk [vmem:[#allocation2 + $0x68] sm:$0x1] %vm289_vm9, %v442_v6 }
  0xab   : > { %410 = vrot.lane.b32.xlu1 %v2160_v16, %s2299_s24 }
  0xac   : > { %403 = vrot.lane.b32.xlu0 %v2158_v11, %s3208_s12 }
  0xaf   : > { %v323_v8 = vpop.permute.xlu2 %322 }
  0xb0   : > { %325 = vst.msk [vmem:[#allocation2 + $0x1d] sm:$0x1] %vm289_vm9, %v323_v8 }
  0xb4   : > { %424 = vrot.lane.b32.xlu0 %v2159_v13, %s2301_s10 }
  0xb7   : > { %v330_v12 = vpop.permute.xlu2 %329 }
  0xb8   : > { %332 = vst.msk [vmem:[#allocation2 + $0x1e] sm:$0x1] %vm289_vm9, %v330_v12 }
  0xbc   : > { %447 = vrot.lane.b32.xlu0 %v2161_v17, %s3206_s9  ;;  %s2641_s9 = sld [smem:[#allocation6 + $0x1c]] }
  0xbf   : > { %v353_v14 = vpop.permute.xlu2 %352 }
  0xc0   : > { %355 = vst.msk [vmem:[#allocation2 + $0x2a] sm:$0x1] %vm289_vm9, %v353_v14 }
  0xc2   : > { %v576_v52 = vstv %s2641_s9  ;;  %s2666_s9 = sld [smem:[#allocation6 + $0x8]] }
  0xc5   : > { %v309_v15 = vpop.permute.xlu1 %308 }
  0xc6   : > { %311 = vst.msk [vmem:[#allocation2 + $0x1b] sm:$0x1] %vm289_vm9, %v309_v15  ;;  %v295_v18 = vpop.permute.xlu0 %294 }
  0xc7   : > { %297 = vst.msk [vmem:[#allocation2 + $0x19] sm:$0x1] %vm289_vm9, %v295_v18  ;;  %v374_v19 = vpop.permute.xlu2 %373  ;;  %v1103_v18 = vld [vmem:[#allocation2 + $0x40] sm:$0xe0] }
  0xc8   : > { %376 = vst.msk [vmem:[#allocation2 + $0x2d] sm:$0x1] %vm289_vm9, %v374_v19  ;;  %v1104_v19 = vld [vmem:[#allocation2 + $0x48] sm:$0xe0] }
  0xcd   : > { %v316_v20 = vpop.permute.xlu1 %315 }
  0xce   : > { %318 = vst.msk [vmem:[#allocation2 + $0x1c] sm:$0x1] %vm289_vm9, %v316_v20  ;;  %v302_v21 = vpop.permute.xlu0 %301 }
  0xcf   : > { %304 = vst.msk [vmem:[#allocation2 + $0x1a] sm:$0x1] %vm289_vm9, %v302_v21  ;;  %v522_v30 = vpop.permute.xlu2 %521 }
  0xd5   : > { %v346_v22 = vpop.permute.xlu1 %345 }
  0xd6   : > { %348 = vst.msk [vmem:[#allocation2 + $0x29] sm:$0x1] %vm289_vm9, %v346_v22  ;;  %v337_v23 = vpop.permute.xlu0 %336  ;;  %v2624_v22 = vld [vmem:[#allocation2 + $0x50] sm:$0xff] }
  0xd7   : > { %339 = vst.msk [vmem:[#allocation2 + $0x1f] sm:$0x1] %vm289_vm9, %v337_v23  ;;  %v2544_v35 = vpop.permute.xlu2 %615  ;;  %v2626_v23 = vld [vmem:[#allocation2 + $0x60] sm:$0xff] }
  0xdd   : > { %v367_v24 = vpop.permute.xlu1 %366 }
  0xde   : > { %v2525_v25 = vld [vmem:[#allocation2 + $0x18] sm:$0xff]  ;;  %369 = vst.msk [vmem:[#allocation2 + $0x2c] sm:$0x1] %vm289_vm9, %v367_v24  ;;  %v360_v26 = vpop.permute.xlu0 %359 }
  0xdf   : > { %362 = vst.msk [vmem:[#allocation2 + $0x2b] sm:$0x1] %vm289_vm9, %v360_v26  ;;  %515 = vrot.lane.b32.xlu2 %v2525_v25, %s2298_s19  ;;  %v2549_v39 = vpop.permute.xlu2 %621 }
  0xe5   : > { %v388_v28 = vpop.permute.xlu1 %387 }
  0xe6   : > { %390 = vst.msk [vmem:[#allocation2 + $0x2f] sm:$0x1] %vm289_vm9, %v388_v28  ;;  %v381_v29 = vpop.permute.xlu0 %380  ;;  %v552_v28 = vstv %s2620_s5  ;;  %s2654_s5 = sld [smem:[#allocation6 + $0x2a]] }
  0xe7   : > { %383 = vst.msk [vmem:[#allocation2 + $0x2e] sm:$0x1] %vm289_vm9, %v381_v29  ;;  %417 = vrot.lane.b32.xlu2 %v2162_v27, %s3210_s11  ;;  %v628_v42 = vpop.permute.xlu2 %627  ;;  %v544_v27 = vstv %s2618_s28  ;;  %s2646_s28 = sld [smem:[#allocation6 + $0x23]] }
  0xed   : > { %v2557_v40 = vpop.permute.xlu1 %513 }
  0xee   : > { %v2534_v32 = vld [vmem:[#allocation2 + $0x28] sm:$0xff]  ;;  %v512_v33 = vpop.permute.xlu0 %511 }
  0xef   : > { %v526_v34 = vsel %vm525_vm10, %v2499_v0, %v512_v33  ;;  %623 = vrot.lane.b32.xlu0 %v2534_v32, %s2306_s21  ;;  %519 = vrot.lane.b32.xlu1 %v2534_v32, %s2298_s19  ;;  %v2564_v48 = vpop.permute.xlu2 %718 }
  0xf0   : > { %535 = vst.msk [vmem:[#allocation3 - $0x5] sm:$0xe0] %vm534_vm11, %v526_v34  ;;  %438 = vrot.lane.b32.xlu2 %v2163_v31, %s2305_s18  ;;  %v1110_v31 = vld [vmem:[#allocation2 + $0x78] sm:$0x7] }
  0xf5   : > { %v614_v46 = vpop.permute.xlu1 %613 }
  0xf6   : > { %v2559_v41 = vpop.permute.xlu0 %517  ;;  %v630_v13 = vsel %vm629_vm13, %v614_v46, %v2544_v35  ;;  %v560_v35 = vstv %s2632_s7  ;;  %s2673_s7 = sld [smem:[#allocation6 + $0xf]] }
  0xf7   : > { %468 = vrot.lane.b32.xlu0 %v2164_v36, %s3210_s11  ;;  %431 = vrot.lane.b32.xlu1 %v2165_v37, %s2304_s13  ;;  %v397_v55 = vpop.permute.xlu2 %396  ;;  %s2689_s11 = sld [smem:[#allocation6 + $0x24]] }
  0xf8   : > { %461 = vrot.lane.b32.xlu2 %v2166_v38, %s2299_s24  ;;  %399 = vst.msk [vmem:[#allocation2 + $0x59] sm:$0x1] %vm289_vm9, %v397_v55 }
  0xfd   : > { %v626_v53 = vpop.permute.xlu1 %625 }
  0xfe   : > { %v524_v47 = vpop.permute.xlu0 %523  ;;  %v2576_v56 = vsel %vm629_vm13, %v626_v53, %v628_v42 }
  0xff   : > { %720 = vrot.lane.b32.xlu0 %v2525_v25, %s2307_s22  ;;  %619 = vrot.lane.b32.xlu1 %v2525_v25, %s2306_s21  ;;  %v529_v49 = vsel %vm525_vm10, %v522_v30, %v524_v47 }
 0x100   : > { %724 = vrot.lane.b32.xlu2 %v2534_v32, %s2307_s22  ;;  %540 = vst.msk [vmem:[#allocation3 + $0x13] sm:$0x7] %vm539_vm12, %v529_v49 }
 0x105   : > { %v717_v58 = vpop.permute.xlu1 %716 }
 0x106   : > { %v2573_v54 = vpop.permute.xlu0 %617 }
 0x107   : > { %489 = vrot.lane.b32.xlu0 %v2167_v43, %s2305_s18  ;;  %454 = vrot.lane.b32.xlu1 %v2168_v44, %s3208_s12  ;;  %s2676_s12 = sld [smem:[#allocation6 + $0x16]] }
 0x108   : > { %482 = vrot.lane.b32.xlu2 %v2169_v45, %s2304_s13 }
 0x10d   : > { %v2590_v0 = vpop.permute.xlu1 %722 }
 0x10e   : > { %v715_v59 = vpop.permute.xlu0 %714 }
 0x10f   : > { %875 = vrot.lane.b32.xlu0 %v2534_v32, %s2308_s23  ;;  %475 = vrot.lane.b32.xlu1 %v2170_v50, %s2301_s10  ;;  %v2585_v60 = vsel %vm730_vm14, %v715_v59, %v717_v58 }
 0x110   : > { %951 = vrot.lane.b32.xlu2 %v943_v51, %s2309_s26  ;;  %v568_v51 = vstv %s2638_s6  ;;  %s2661_s6 = sld [smem:[#allocation6 + $0x1]] }
 0x115   : > { %v729_v3 = vpop.permute.xlu1 %728 }
 0x116   : > { %v727_v1 = vpop.permute.xlu0 %726 }
 0x117   : > { %953 = vrot.lane.b32.xlu0 %v2525_v25, %s2309_s26  ;;  %871 = vrot.lane.b32.xlu1 %v863_v57, %s2308_s23  ;;  %v2598_v5 = vsel %vm730_vm14, %v727_v1, %v729_v3 }
 0x118   : > { %873 = vrot.lane.b32.xlu2 %v2525_v25, %s2308_s23 }
 0x11d   : > { %v411_v9 = vpop.permute.xlu1 %410 }
 0x11e   : > { %v404_v4 = vpop.permute.xlu0 %403  ;;  %413 = vst.msk [vmem:[#allocation2 + $0x5b] sm:$0x1] %vm289_vm9, %v411_v9 }
 0x11f   : > { %877 = vrot.lane.b32.xlu1 %v866_v61, %s2308_s23  ;;  %1031 = vrot.lane.b32.xlu0 %v1023_v62, %s2310_s27  ;;  %406 = vst.msk [vmem:[#allocation2 + $0x5a] sm:$0x1] %vm289_vm9, %v404_v4 }
 0x120   : > { %957 = vrot.lane.b32.xlu2 %v946_v63, %s2309_s26 }
 0x126   : > { %v425_v7 = vpop.permute.xlu0 %424 }
 0x127   : > { %955 = vrot.lane.b32.xlu1 %v2534_v32, %s2309_s26  ;;  %1037 = vrot.lane.b32.xlu0 %v1026_v2, %s2310_s27  ;;  %427 = vst.msk [vmem:[#allocation2 + $0x5d] sm:$0x1] %vm289_vm9, %v425_v7 }
 0x128   : > { %1035 = vrot.lane.b32.xlu2 %v2534_v32, %s2310_s27 }
 0x12e   : > { %v448_v11 = vpop.permute.xlu0 %447 }
 0x12f   : > { %1033 = vrot.lane.b32.xlu1 %v2525_v25, %s2310_s27  ;;  %450 = vst.msk [vmem:[#allocation2 + $0x69] sm:$0x1] %vm289_vm9, %v448_v11  ;;  %1123 = vrot.lane.b32.xlu0 %v2624_v22, %s2298_s19 }
 0x130   : > { %1121 = vrot.lane.b32.xlu2 %v1104_v19, %s2298_s19 }
 0x137   : > { %1119 = vrot.lane.b32.xlu1 %v1103_v18, %s2298_s19 }
 0x138   : > { %1127 = vrot.lane.b32.xlu2 %v2626_v23, %s2298_s19 }
 0x139   : > { %v516_v8 = vpop.permute.xlu2 %515 }
 0x13a   : > { %v527_v10 = vsel %vm525_vm10, %v2557_v40, %v516_v8 }
 0x13b   : > { %537 = vst.msk [vmem:[#allocation3 + $0x3] sm:$0xff] %vm536_vm15, %v527_v10 }
 0x140   : > { %1133 = vrot.lane.b32.xlu2 %v1110_v31, %s2298_s19  ;;  %v653_v31 = vstv %s2666_s9  ;;  %s2708_s9 = sld [smem:[#allocation6 + $0x9]] }
 0x141   : > { %v418_v12 = vpop.permute.xlu2 %417 }
 0x142   : > { %v542_v14 = vld [vmem:[#allocation3] sm:$0xff]  ;;  %420 = vst.msk [vmem:[#allocation2 + $0x5c] sm:$0x1] %vm289_vm9, %v418_v12 }
 0x143   : > { %v550_v15 = vld [vmem:[#allocation3 + $0x1] sm:$0xff]  ;;  %v545_v33 = vmul.f32 %v544_v27, %v542_v14 }
 0x144   : > { %v558_v16 = vld [vmem:[#allocation3 + $0x2] sm:$0xff]  ;;  %v553_v34 = vmul.f32 %v552_v28, %v550_v15 }
 0x145   : > { %638 = vst.msk [vmem:[#allocation3 - $0x5] sm:$0xe0] %vm534_vm11, %v630_v13  ;;  %v566_v40 = vld [vmem:[#allocation3 + $0x3] sm:$0xff]  ;;  %v561_v44 = vmul.f32 %v560_v35, %v558_v16  ;;  %v592_v16 = vstv %s2654_s5  ;;  %s2691_s5 = sld [smem:[#allocation6 + $0x2b]] }
 0x146   : > { %v555_v36 = vadd.f32 %v553_v34, %v545_v33  ;;  %v569_v1 = vmul.f32 %v568_v51, %v566_v40 }
 0x148   : > { %1223 = vrot.lane.b32.xlu2 %v2624_v22, %s2306_s21  ;;  %v563_v58 = vadd.f32 %v561_v44, %v555_v36  ;;  %v661_v44 = vstv %s2673_s7  ;;  %s2720_s7 = sld [smem:[#allocation6 + $0x17]] }
 0x14a   : > { %v439_v17 = vpop.permute.xlu2 %438  ;;  %v571_v6 = vadd.f32 %v569_v1, %v563_v58 }
 0x14b   : > { %441 = vst.msk [vmem:[#allocation2 + $0x5f] sm:$0x1] %vm289_vm9, %v439_v17 }
 0x152   : > { %v462_v20 = vpop.permute.xlu2 %461 }
 0x153   : > { %464 = vst.msk [vmem:[#allocation2 + $0x6b] sm:$0x1] %vm289_vm9, %v462_v20 }
 0x15a   : > { %v2622_v21 = vpop.permute.xlu2 %724 }
 0x161   : > { %v520_v24 = vpop.permute.xlu1 %519  ;;  %v624_v26 = vpop.permute.xlu0 %623 }
 0x162   : > { %v528_v29 = vsel %vm525_vm10, %v2559_v41, %v520_v24  ;;  %v483_v30 = vpop.permute.xlu2 %482  ;;  %v632_v63 = vsel %vm629_vm13, %v2549_v39, %v624_v26  ;;  %v1109_v24 = vld [vmem:[#allocation2 + $0x70] sm:$0x7]  ;;  %v645_v26 = vstv %s2661_s6  ;;  %s2702_s6 = sld [smem:[#allocation6 + $0x2]] }
 0x163   : > { %538 = vst.msk [vmem:[#allocation3 + $0xb] sm:$0xff] %vm536_vm15, %v528_v29 }
 0x164   : > { %485 = vst.msk [vmem:[#allocation2 + $0x6e] sm:$0x1] %vm289_vm9, %v483_v30 }
 0x169   : > { %v432_v37 = vpop.permute.xlu1 %431  ;;  %v469_v38 = vpop.permute.xlu0 %468 }
 0x16a   : > { %v543_v41 = vld [vmem:[#allocation3 + $0x8] sm:$0xff]  ;;  %434 = vst.msk [vmem:[#allocation2 + $0x5e] sm:$0x1] %vm289_vm9, %v432_v37 }
 0x16b   : > { %v551_v42 = vld [vmem:[#allocation3 + $0x9] sm:$0xff]  ;;  %v546_v45 = vmul.f32 %v544_v27, %v543_v41  ;;  %471 = vst.msk [vmem:[#allocation2 + $0x6c] sm:$0x1] %vm289_vm9, %v469_v38 }
 0x16c   : > { %v559_v43 = vld [vmem:[#allocation3 + $0xa] sm:$0xff]  ;;  %v554_v46 = vmul.f32 %v552_v28, %v551_v42 }
 0x16d   : > { %v567_v47 = vld [vmem:[#allocation3 + $0xb] sm:$0xff]  ;;  %v562_v61 = vmul.f32 %v560_v35, %v559_v43 }
 0x16e   : > { %v574_v49 = vld [vmem:[#allocation3 + $0x4] sm:$0xff]  ;;  %v575_v50 = vld [vmem:[#allocation3 + $0xc] sm:$0xff]  ;;  %v556_v59 = vadd.f32 %v554_v46, %v546_v45  ;;  %v570_v3 = vmul.f32 %v568_v51, %v567_v47 }
 0x16f   : > { %v582_v53 = vld [vmem:[#allocation3 + $0x5] sm:$0xff]  ;;  %v583_v55 = vld [vmem:[#allocation3 + $0xd] sm:$0xff]  ;;  %v577_v4 = vmul.f32 %v576_v52, %v574_v49  ;;  %v578_v8 = vmul.f32 %v576_v52, %v575_v50 }
 0x170   : > { %v590_v57 = vld [vmem:[#allocation3 + $0x6] sm:$0xff]  ;;  %v591_v62 = vld [vmem:[#allocation3 + $0xe] sm:$0xff]  ;;  %v564_v2 = vadd.f32 %v562_v61, %v556_v59 }
 0x171   : > { %641 = vst.msk [vmem:[#allocation3 + $0x13] sm:$0x7] %vm539_vm12, %v2576_v56  ;;  %v2663_v9 = vld [vmem:[#allocation2 + $0x58] sm:$0xff]  ;;  %v721_v10 = vpop.permute.xlu0 %720  ;;  %v620_v11 = vpop.permute.xlu1 %619  ;;  %v584_v56 = vstv %s2646_s28  ;;  %v579_v12 = vadd.f32 %v577_v4, %v571_v6  ;;  %s2684_s28 = sld [smem:[#allocation6 + $0x1d]]  ;;  %v593_v27 = vmul.f32 %v592_v16, %v590_v57  ;;  %v594_v28 = vmul.f32 %v592_v16, %v591_v62  ;;  %v1204_v62 = vld [vmem:[#allocation2 + $0x48] sm:$0xe0] }
 0x172   : > { %640 = vst.msk [vmem:[#allocation3 + $0xb] sm:$0xff] %vm536_vm15, %v632_v63  ;;  %v572_v7 = vadd.f32 %v570_v3, %v564_v2  ;;  %v631_v39 = vsel %vm629_vm13, %v2573_v54, %v620_v11  ;;  %1125 = vrot.lane.b32.xlu1 %v2663_v9, %s2298_s19  ;;  %v585_v14 = vmul.f32 %v584_v56, %v582_v53  ;;  %v685_v4 = vstv %s2689_s11  ;;  %v799_v6 = vld [vmem:[#allocation2 + $0x8] sm:$0xe0]  ;;  %s2729_s11 = sld [smem:[#allocation6 + $0x25]] }
 0x173   : > { %639 = vst.msk [vmem:[#allocation3 + $0x3] sm:$0xff] %vm536_vm15, %v631_v39  ;;  %v586_v15 = vmul.f32 %v584_v56, %v583_v55  ;;  %v732_v43 = vsel %vm730_vm14, %v2564_v48, %v721_v10  ;;  %v733_v55 = vsel %vm730_vm14, %v2590_v0, %v2622_v21  ;;  %v669_v48 = vstv %s2676_s12  ;;  %s2714_s12 = sld [smem:[#allocation6 + $0x10]] }
 0x174   : > { %v580_v13 = vadd.f32 %v578_v8, %v572_v7  ;;  %v587_v54 = vadd.f32 %v585_v14, %v579_v12  ;;  %v693_v56 = vstv %s2691_s5  ;;  %s2738_s5 = sld [smem:[#allocation6 + $0x2c]] }
 0x176   : > { %v588_v19 = vadd.f32 %v586_v15, %v580_v13  ;;  %v595_v36 = vadd.f32 %v593_v27, %v587_v54 }
 0x177   : > { %v677_v63 = vstv %s2684_s28  ;;  %s2722_s28 = sld [smem:[#allocation6 + $0x1e]] }
 0x179   : > { %v2678_v17 = vld [vmem:[#allocation3 + $0xc] sm:$0xff]  ;;  %v490_v29 = vpop.permute.xlu0 %489  ;;  %v455_v30 = vpop.permute.xlu1 %454 }
 0x17a   : > { %v2680_v18 = vld [vmem:[#allocation3 + $0xd] sm:$0xff]  ;;  %v643_v33 = vld [vmem:[#allocation3] sm:$0xff]  ;;  %492 = vst.msk [vmem:[#allocation2 + $0x6f] sm:$0x1] %vm289_vm9, %v490_v29  ;;  %1131 = vrot.lane.b32.xlu1 %v1109_v24, %s2298_s19  ;;  %v679_v11 = vmul.f32 %v677_v63, %v2678_v17  ;;  %v754_v24 = vstv %s2708_s9  ;;  %s2757_s9 = sld [smem:[#allocation6 + $0xa]] }
 0x17b   : > { %v2682_v20 = vld [vmem:[#allocation3 + $0xe] sm:$0xff]  ;;  %v651_v35 = vld [vmem:[#allocation3 + $0x1] sm:$0xff]  ;;  %v646_v37 = vmul.f32 %v645_v26, %v643_v33  ;;  %457 = vst.msk [vmem:[#allocation2 + $0x6a] sm:$0x1] %vm289_vm9, %v455_v30  ;;  %v687_v14 = vmul.f32 %v685_v4, %v2680_v18 }
 0x17c   : > { %742 = vst.msk [vmem:[#allocation3 + $0x13] sm:$0x7] %vm539_vm12, %v2598_v5  ;;  %v644_v34 = vld [vmem:[#allocation3 + $0x8] sm:$0xff]  ;;  %v596_v5 = vadd.f32 %v594_v28, %v588_v19  ;;  %v654_v51 = vmul.f32 %v653_v31, %v651_v35  ;;  %v746_v19 = vstv %s2702_s6  ;;  %s2753_s6 = sld [smem:[#allocation6 + $0x3]] }
 0x17d   : > { %v647_v38 = vmul.f32 %v645_v26, %v644_v34  ;;  %v652_v40 = vld [vmem:[#allocation3 + $0x9] sm:$0xff]  ;;  %v648_v49 = vadd.f32 %v646_v37, %v595_v36  ;;  %v802_v37 = vld [vmem:[#allocation2 + $0x38] sm:$0x7] }
 0x17e   : > { %v659_v41 = vld [vmem:[#allocation3 + $0x2] sm:$0xff]  ;;  %v660_v42 = vld [vmem:[#allocation3 + $0xa] sm:$0xff]  ;;  %v655_v52 = vmul.f32 %v653_v31, %v652_v40  ;;  %v695_v31 = vmul.f32 %v693_v56, %v2682_v20  ;;  %v2735_v20 = vpop.permute.xlu2 %951 }
 0x17f   : > { %v667_v45 = vld [vmem:[#allocation3 + $0x3] sm:$0xff]  ;;  %739 = vst.msk [vmem:[#allocation3 - $0x5] sm:$0xe0] %vm534_vm11, %v2585_v60  ;;  %v649_v50 = vadd.f32 %v647_v38, %v596_v5  ;;  %v668_v57 = vld [vmem:[#allocation3 + $0xb] sm:$0xff]  ;;  %v656_v60 = vadd.f32 %v654_v51, %v648_v49  ;;  %v662_v59 = vmul.f32 %v661_v44, %v659_v41  ;;  %v663_v61 = vmul.f32 %v661_v44, %v660_v42 }
 0x180   : > { %v675_v46 = vld [vmem:[#allocation3 + $0x4] sm:$0xff]  ;;  %v671_v1 = vmul.f32 %v669_v48, %v668_v57  ;;  %v670_v0 = vmul.f32 %v669_v48, %v667_v45  ;;  %v762_v45 = vstv %s2714_s12  ;;  %s2762_s12 = sld [smem:[#allocation6 + $0x18]] }
 0x181   : > { %v683_v47 = vld [vmem:[#allocation3 + $0x5] sm:$0xff]  ;;  %v657_v58 = vadd.f32 %v655_v52, %v649_v50  ;;  %v664_v2 = vadd.f32 %v662_v59, %v656_v60  ;;  %v476_v21 = vpop.permute.xlu1 %475  ;;  %v678_v10 = vmul.f32 %v677_v63, %v675_v46  ;;  %v778_v60 = vstv %s2722_s28  ;;  %v1210_v63 = vld [vmem:[#allocation2 + $0x78] sm:$0x7]  ;;  %s2782_s28 = sld [smem:[#allocation6 + $0x26]] }
 0x182   : > { %v691_v53 = vld [vmem:[#allocation3 + $0x6] sm:$0xff]  ;;  %478 = vst.msk [vmem:[#allocation2 + $0x6d] sm:$0x1] %vm289_vm9, %v476_v21  ;;  %1221 = vrot.lane.b32.xlu1 %v1204_v62, %s2306_s21  ;;  %v686_v13 = vmul.f32 %v685_v4, %v683_v47  ;;  %v876_v62 = vpop.permute.xlu0 %875 }
 0x183   : > { %740 = vst.msk [vmem:[#allocation3 + $0x3] sm:$0xff] %vm536_vm15, %v732_v43  ;;  %v665_v3 = vadd.f32 %v663_v61, %v657_v58  ;;  %v672_v7 = vadd.f32 %v670_v0, %v664_v2  ;;  %v694_v30 = vmul.f32 %v693_v56, %v691_v53  ;;  %v1303_v2 = vld [vmem:[#allocation2 + $0x40] sm:$0xe0] }
 0x184   : > { %741 = vst.msk [vmem:[#allocation3 + $0xb] sm:$0xff] %vm536_vm15, %v733_v55 }
 0x185   : > { %v673_v8 = vadd.f32 %v671_v1, %v665_v3  ;;  %v680_v39 = vadd.f32 %v678_v10, %v672_v7  ;;  %v786_v1 = vstv %s2729_s11  ;;  %v1203_v3 = vld [vmem:[#allocation2 + $0x40] sm:$0xe0]  ;;  %s2787_s11 = sld [smem:[#allocation6 + $0x2d]] }
 0x187   : > { %v681_v12 = vadd.f32 %v679_v11, %v673_v8  ;;  %v688_v17 = vadd.f32 %v686_v13, %v680_v39  ;;  %v794_v11 = vstv %s2738_s5  ;;  %s2790_s5 = sld [smem:[#allocation6 + $0x4]] }
 0x189   : > { %v689_v29 = vadd.f32 %v687_v14, %v681_v12  ;;  %v696_v38 = vadd.f32 %v694_v30, %v688_v17  ;;  %v2742_v47 = vld [vmem:[#allocation2 + $0x68] sm:$0xff]  ;;  %v872_v49 = vpop.permute.xlu1 %871  ;;  %v874_v17 = vpop.permute.xlu2 %873 }
 0x18a   : > { %v744_v15 = vld [vmem:[#allocation3] sm:$0xff]  ;;  %1227 = vrot.lane.b32.xlu1 %v2626_v23, %s2306_s21  ;;  %1229 = vrot.lane.b32.xlu2 %v2742_v47, %s2306_s21 }
 0x18b   : > { %v752_v16 = vld [vmem:[#allocation3 + $0x1] sm:$0xff]  ;;  %v753_v27 = vld [vmem:[#allocation3 + $0x9] sm:$0xff]  ;;  %v697_v40 = vadd.f32 %v695_v31, %v689_v29  ;;  %v747_v41 = vmul.f32 %v746_v19, %v744_v15  ;;  %1129 = vrot.lane.b32.xlu0 %v2742_v47, %s2298_s19  ;;  %s2760_s19 = sld [smem:[#allocation6 + $0x11]] }
 0x18c   : > { %v760_v54 = vld [vmem:[#allocation3 + $0x2] sm:$0xff]  ;;  %v761_v28 = vld [vmem:[#allocation3 + $0xa] sm:$0xff]  ;;  %v755_v46 = vmul.f32 %v754_v24, %v752_v16  ;;  %v756_v52 = vmul.f32 %v754_v24, %v753_v27 }
 0x18d   : > { %v745_v26 = vld [vmem:[#allocation3 + $0x8] sm:$0xff]  ;;  %803 = vst.msk [vmem:[#allocation3 - $0x5] sm:$0xe0] %vm534_vm11, %v799_v6  ;;  %v749_v50 = vadd.f32 %v747_v41, %v696_v38  ;;  %v763_v48 = vmul.f32 %v762_v45, %v760_v54  ;;  %v764_v57 = vmul.f32 %v762_v45, %v761_v28 }
 0x18e   : > { %v768_v33 = vld [vmem:[#allocation3 + $0x3] sm:$0xff]  ;;  %v769_v34 = vld [vmem:[#allocation3 + $0xb] sm:$0xff]  ;;  %v748_v42 = vmul.f32 %v746_v19, %v745_v26  ;;  %v810_v26 = vstv %s2753_s6  ;;  %s2797_s6 = sld [smem:[#allocation6 + $0xb]] }
 0x18f   : > { %v776_v35 = vld [vmem:[#allocation3 + $0x4] sm:$0xff]  ;;  %v777_v18 = vld [vmem:[#allocation3 + $0xc] sm:$0xff]  ;;  %v757_v53 = vadd.f32 %v755_v46, %v749_v50  ;;  %v834_v50 = vstv %s2762_s12  ;;  %s2829_s12 = sld [smem:[#allocation6 + $0x20]] }
 0x190   : > { %v784_v36 = vld [vmem:[#allocation3 + $0x5] sm:$0xff]  ;;  %v785_v5 = vld [vmem:[#allocation3 + $0xd] sm:$0xff]  ;;  %v750_v51 = vadd.f32 %v748_v42, %v697_v40  ;;  %v779_v4 = vmul.f32 %v778_v60, %v776_v35  ;;  %v780_v6 = vmul.f32 %v778_v60, %v777_v18 }
 0x191   : > { %v2731_v43 = vld [vmem:[#allocation3 + $0x6] sm:$0xff]  ;;  %v2733_v44 = vld [vmem:[#allocation3 + $0xe] sm:$0xff]  ;;  %v787_v15 = vmul.f32 %v786_v1, %v784_v36  ;;  %v788_v16 = vmul.f32 %v786_v1, %v785_v5  ;;  %v878_v30 = vpop.permute.xlu1 %877  ;;  %v818_v5 = vstv %s2757_s9  ;;  %v826_v42 = vstv %s2760_s19  ;;  %s2806_s9 = sld [smem:[#allocation6 + $0x12]] }
 0x192   : > { %804 = vst.msk [vmem:[#allocation3 + $0x3] sm:$0xff] %vm536_vm15, %v2525_v25  ;;  %v770_v25 = vstv %s2720_s7  ;;  %v758_v55 = vadd.f32 %v756_v52, %v750_v51  ;;  %1233 = vrot.lane.b32.xlu1 %v1210_v63, %s2306_s21  ;;  %1319 = vrot.lane.b32.xlu2 %v1303_v2, %s2307_s22  ;;  %s2769_s7 = sld [smem:[#allocation6 + $0x1f]]  ;;  %v796_v35 = vmul.f32 %v794_v11, %v2733_v44  ;;  %v850_v1 = vstv %s2782_s28 }
 0x193   : > { %805 = vst.msk [vmem:[#allocation3 + $0xb] sm:$0xff] %vm536_vm15, %v2534_v32  ;;  %v765_v32 = vadd.f32 %v763_v48, %v757_v53  ;;  %v771_v59 = vmul.f32 %v770_v25, %v768_v33  ;;  %v772_v61 = vmul.f32 %v770_v25, %v769_v34  ;;  %1219 = vrot.lane.b32.xlu0 %v1203_v3, %s2306_s21  ;;  %s2816_s19 = sld [smem:[#allocation6 + $0x19]] }
 0x194   : > { %806 = vst.msk [vmem:[#allocation3 + $0x13] sm:$0x7] %vm539_vm12, %v802_v37  ;;  %v766_v58 = vadd.f32 %v764_v57, %v758_v55  ;;  %v795_v34 = vmul.f32 %v794_v11, %v2731_v43  ;;  %v858_v11 = vstv %s2787_s11  ;;  %s2842_s28 = sld [smem:[#allocation6 + $0x2e]] }
 0x195   : > { %v773_v0 = vadd.f32 %v771_v59, %v765_v32  ;;  %s2856_s11 = sld [smem:[#allocation6 + $0xc]] }
 0x196   : > { %v774_v21 = vadd.f32 %v772_v61, %v766_v58 }
 0x197   : > { %v781_v13 = vadd.f32 %v779_v4, %v773_v0 }
 0x198   : > { %v782_v14 = vadd.f32 %v780_v6, %v774_v21  ;;  %v842_v55 = vstv %s2769_s7  ;;  %s2838_s7 = sld [smem:[#allocation6 + $0x27]] }
 0x199   : > { %v808_v7 = vld [vmem:[#allocation3] sm:$0xff]  ;;  %v789_v31 = vadd.f32 %v787_v15, %v781_v13  ;;  %v1309_v13 = vld [vmem:[#allocation2 + $0x70] sm:$0x7] }
 0x19a   : > { %v816_v8 = vld [vmem:[#allocation3 + $0x1] sm:$0xff]  ;;  %v817_v39 = vld [vmem:[#allocation3 + $0x9] sm:$0xff]  ;;  %v790_v33 = vadd.f32 %v788_v16, %v782_v14  ;;  %v811_v40 = vmul.f32 %v810_v26, %v808_v7  ;;  %1323 = vrot.lane.b32.xlu1 %v2624_v22, %s2307_s22  ;;  %1325 = vrot.lane.b32.xlu2 %v2663_v9, %s2307_s22 }
 0x19b   : > { %v824_v10 = vld [vmem:[#allocation3 + $0x2] sm:$0xff]  ;;  %v825_v12 = vld [vmem:[#allocation3 + $0xa] sm:$0xff]  ;;  %v797_v37 = vadd.f32 %v795_v34, %v789_v31  ;;  %v819_v45 = vmul.f32 %v818_v5, %v816_v8  ;;  %v820_v46 = vmul.f32 %v818_v5, %v817_v39  ;;  %1225 = vrot.lane.b32.xlu0 %v2663_v9, %s2306_s21 }
 0x19c   : > { %v809_v56 = vld [vmem:[#allocation3 + $0x8] sm:$0xff]  ;;  %883 = vst.msk [vmem:[#allocation3 - $0x5] sm:$0xe0] %vm534_vm11, %v872_v49  ;;  %v798_v38 = vadd.f32 %v796_v35, %v790_v33  ;;  %v954_v49 = vpop.permute.xlu0 %953  ;;  %v827_v25 = vmul.f32 %v826_v42, %v824_v10  ;;  %v828_v53 = vmul.f32 %v826_v42, %v825_v12  ;;  %v898_v33 = vstv %s2797_s6  ;;  %s2883_s6 = sld [smem:[#allocation6 + $0x1a]] }
 0x19d   : > { %v832_v54 = vld [vmem:[#allocation3 + $0x3] sm:$0xff]  ;;  %v833_v19 = vld [vmem:[#allocation3 + $0xb] sm:$0xff]  ;;  %v812_v41 = vmul.f32 %v810_v26, %v809_v56  ;;  %v813_v43 = vadd.f32 %v811_v40, %v797_v37  ;;  %v958_v56 = vpop.permute.xlu2 %957  ;;  %v906_v37 = vstv %s2806_s9  ;;  %s2915_s9 = sld [smem:[#allocation6 + $0x28]] }
 0x19e   : > { %v840_v24 = vld [vmem:[#allocation3 + $0x4] sm:$0xff]  ;;  %v841_v29 = vld [vmem:[#allocation3 + $0xc] sm:$0xff]  ;;  %v835_v58 = vmul.f32 %v834_v50, %v832_v54  ;;  %v836_v59 = vmul.f32 %v834_v50, %v833_v19 }
 0x19f   : > { %v2771_v27 = vld [vmem:[#allocation3 + $0x5] sm:$0xff]  ;;  %v849_v18 = vld [vmem:[#allocation3 + $0xd] sm:$0xff]  ;;  %v814_v44 = vadd.f32 %v812_v41, %v798_v38  ;;  %v821_v51 = vadd.f32 %v819_v45, %v813_v43  ;;  %v843_v6 = vmul.f32 %v842_v55, %v840_v24  ;;  %v844_v8 = vmul.f32 %v842_v55, %v841_v29 }
 0x1a0   : > { %v2773_v28 = vld [vmem:[#allocation3 + $0x6] sm:$0xff]  ;;  %v2779_v36 = vld [vmem:[#allocation3 + $0xe] sm:$0xff]  ;;  %v851_v15 = vmul.f32 %v850_v1, %v2771_v27  ;;  %v852_v54 = vmul.f32 %v850_v1, %v849_v18  ;;  %v914_v45 = vstv %s2816_s19  ;;  %s2918_s19 = sld [smem:[#allocation6 + $0x2f]] }
 0x1a1   : > { %884 = vst.msk [vmem:[#allocation3 + $0x3] sm:$0xff] %vm536_vm15, %v874_v17  ;;  %v822_v52 = vadd.f32 %v820_v46, %v814_v44  ;;  %v829_v32 = vadd.f32 %v827_v25, %v821_v51  ;;  %v1209_v26 = vld [vmem:[#allocation2 + $0x70] sm:$0x7]  ;;  %v890_v17 = vstv %s2790_s5  ;;  %v859_v27 = vmul.f32 %v858_v11, %v2773_v28  ;;  %v1467_v38 = vld [vmem:[#allocation2 + $0x48] sm:$0xe0]  ;;  %s2873_s5 = sld [smem:[#allocation6 + $0x13]] }
 0x1a2   : > { %885 = vst.msk [vmem:[#allocation3 + $0xb] sm:$0xff] %vm536_vm15, %v876_v62  ;;  %1329 = vrot.lane.b32.xlu1 %v2742_v47, %s2307_s22  ;;  %v860_v31 = vmul.f32 %v858_v11, %v2779_v36  ;;  %1331 = vrot.lane.b32.xlu2 %v1309_v13, %s2307_s22  ;;  %v1304_v46 = vld [vmem:[#allocation2 + $0x48] sm:$0xe0] }
 0x1a3   : > { %886 = vst.msk [vmem:[#allocation3 + $0x13] sm:$0x7] %vm539_vm12, %v878_v30  ;;  %v830_v22 = vadd.f32 %v828_v53, %v822_v52  ;;  %v837_v21 = vadd.f32 %v835_v58, %v829_v32  ;;  %1231 = vrot.lane.b32.xlu0 %v1209_v26, %s2306_s21  ;;  %s2849_s21 = sld [smem:[#allocation6 + $0x5]]  ;;  %v922_v32 = vstv %s2829_s12  ;;  %v1470_v26 = vld [vmem:[#allocation2 + $0x78] sm:$0x7] }
 0x1a4   : > { %v1032_v24 = vpop.permute.xlu0 %1031  ;;  %s2922_s12 = sld [smem:[#allocation6 + $0x6]] }
 0x1a5   : > { %v838_v4 = vadd.f32 %v836_v59, %v830_v22  ;;  %v845_v14 = vadd.f32 %v843_v6, %v837_v21 }
 0x1a7   : > { %v846_v16 = vadd.f32 %v844_v8, %v838_v4  ;;  %v853_v29 = vadd.f32 %v851_v15, %v845_v14  ;;  %v1036_v8 = vpop.permute.xlu2 %1035  ;;  %v938_v15 = vstv %s2842_s28  ;;  %s2948_s28 = sld [smem:[#allocation6 + $0x29]] }
 0x1a8   : > { %v888_v48 = vld [vmem:[#allocation3] sm:$0xff] }
 0x1a9   : > { %v896_v57 = vld [vmem:[#allocation3 + $0x1] sm:$0xff]  ;;  %v897_v62 = vld [vmem:[#allocation3 + $0x9] sm:$0xff]  ;;  %v854_v30 = vadd.f32 %v852_v54, %v846_v16  ;;  %v861_v34 = vadd.f32 %v859_v27, %v853_v29  ;;  %v891_v35 = vmul.f32 %v890_v17, %v888_v48 }
 0x1aa   : > { %v2799_v60 = vld [vmem:[#allocation3 + $0x2] sm:$0xff]  ;;  %v905_v63 = vld [vmem:[#allocation3 + $0xa] sm:$0xff]  ;;  %v899_v40 = vmul.f32 %v898_v33, %v896_v57  ;;  %v900_v41 = vmul.f32 %v898_v33, %v897_v62  ;;  %1475 = vrot.lane.b32.xlu1 %v1467_v38, %s2308_s23  ;;  %1477 = vrot.lane.b32.xlu2 %v2663_v9, %s2308_s23  ;;  %v994_v38 = vstv %s2883_s6  ;;  %s2963_s6 = sld [smem:[#allocation6 + $0x3f]] }
 0x1ab   : > { %v889_v61 = vld [vmem:[#allocation3 + $0x8] sm:$0xff]  ;;  %963 = vst.msk [vmem:[#allocation3 - $0x5] sm:$0xe0] %vm534_vm11, %v2735_v20  ;;  %v956_v20 = vpop.permute.xlu1 %955  ;;  %v862_v5 = vadd.f32 %v860_v31, %v854_v30  ;;  %v893_v28 = vadd.f32 %v891_v35, %v861_v34  ;;  %v907_v50 = vmul.f32 %v906_v37, %v2799_v60  ;;  %v908_v52 = vmul.f32 %v906_v37, %v905_v63 }
 0x1ac   : > { %v2808_v2 = vld [vmem:[#allocation3 + $0x3] sm:$0xff]  ;;  %v2818_v10 = vld [vmem:[#allocation3 + $0xc] sm:$0xff]  ;;  %v892_v18 = vmul.f32 %v890_v17, %v889_v61  ;;  %v1038_v1 = vpop.permute.xlu0 %1037  ;;  %1321 = vrot.lane.b32.xlu0 %v1304_v46, %s2307_s22  ;;  %v970_v17 = vstv %s2849_s21  ;;  %v978_v31 = vstv %s2856_s11  ;;  %v1310_v46 = vld [vmem:[#allocation2 + $0x78] sm:$0x7]  ;;  %s2951_s21 = sld [smem:[#allocation6 + $0x30]] }
 0x1ad   : > { %v2810_v3 = vld [vmem:[#allocation3 + $0x4] sm:$0xff]  ;;  %v2822_v39 = vld [vmem:[#allocation3 + $0xd] sm:$0xff]  ;;  %v915_v62 = vmul.f32 %v914_v45, %v2808_v2  ;;  %v924_v14 = vmul.f32 %v922_v32, %v2818_v10  ;;  %s2954_s11 = sld [smem:[#allocation6 + $0x31]] }
 0x1ae   : > { %v2812_v0 = vld [vmem:[#allocation3 + $0x5] sm:$0xff]  ;;  %v2824_v12 = vld [vmem:[#allocation3 + $0xe] sm:$0xff]  ;;  %v894_v44 = vadd.f32 %v892_v18, %v862_v5  ;;  %v923_v13 = vmul.f32 %v922_v32, %v2810_v3  ;;  %v1630_v32 = vld [vmem:[#allocation2 + $0x78] sm:$0x7] }
 0x1af   : > { %v2814_v7 = vld [vmem:[#allocation3 + $0x6] sm:$0xff]  ;;  %966 = vst.msk [vmem:[#allocation3 + $0x13] sm:$0x7] %vm539_vm12, %v958_v56  ;;  %v940_v30 = vmul.f32 %v938_v15, %v2824_v12 }
 0x1b0   : > { %964 = vst.msk [vmem:[#allocation3 + $0x3] sm:$0xff] %vm536_vm15, %v954_v49  ;;  %v913_v19 = vld [vmem:[#allocation3 + $0xb] sm:$0xff]  ;;  %v901_v49 = vadd.f32 %v899_v40, %v893_v28  ;;  %v902_v51 = vadd.f32 %v900_v41, %v894_v44  ;;  %v939_v27 = vmul.f32 %v938_v15, %v2814_v7  ;;  %v1550_v44 = vld [vmem:[#allocation2 + $0x78] sm:$0x7] }
 0x1b1   : > { %965 = vst.msk [vmem:[#allocation3 + $0xb] sm:$0xff] %vm536_vm15, %v956_v20  ;;  %v916_v63 = vmul.f32 %v914_v45, %v913_v19  ;;  %v930_v20 = vstv %s2838_s7  ;;  %v1547_v3 = vld [vmem:[#allocation2 + $0x48] sm:$0xe0]  ;;  %s2943_s7 = sld [smem:[#allocation6 + $0x22]] }
 0x1b2   : > { %v909_v60 = vadd.f32 %v907_v50, %v901_v49  ;;  %v910_v61 = vadd.f32 %v908_v52, %v902_v51  ;;  %v931_v19 = vmul.f32 %v930_v20, %v2812_v0  ;;  %1481 = vrot.lane.b32.xlu1 %v1470_v26, %s2308_s23  ;;  %1555 = vrot.lane.b32.xlu2 %v1547_v3, %s2309_s26  ;;  %v1122_v51 = vpop.permute.xlu2 %1121 }
 0x1b3   : > { %v1034_v57 = vpop.permute.xlu1 %1033 }
 0x1b4   : > { %v917_v2 = vadd.f32 %v915_v62, %v909_v60  ;;  %v918_v56 = vadd.f32 %v916_v63, %v910_v61  ;;  %1327 = vrot.lane.b32.xlu0 %v2626_v23, %s2307_s22  ;;  %v1010_v60 = vstv %s2915_s9  ;;  %v1018_v63 = vstv %s2918_s19  ;;  %s2971_s9 = sld [smem:[#allocation6 + $0x4d]] }
 0x1b5   : > { %s2975_s19 = sld [smem:[#allocation6 + $0x54]] }
 0x1b6   : > { %v925_v16 = vadd.f32 %v923_v13, %v917_v2  ;;  %v926_v54 = vadd.f32 %v924_v14, %v918_v56  ;;  %v1124_v2 = vpop.permute.xlu0 %1123  ;;  %v1050_v13 = vstv %s2922_s12  ;;  %s2982_s12 = sld [smem:[#allocation6 + $0x5b]] }
 0x1b7   : > { %v968_v36 = vld [vmem:[#allocation3] sm:$0xff] }
 0x1b8   : > { %v2844_v42 = vld [vmem:[#allocation3 + $0x1] sm:$0xff]  ;;  %v977_v55 = vld [vmem:[#allocation3 + $0x9] sm:$0xff]  ;;  %v933_v29 = vadd.f32 %v931_v19, %v925_v16  ;;  %v971_v35 = vmul.f32 %v970_v17, %v968_v36 }
 0x1b9   : > { %v2846_v43 = vld [vmem:[#allocation3 + $0x2] sm:$0xff]  ;;  %v985_v48 = vld [vmem:[#allocation3 + $0xa] sm:$0xff]  ;;  %v979_v5 = vmul.f32 %v978_v31, %v2844_v42  ;;  %v980_v7 = vmul.f32 %v978_v31, %v977_v55 }
 0x1ba   : > { %1043 = vst.msk [vmem:[#allocation3 - $0x5] sm:$0xe0] %vm534_vm11, %v1032_v24  ;;  %v2853_v25 = vld [vmem:[#allocation3 + $0x3] sm:$0xff]  ;;  %v993_v22 = vld [vmem:[#allocation3 + $0xb] sm:$0xff]  ;;  %v932_v24 = vmul.f32 %v930_v20, %v2822_v39  ;;  %v941_v33 = vadd.f32 %v939_v27, %v933_v29  ;;  %v986_v39 = vstv %s2873_s5  ;;  %1559 = vrot.lane.b32.xlu1 %v2742_v47, %s2309_s26  ;;  %1561 = vrot.lane.b32.xlu2 %v1550_v44, %s2309_s26  ;;  %v2930_v20 = vpop.permute.xlu2 %1127  ;;  %v1082_v44 = vstv %s2943_s7  ;;  %s2957_s5 = sld [smem:[#allocation6 + $0x38]] }
 0x1bb   : > { %v969_v53 = vld [vmem:[#allocation3 + $0x8] sm:$0xff]  ;;  %v987_v28 = vmul.f32 %v986_v39, %v2846_v43  ;;  %v988_v41 = vmul.f32 %v986_v39, %v985_v48  ;;  %v995_v45 = vmul.f32 %v994_v38, %v2853_v25  ;;  %v996_v50 = vmul.f32 %v994_v38, %v993_v22  ;;  %v1120_v43 = vpop.permute.xlu1 %1119  ;;  %s2995_s7 = sld [smem:[#allocation6 + $0x47]] }
 0x1bc   : > { %v2858_v58 = vld [vmem:[#allocation3 + $0x4] sm:$0xff]  ;;  %v2860_v59 = vld [vmem:[#allocation3 + $0xc] sm:$0xff]  ;;  %v934_v10 = vadd.f32 %v932_v24, %v926_v54  ;;  %v972_v0 = vmul.f32 %v970_v17, %v969_v53  ;;  %v973_v18 = vadd.f32 %v971_v35, %v941_v33  ;;  %1333 = vrot.lane.b32.xlu0 %v1310_v46, %s2307_s22  ;;  %v1135_v55 = vsel %vm525_vm10, %v1120_v43, %v1122_v51  ;;  %s2004_s22 = sld [smem:[#allocation6 + $0x21]] }
 0x1bd   : > { %v2864_v21 = vld [vmem:[#allocation3 + $0x5] sm:$0xff]  ;;  %v2866_v4 = vld [vmem:[#allocation3 + $0xd] sm:$0xff] }
 0x1be   : > { %v2868_v6 = vld [vmem:[#allocation3 + $0x6] sm:$0xff]  ;;  %v2875_v11 = vld [vmem:[#allocation3 + $0xe] sm:$0xff]  ;;  %v942_v34 = vadd.f32 %v940_v30, %v934_v10  ;;  %v981_v12 = vadd.f32 %v979_v5, %v973_v18  ;;  %v1011_v62 = vmul.f32 %v1010_v60, %v2864_v21  ;;  %v1012_v3 = vmul.f32 %v1010_v60, %v2866_v4 }
 0x1bf   : > { %1044 = vst.msk [vmem:[#allocation3 + $0x3] sm:$0xff] %vm536_vm15, %v1034_v57  ;;  %v1627_v48 = vld [vmem:[#allocation2 + $0x48] sm:$0xe0]  ;;  %v1020_v30 = vmul.f32 %v1018_v63, %v2875_v11 }
 0x1c0   : > { %1045 = vst.msk [vmem:[#allocation3 + $0xb] sm:$0xff] %vm536_vm15, %v1036_v8  ;;  %v974_v37 = vadd.f32 %v972_v0, %v942_v34  ;;  %v989_v36 = vadd.f32 %v987_v28, %v981_v12 }
 0x1c1   : > { %1046 = vst.msk [vmem:[#allocation3 + $0x13] sm:$0x7] %vm539_vm12, %v1038_v1 }
 0x1c2   : > { %v982_v40 = vadd.f32 %v980_v7, %v974_v37  ;;  %v997_v23 = vadd.f32 %v995_v45, %v989_v36  ;;  %1637 = vrot.lane.b32.xlu1 %v2663_v9, %s2310_s27  ;;  %1639 = vrot.lane.b32.xlu2 %v2742_v47, %s2310_s27  ;;  %v1002_v57 = vstv %s2004_s22  ;;  %v1134_v35 = vpop.permute.xlu2 %1133  ;;  %s2968_s22 = sld [smem:[#allocation6 + $0x46]] }
 0x1c3   : > { %v1003_v22 = vmul.f32 %v1002_v57, %v2858_v58  ;;  %v1004_v8 = vmul.f32 %v1002_v57, %v2860_v59  ;;  %v1019_v58 = vmul.f32 %v1018_v63, %v2868_v6  ;;  %v1150_v57 = vstv %s2954_s11  ;;  %s3007_s11 = sld [smem:[#allocation6 + $0x5c]] }
 0x1c4   : > { %v990_v49 = vadd.f32 %v988_v41, %v982_v40  ;;  %1479 = vrot.lane.b32.xlu0 %v2742_v47, %s2308_s23  ;;  %s2927_s23 = sld [smem:[#allocation6 + $0xd]] }
 0x1c5   : > { %v1005_v61 = vadd.f32 %v1003_v22, %v997_v23  ;;  %v1090_v23 = vstv %s2948_s28  ;;  %s2998_s28 = sld [smem:[#allocation6 + $0x4e]] }
 0x1c6   : > { %v998_v42 = vadd.f32 %v996_v50, %v990_v49  ;;  %v1048_v52 = vld [vmem:[#allocation3] sm:$0xff] }
 0x1c7   : > { %v1056_v53 = vld [vmem:[#allocation3 + $0x1] sm:$0xff]  ;;  %v1013_v1 = vadd.f32 %v1011_v62, %v1005_v61  ;;  %v1057_v16 = vld [vmem:[#allocation3 + $0x9] sm:$0xff]  ;;  %v1051_v6 = vmul.f32 %v1050_v13, %v1048_v52 }
 0x1c8   : > { %v1064_v25 = vld [vmem:[#allocation3 + $0x2] sm:$0xff]  ;;  %v1006_v14 = vadd.f32 %v1004_v8, %v998_v42  ;;  %v1065_v21 = vld [vmem:[#allocation3 + $0xa] sm:$0xff] }
 0x1c9   : > { %1143 = vst.msk [vmem:[#allocation3 - $0x5] sm:$0xe0] %vm534_vm11, %v1135_v55  ;;  %v1049_v56 = vld [vmem:[#allocation3 + $0x8] sm:$0xff]  ;;  %v1021_v19 = vadd.f32 %v1019_v58, %v1013_v1 }
 0x1ca   : > { %v1072_v54 = vld [vmem:[#allocation3 + $0x3] sm:$0xff]  ;;  %v1058_v29 = vstv %s2927_s23  ;;  %v1014_v10 = vadd.f32 %v1012_v3, %v1006_v14  ;;  %v1081_v39 = vld [vmem:[#allocation3 + $0xc] sm:$0xff]  ;;  %v1052_v7 = vmul.f32 %v1050_v13, %v1049_v56  ;;  %v2960_v55 = vpop.permute.xlu2 %1223  ;;  %v1158_v13 = vstv %s2957_s5  ;;  %s2984_s23 = sld [smem:[#allocation6 + $0x32]] }
 0x1cb   : > { %v1080_v59 = vld [vmem:[#allocation3 + $0x4] sm:$0xff]  ;;  %v1053_v27 = vadd.f32 %v1051_v6, %v1021_v19  ;;  %v1059_v31 = vmul.f32 %v1058_v29, %v1056_v53  ;;  %v1089_v18 = vld [vmem:[#allocation3 + $0xd] sm:$0xff]  ;;  %v1060_v40 = vmul.f32 %v1058_v29, %v1057_v16  ;;  %v1084_v60 = vmul.f32 %v1082_v44, %v1081_v39  ;;  %s3012_s5 = sld [smem:[#allocation6 + $0x33]] }
 0x1cc   : > { %1557 = vrot.lane.b32.xlu0 %v2663_v9, %s2309_s26  ;;  %s2934_s26 = sld [smem:[#allocation6 + $0x14]]  ;;  %v1088_v26 = vld [vmem:[#allocation3 + $0x5] sm:$0xff]  ;;  %v1022_v34 = vadd.f32 %v1020_v30, %v1014_v10  ;;  %v1097_v5 = vld [vmem:[#allocation3 + $0xe] sm:$0xff]  ;;  %v1083_v50 = vmul.f32 %v1082_v44, %v1080_v59  ;;  %v1092_v58 = vmul.f32 %v1090_v23, %v1089_v18 }
 0x1cd   : > { %v1096_v17 = vld [vmem:[#allocation3 + $0x6] sm:$0xff]  ;;  %v1061_v4 = vadd.f32 %v1059_v31, %v1053_v27  ;;  %v1091_v53 = vmul.f32 %v1090_v23, %v1088_v26 }
 0x1ce   : > { %v1054_v12 = vadd.f32 %v1052_v7, %v1022_v34  ;;  %v1073_v49 = vld [vmem:[#allocation3 + $0xb] sm:$0xff]  ;;  %v1174_v34 = vstv %s2968_s22  ;;  %s3019_s22 = sld [smem:[#allocation6 + $0x41]] }
 0x1d0   : > { %v1062_v36 = vadd.f32 %v1060_v40, %v1054_v12 }
 0x1d2   : > { %v1066_v33 = vstv %s2934_s26  ;;  %s2989_s26 = sld [smem:[#allocation6 + $0x39]] }
 0x1d3   : > { %v1067_v38 = vmul.f32 %v1066_v33, %v1064_v25  ;;  %v1068_v46 = vmul.f32 %v1066_v33, %v1065_v21  ;;  %v1098_v25 = vstv %s2951_s21  ;;  %s3001_s21 = sld [smem:[#allocation6 + $0x55]] }
 0x1d4   : > { %1635 = vrot.lane.b32.xlu0 %v1627_v48, %s2310_s27  ;;  %v1099_v63 = vmul.f32 %v1098_v25, %v1096_v17 }
 0x1d5   : > { %v1069_v28 = vadd.f32 %v1067_v38, %v1061_v4  ;;  %v1070_v42 = vadd.f32 %v1068_v46, %v1062_v36 }
 0x1dc   : > { %1641 = vrot.lane.b32.xlu0 %v1630_v32, %s2310_s27  ;;  %s2940_s27 = sld [smem:[#allocation6 + $0x1b]] }
 0x1e2   : > { %v1074_v11 = vstv %s2940_s27  ;;  %s2992_s27 = sld [smem:[#allocation6 + $0x40]] }
 0x1e3   : > { %v1075_v41 = vmul.f32 %v1074_v11, %v1072_v54  ;;  %v1076_v52 = vmul.f32 %v1074_v11, %v1073_v49  ;;  %v1100_v54 = vmul.f32 %v1098_v25, %v1097_v5  ;;  %v1182_v5 = vstv %s2971_s9  ;;  %s3022_s9 = sld [smem:[#allocation6 + $0x48]] }
 0x1e4   : > { %v1126_v15 = vpop.permute.xlu1 %1125 }
 0x1e5   : > { %v1136_v24 = vsel %vm525_vm10, %v1124_v2, %v1126_v15  ;;  %v1077_v45 = vadd.f32 %v1075_v41, %v1069_v28  ;;  %v1078_v32 = vadd.f32 %v1076_v52, %v1070_v42 }
 0x1e6   : > { %1144 = vst.msk [vmem:[#allocation3 + $0x3] sm:$0xff] %vm536_vm15, %v1136_v24  ;;  %v1166_v24 = vstv %s2963_s6  ;;  %s3015_s6 = sld [smem:[#allocation6 + $0x3a]] }
 0x1e7   : > { %v1085_v51 = vadd.f32 %v1083_v50, %v1077_v45  ;;  %v1086_v8 = vadd.f32 %v1084_v60, %v1078_v32  ;;  %v1198_v32 = vstv %s2982_s12  ;;  %s3032_s12 = sld [smem:[#allocation6 + $0x56]] }
 0x1e9   : > { %v1093_v22 = vadd.f32 %v1091_v53, %v1085_v51  ;;  %v1094_v16 = vadd.f32 %v1092_v58, %v1086_v8  ;;  %v1190_v51 = vstv %s2975_s19  ;;  %v1258_v8 = vstv %s2989_s26  ;;  %s3027_s19 = sld [smem:[#allocation6 + $0x4f]] }
 0x1ea   : > { %s3038_s26 = sld [smem:[#allocation6 + $0x34]] }
 0x1eb   : > { %v1101_v2 = vadd.f32 %v1099_v63, %v1093_v22  ;;  %v1102_v10 = vadd.f32 %v1100_v54, %v1094_v16 }
 0x1ec   : > { %v1132_v0 = vpop.permute.xlu1 %1131 }
 0x1ed   : > { %v1138_v37 = vsel %vm525_vm10, %v1132_v0, %v1134_v35  ;;  %v1148_v48 = vld [vmem:[#allocation3] sm:$0xff] }
 0x1ee   : > { %1146 = vst.msk [vmem:[#allocation3 + $0x13] sm:$0x7] %vm539_vm12, %v1138_v37  ;;  %v1151_v1 = vmul.f32 %v1150_v57, %v1148_v48  ;;  %v1156_v56 = vld [vmem:[#allocation3 + $0x1] sm:$0xff] }
 0x1ef   : > { %v1159_v21 = vmul.f32 %v1158_v13, %v1156_v56  ;;  %v1164_v19 = vld [vmem:[#allocation3 + $0x2] sm:$0xff] }
 0x1f0   : > { %v1153_v14 = vadd.f32 %v1151_v1, %v1101_v2  ;;  %v1167_v35 = vmul.f32 %v1166_v24, %v1164_v19  ;;  %v1172_v38 = vld [vmem:[#allocation3 + $0x3] sm:$0xff] }
 0x1f1   : > { %v1175_v41 = vmul.f32 %v1174_v34, %v1172_v38 }
 0x1f2   : > { %v1161_v3 = vadd.f32 %v1159_v21, %v1153_v14 }
 0x1f4   : > { %v1222_v43 = vpop.permute.xlu1 %1221  ;;  %v1169_v12 = vadd.f32 %v1167_v35, %v1161_v3  ;;  %v1274_v35 = vstv %s2995_s7  ;;  %s3047_s7 = sld [smem:[#allocation6 + $0x42]] }
 0x1f6   : > { %v1177_v50 = vadd.f32 %v1175_v41, %v1169_v12 }
 0x1fc   : > { %v1228_v15 = vpop.permute.xlu1 %1227 }
 0x1fd   : > { %v1130_v61 = vpop.permute.xlu0 %1129 }
 0x1fe   : > { %v1137_v62 = vsel %vm525_vm10, %v2930_v20, %v1130_v61  ;;  %v1230_v20 = vpop.permute.xlu2 %1229  ;;  %vm1765_vm10 = vcmask 385280  }
 0x1ff   : > { %1145 = vst.msk [vmem:[#allocation3 + $0xb] sm:$0xff] %vm536_vm15, %v1137_v62  ;;  %v1237_v18 = vsel %vm629_vm13, %v1228_v15, %v1230_v20 }
 0x204   : > { %v1234_v36 = vpop.permute.xlu1 %1233 }
 0x205   : > { %v1220_v59 = vpop.permute.xlu0 %1219 }
 0x206   : > { %v1149_v26 = vld [vmem:[#allocation3 + $0x8] sm:$0xff]  ;;  %v1235_v29 = vsel %vm629_vm13, %v1220_v59, %v1222_v43  ;;  %v1320_v23 = vpop.permute.xlu2 %1319  ;;  %v1266_v59 = vstv %s2992_s27  ;;  %s3043_s27 = sld [smem:[#allocation6 + $0x3b]] }
 0x207   : > { %v1157_v17 = vld [vmem:[#allocation3 + $0x9] sm:$0xff]  ;;  %v1152_v27 = vmul.f32 %v1150_v57, %v1149_v26  ;;  %1243 = vst.msk [vmem:[#allocation3 - $0x5] sm:$0xe0] %vm534_vm11, %v1235_v29 }
 0x208   : > { %v1165_v6 = vld [vmem:[#allocation3 + $0xa] sm:$0xff]  ;;  %v1160_v7 = vmul.f32 %v1158_v13, %v1157_v17 }
 0x209   : > { %v1173_v30 = vld [vmem:[#allocation3 + $0xb] sm:$0xff]  ;;  %v1154_v37 = vadd.f32 %v1152_v27, %v1102_v10  ;;  %v1168_v40 = vmul.f32 %v1166_v24, %v1165_v6 }
 0x20a   : > { %v1180_v31 = vld [vmem:[#allocation3 + $0x4] sm:$0xff]  ;;  %v1181_v33 = vld [vmem:[#allocation3 + $0xc] sm:$0xff]  ;;  %v1176_v46 = vmul.f32 %v1174_v34, %v1173_v30 }
 0x20b   : > { %v1188_v0 = vld [vmem:[#allocation3 + $0x5] sm:$0xff]  ;;  %v1189_v4 = vld [vmem:[#allocation3 + $0xd] sm:$0xff]  ;;  %v1162_v28 = vadd.f32 %v1160_v7, %v1154_v37  ;;  %v1183_v44 = vmul.f32 %v1182_v5, %v1180_v31  ;;  %v1184_v52 = vmul.f32 %v1182_v5, %v1181_v33  ;;  %v1290_v37 = vstv %s3001_s21  ;;  %s3052_s21 = sld [smem:[#allocation6 + $0x50]] }
 0x20c   : > { %v1196_v39 = vld [vmem:[#allocation3 + $0x6] sm:$0xff]  ;;  %v1197_v11 = vld [vmem:[#allocation3 + $0xe] sm:$0xff]  ;;  %v1191_v48 = vmul.f32 %v1190_v51, %v1188_v0  ;;  %v1192_v57 = vmul.f32 %v1190_v51, %v1189_v4  ;;  %v1324_v1 = vpop.permute.xlu1 %1323  ;;  %v1282_v0 = vstv %s2998_s28  ;;  %v1350_v51 = vstv %s3012_s5  ;;  %s3049_s28 = sld [smem:[#allocation6 + $0x49]] }
 0x20d   : > { %1245 = vst.msk [vmem:[#allocation3 + $0xb] sm:$0xff] %vm536_vm15, %v1237_v18  ;;  %v1170_v45 = vadd.f32 %v1168_v40, %v1162_v28  ;;  %v1226_v49 = vpop.permute.xlu0 %1225  ;;  %v1185_v53 = vadd.f32 %v1183_v44, %v1177_v50  ;;  %v1199_v62 = vmul.f32 %v1198_v32, %v1196_v39  ;;  %v1200_v63 = vmul.f32 %v1198_v32, %v1197_v11  ;;  %v1403_v50 = vld [vmem:[#allocation2 + $0x48] sm:$0xe0]  ;;  %s3063_s5 = sld [smem:[#allocation6 + $0x5e]] }
 0x20e   : > { %v1236_v42 = vsel %vm629_vm13, %v2960_v55, %v1226_v49  ;;  %v1250_v55 = vstv %s2984_s23  ;;  %v1326_v24 = vpop.permute.xlu2 %1325  ;;  %s3035_s23 = sld [smem:[#allocation6 + $0x5d]] }
 0x20f   : > { %v1178_v43 = vadd.f32 %v1176_v46, %v1170_v45  ;;  %1244 = vst.msk [vmem:[#allocation3 + $0x3] sm:$0xff] %vm536_vm15, %v1236_v42  ;;  %v1193_v22 = vadd.f32 %v1191_v48, %v1185_v53  ;;  %v1336_v6 = vsel %vm730_vm14, %v1324_v1, %v1326_v24  ;;  %v1298_v45 = vstv %s3007_s11  ;;  %s3059_s11 = sld [smem:[#allocation6 + $0x57]] }
 0x210   : > { %v1366_v1 = vstv %s3019_s22  ;;  %s3069_s22 = sld [smem:[#allocation6 + $0x3c]] }
 0x211   : > { %v1186_v25 = vadd.f32 %v1184_v52, %v1178_v43  ;;  %v1201_v14 = vadd.f32 %v1199_v62, %v1193_v22 }
 0x213   : > { %v1194_v60 = vadd.f32 %v1192_v57, %v1186_v25  ;;  %v1358_v25 = vstv %s3015_s6  ;;  %s3067_s6 = sld [smem:[#allocation6 + $0x35]] }
 0x214   : > { %v1273_v11 = vld [vmem:[#allocation3 + $0xb] sm:$0xff]  ;;  %v1330_v43 = vpop.permute.xlu1 %1329 }
 0x215   : > { %v1232_v61 = vpop.permute.xlu0 %1231  ;;  %v1202_v15 = vadd.f32 %v1200_v63, %v1194_v60  ;;  %v1276_v46 = vmul.f32 %v1274_v35, %v1273_v11  ;;  %v1398_v11 = vstv %s3035_s23  ;;  %s3084_s23 = sld [smem:[#allocation6 + $0x58]] }
 0x216   : > { %v1238_v2 = vsel %vm629_vm13, %v1232_v61, %v1234_v36  ;;  %v1248_v58 = vld [vmem:[#allocation3] sm:$0xff]  ;;  %v1249_v56 = vld [vmem:[#allocation3 + $0x8] sm:$0xff]  ;;  %vm1786_vm13 = vcmask 778880  }
 0x217   : > { %v1256_v13 = vld [vmem:[#allocation3 + $0x1] sm:$0xff]  ;;  %1246 = vst.msk [vmem:[#allocation3 + $0x13] sm:$0x7] %vm539_vm12, %v1238_v2  ;;  %v1251_v16 = vmul.f32 %v1250_v55, %v1248_v58  ;;  %v1252_v21 = vmul.f32 %v1250_v55, %v1249_v56  ;;  %v1257_v54 = vld [vmem:[#allocation3 + $0x9] sm:$0xff]  ;;  %v1374_v56 = vstv %s3022_s9  ;;  %s3073_s9 = sld [smem:[#allocation6 + $0x43]] }
 0x218   : > { %v1264_v20 = vld [vmem:[#allocation3 + $0x2] sm:$0xff]  ;;  %v1265_v19 = vld [vmem:[#allocation3 + $0xa] sm:$0xff]  ;;  %v1259_v27 = vmul.f32 %v1258_v8, %v1256_v13  ;;  %v1260_v31 = vmul.f32 %v1258_v8, %v1257_v54 }
 0x219   : > { %v1272_v26 = vld [vmem:[#allocation3 + $0x3] sm:$0xff]  ;;  %v1253_v29 = vadd.f32 %v1251_v16, %v1201_v14  ;;  %v1254_v10 = vadd.f32 %v1252_v21, %v1202_v15  ;;  %v1267_v34 = vmul.f32 %v1266_v59, %v1264_v20  ;;  %v1268_v7 = vmul.f32 %v1266_v59, %v1265_v19  ;;  %v1332_v21 = vpop.permute.xlu2 %1331 }
 0x21a   : > { %v1280_v17 = vld [vmem:[#allocation3 + $0x4] sm:$0xff]  ;;  %v1275_v18 = vmul.f32 %v1274_v35, %v1272_v26  ;;  %v1382_v59 = vstv %s3027_s19  ;;  %s3078_s19 = sld [smem:[#allocation6 + $0x4a]] }
 0x21b   : > { %v1288_v3 = vld [vmem:[#allocation3 + $0x5] sm:$0xff]  ;;  %v1261_v33 = vadd.f32 %v1259_v27, %v1253_v29  ;;  %v1262_v4 = vadd.f32 %v1260_v31, %v1254_v10  ;;  %v1283_v28 = vmul.f32 %v1282_v0, %v1280_v17 }
 0x21c   : > { %v1296_v30 = vld [vmem:[#allocation3 + $0x6] sm:$0xff]  ;;  %v1291_v36 = vmul.f32 %v1290_v37, %v1288_v3 }
 0x21d   : > { %1344 = vst.msk [vmem:[#allocation3 + $0x3] sm:$0xff] %vm536_vm15, %v1336_v6  ;;  %v1269_v39 = vadd.f32 %v1267_v34, %v1261_v33  ;;  %v1270_v40 = vadd.f32 %v1268_v7, %v1262_v4  ;;  %v1299_v52 = vmul.f32 %v1298_v45, %v1296_v30  ;;  %v1390_v33 = vstv %s3032_s12  ;;  %s3081_s12 = sld [smem:[#allocation6 + $0x51]] }
 0x21e   : > { %v1322_v5 = vpop.permute.xlu0 %1321  ;;  %v1281_v41 = vld [vmem:[#allocation3 + $0xc] sm:$0xff] }
 0x21f   : > { %v1335_v38 = vsel %vm730_vm14, %v1320_v23, %v1322_v5  ;;  %v1277_v12 = vadd.f32 %v1275_v18, %v1269_v39  ;;  %v1278_v23 = vadd.f32 %v1276_v46, %v1270_v40  ;;  %v1284_v42 = vmul.f32 %v1282_v0, %v1281_v41  ;;  %v1289_v60 = vld [vmem:[#allocation3 + $0xd] sm:$0xff] }
 0x220   : > { %1343 = vst.msk [vmem:[#allocation3 - $0x5] sm:$0xe0] %vm534_vm11, %v1335_v38  ;;  %v1297_v55 = vld [vmem:[#allocation3 + $0xe] sm:$0xff]  ;;  %v1292_v58 = vmul.f32 %v1290_v37, %v1289_v60  ;;  %v1406_v38 = vld [vmem:[#allocation2 + $0x78] sm:$0x7] }
 0x221   : > { %v1285_v44 = vadd.f32 %v1283_v28, %v1277_v12  ;;  %v1286_v63 = vadd.f32 %v1284_v42, %v1278_v23  ;;  %v1300_v24 = vmul.f32 %v1298_v45, %v1297_v55  ;;  %v1414_v45 = vstv %s3038_s26  ;;  %s3088_s26 = sld [smem:[#allocation6 + $0x5f]] }
 0x222   : > { %v1422_v23 = vstv %s3043_s27  ;;  %s3091_s27 = sld [smem:[#allocation6 + $0x36]] }
 0x223   : > { %v1293_v49 = vadd.f32 %v1291_v36, %v1285_v44  ;;  %v1294_v16 = vadd.f32 %v1292_v58, %v1286_v63  ;;  %v1476_v36 = vpop.permute.xlu1 %1475 }
 0x224   : > { %v1372_v13 = vld [vmem:[#allocation3 + $0x3] sm:$0xff] }
 0x225   : > { %v1301_v61 = vadd.f32 %v1299_v52, %v1293_v49  ;;  %v1375_v19 = vmul.f32 %v1374_v56, %v1372_v13  ;;  %v1302_v10 = vadd.f32 %v1300_v24, %v1294_v16  ;;  %v1478_v52 = vpop.permute.xlu2 %1477 }
 0x226   : > { %v1328_v53 = vpop.permute.xlu0 %1327 }
 0x227   : > { %v1348_v48 = vld [vmem:[#allocation3] sm:$0xff]  ;;  %v1337_v22 = vsel %vm730_vm14, %v1328_v53, %v1330_v43 }
 0x228   : > { %v1356_v57 = vld [vmem:[#allocation3 + $0x1] sm:$0xff]  ;;  %v1351_v62 = vmul.f32 %v1350_v51, %v1348_v48  ;;  %1345 = vst.msk [vmem:[#allocation3 + $0xb] sm:$0xff] %vm536_vm15, %v1337_v22 }
 0x229   : > { %v1364_v32 = vld [vmem:[#allocation3 + $0x2] sm:$0xff]  ;;  %v1359_v2 = vmul.f32 %v1358_v25, %v1356_v57 }
 0x22a   : > { %1407 = vst.msk [vmem:[#allocation3 - $0x5] sm:$0xe0] %vm534_vm11, %v1403_v50  ;;  %v1353_v8 = vadd.f32 %v1351_v62, %v1301_v61  ;;  %v1367_v15 = vmul.f32 %v1366_v1, %v1364_v32  ;;  %v1430_v32 = vstv %s3047_s7  ;;  %v1438_v61 = vstv %s3049_s28  ;;  %s3095_s7 = sld [smem:[#allocation6 + $0x3d]] }
 0x22b   : > { %v1446_v62 = vstv %s3052_s21  ;;  %s3100_s28 = sld [smem:[#allocation6 + $0x44]] }
 0x22c   : > { %v1361_v14 = vadd.f32 %v1359_v2, %v1353_v8  ;;  %s3103_s21 = sld [smem:[#allocation6 + $0x4b]] }
 0x22e   : > { %v1369_v54 = vadd.f32 %v1367_v15, %v1361_v14  ;;  %v1334_v20 = vpop.permute.xlu0 %1333 }
 0x22f   : > { %v1338_v26 = vsel %vm730_vm14, %v1332_v21, %v1334_v20  ;;  %v1349_v17 = vld [vmem:[#allocation3 + $0x8] sm:$0xff]  ;;  %vm1793_vm14 = vcmask 910080  }
 0x230   : > { %1346 = vst.msk [vmem:[#allocation3 + $0x13] sm:$0x7] %vm539_vm12, %v1338_v26  ;;  %v1357_v3 = vld [vmem:[#allocation3 + $0x9] sm:$0xff]  ;;  %v1377_v29 = vadd.f32 %v1375_v19, %v1369_v54  ;;  %v1352_v27 = vmul.f32 %v1350_v51, %v1349_v17 }
 0x231   : > { %v1365_v6 = vld [vmem:[#allocation3 + $0xa] sm:$0xff]  ;;  %v1360_v4 = vmul.f32 %v1358_v25, %v1357_v3  ;;  %v1482_v3 = vpop.permute.xlu1 %1481 }
 0x232   : > { %v1380_v30 = vld [vmem:[#allocation3 + $0x4] sm:$0xff]  ;;  %v1354_v0 = vadd.f32 %v1352_v27, %v1302_v10  ;;  %v1368_v37 = vmul.f32 %v1366_v1, %v1365_v6  ;;  %v1454_v6 = vstv %s3059_s11  ;;  %s3106_s11 = sld [smem:[#allocation6 + $0x52]] }
 0x233   : > { %v1388_v31 = vld [vmem:[#allocation3 + $0x5] sm:$0xff]  ;;  %v1383_v34 = vmul.f32 %v1382_v59, %v1380_v30 }
 0x234   : > { %v1396_v35 = vld [vmem:[#allocation3 + $0x6] sm:$0xff]  ;;  %v1362_v5 = vadd.f32 %v1360_v4, %v1354_v0  ;;  %v1391_v7 = vmul.f32 %v1390_v33, %v1388_v31 }
 0x235   : > { %1408 = vst.msk [vmem:[#allocation3 + $0x3] sm:$0xff] %vm536_vm15, %v2663_v9  ;;  %v1373_v39 = vld [vmem:[#allocation3 + $0xb] sm:$0xff]  ;;  %v1385_v18 = vadd.f32 %v1383_v34, %v1377_v29  ;;  %v1399_v50 = vmul.f32 %v1398_v11, %v1396_v35  ;;  %v1556_v34 = vpop.permute.xlu2 %1555  ;;  %v1462_v35 = vstv %s3063_s5  ;;  %s3110_s5 = sld [smem:[#allocation6 + $0x59]] }
 0x236   : > { %v1370_v12 = vadd.f32 %v1368_v37, %v1362_v5  ;;  %v1376_v28 = vmul.f32 %v1374_v56, %v1373_v39  ;;  %v1494_v37 = vstv %s3067_s6  ;;  %s3113_s6 = sld [smem:[#allocation6 + $0x60]] }
 0x237   : > { %v1381_v40 = vld [vmem:[#allocation3 + $0xc] sm:$0xff]  ;;  %v1393_v9 = vadd.f32 %v1391_v7, %v1385_v18 }
 0x238   : > { %v1389_v41 = vld [vmem:[#allocation3 + $0xd] sm:$0xff]  ;;  %v1384_v46 = vmul.f32 %v1382_v59, %v1381_v40  ;;  %v1378_v49 = vadd.f32 %v1376_v28, %v1370_v12  ;;  %v1502_v28 = vstv %s3069_s22  ;;  %s3117_s22 = sld [smem:[#allocation6 + $0x37]] }
 0x239   : > { %v1397_v44 = vld [vmem:[#allocation3 + $0xe] sm:$0xff]  ;;  %v1392_v25 = vmul.f32 %v1390_v33, %v1389_v41  ;;  %v1401_v48 = vadd.f32 %v1399_v50, %v1393_v9  ;;  %v1510_v50 = vstv %s3073_s9  ;;  %s3122_s9 = sld [smem:[#allocation6 + $0x3e]] }
 0x23a   : > { %1409 = vst.msk [vmem:[#allocation3 + $0xb] sm:$0xff] %vm536_vm15, %v2742_v47  ;;  %v1386_v53 = vadd.f32 %v1384_v46, %v1378_v49  ;;  %v1480_v47 = vpop.permute.xlu0 %1479  ;;  %v1400_v63 = vmul.f32 %v1398_v11, %v1397_v44 }
 0x23b   : > { %1410 = vst.msk [vmem:[#allocation3 + $0x13] sm:$0x7] %vm539_vm12, %v1406_v38 }
 0x23c   : > { %v1412_v42 = vld [vmem:[#allocation3] sm:$0xff]  ;;  %v1394_v22 = vadd.f32 %v1392_v25, %v1386_v53 }
 0x23d   : > { %v1420_v51 = vld [vmem:[#allocation3 + $0x1] sm:$0xff]  ;;  %v1415_v57 = vmul.f32 %v1414_v45, %v1412_v42 }
 0x23e   : > { %v1428_v43 = vld [vmem:[#allocation3 + $0x2] sm:$0xff]  ;;  %v1423_v55 = vmul.f32 %v1422_v23, %v1420_v51  ;;  %v1402_v14 = vadd.f32 %v1400_v63, %v1394_v22 }
 0x23f   : > { %1487 = vst.msk [vmem:[#allocation3 - $0x5] sm:$0xe0] %vm534_vm11, %v1476_v36  ;;  %v1417_v60 = vadd.f32 %v1415_v57, %v1401_v48  ;;  %v1436_v1 = vld [vmem:[#allocation3 + $0x3] sm:$0xff]  ;;  %v1431_v13 = vmul.f32 %v1430_v32, %v1428_v43 }
 0x240   : > { %v1439_v19 = vmul.f32 %v1438_v61, %v1436_v1 }
 0x241   : > { %v1413_v8 = vld [vmem:[#allocation3 + $0x8] sm:$0xff]  ;;  %v1425_v58 = vadd.f32 %v1423_v55, %v1417_v60 }
 0x242   : > { %v1421_v2 = vld [vmem:[#allocation3 + $0x9] sm:$0xff]  ;;  %v1416_v15 = vmul.f32 %v1414_v45, %v1413_v8  ;;  %v1558_v39 = vpop.permute.xlu0 %1557 }
 0x243   : > { %v1429_v56 = vld [vmem:[#allocation3 + $0xa] sm:$0xff]  ;;  %v1433_v20 = vadd.f32 %v1431_v13, %v1425_v58  ;;  %v1424_v10 = vmul.f32 %v1422_v23, %v1421_v2  ;;  %v1562_v58 = vpop.permute.xlu2 %1561 }
 0x244   : > { %v1437_v16 = vld [vmem:[#allocation3 + $0xb] sm:$0xff]  ;;  %v1418_v29 = vadd.f32 %v1416_v15, %v1402_v14  ;;  %v1432_v33 = vmul.f32 %v1430_v32, %v1429_v56  ;;  %v1518_v32 = vstv %s3078_s19  ;;  %v1526_v56 = vstv %s3081_s12  ;;  %s3125_s19 = sld [smem:[#allocation6 + $0x45]] }
 0x245   : > { %v1444_v21 = vld [vmem:[#allocation3 + $0x4] sm:$0xff]  ;;  %v1445_v54 = vld [vmem:[#allocation3 + $0xc] sm:$0xff]  ;;  %v1441_v30 = vadd.f32 %v1439_v19, %v1433_v20  ;;  %v1440_v5 = vmul.f32 %v1438_v61, %v1437_v16  ;;  %v1560_v61 = vpop.permute.xlu1 %1559  ;;  %s3128_s12 = sld [smem:[#allocation6 + $0x4c]] }
 0x246   : > { %v1447_v24 = vmul.f32 %v1446_v62, %v1444_v21  ;;  %v1452_v59 = vld [vmem:[#allocation3 + $0x5] sm:$0xff]  ;;  %v1453_v26 = vld [vmem:[#allocation3 + $0xd] sm:$0xff]  ;;  %v1426_v31 = vadd.f32 %v1424_v10, %v1418_v29  ;;  %v1448_v11 = vmul.f32 %v1446_v62, %v1445_v54  ;;  %v1534_v54 = vstv %s3084_s23  ;;  %s3131_s23 = sld [smem:[#allocation6 + $0x53]] }
 0x247   : > { %v1460_v17 = vld [vmem:[#allocation3 + $0x6] sm:$0xff]  ;;  %v1461_v27 = vld [vmem:[#allocation3 + $0xe] sm:$0xff]  ;;  %v1455_v4 = vmul.f32 %v1454_v6, %v1452_v59  ;;  %v1456_v36 = vmul.f32 %v1454_v6, %v1453_v26  ;;  %v1542_v26 = vstv %s3088_s26  ;;  %v1574_v10 = vstv %s3091_s27  ;;  %s3134_s26 = sld [smem:[#allocation6 + $0x5a]] }
 0x248   : > { %1488 = vst.msk [vmem:[#allocation3 + $0x3] sm:$0xff] %vm536_vm15, %v1478_v52  ;;  %v1449_v0 = vadd.f32 %v1447_v24, %v1441_v30  ;;  %v1434_v18 = vadd.f32 %v1432_v33, %v1426_v31  ;;  %v1463_v12 = vmul.f32 %v1462_v35, %v1460_v17  ;;  %v1464_v52 = vmul.f32 %v1462_v35, %v1461_v27  ;;  %s3137_s27 = sld [smem:[#allocation6 + $0x61]] }
 0x249   : > { %1490 = vst.msk [vmem:[#allocation3 + $0x13] sm:$0x7] %vm539_vm12, %v1482_v3 }
 0x24a   : > { %1489 = vst.msk [vmem:[#allocation3 + $0xb] sm:$0xff] %vm536_vm15, %v1480_v47  ;;  %v1457_v7 = vadd.f32 %v1455_v4, %v1449_v0  ;;  %v1442_v38 = vadd.f32 %v1440_v5, %v1434_v18  ;;  %v1636_v13 = vpop.permute.xlu0 %1635  ;;  %v1582_v5 = vstv %s3095_s7  ;;  %s3141_s7 = sld [smem:[#allocation5]] }
 0x24c   : > { %v1450_v44 = vadd.f32 %v1448_v11, %v1442_v38  ;;  %v1465_v45 = vadd.f32 %v1463_v12, %v1457_v7 }
 0x24e   : > { %v1458_v43 = vadd.f32 %v1456_v36, %v1450_v44  ;;  %v1638_v36 = vpop.permute.xlu1 %1637 }
 0x24f   : > { %v1492_v40 = vld [vmem:[#allocation3] sm:$0xff] }
 0x250   : > { %v1500_v41 = vld [vmem:[#allocation3 + $0x1] sm:$0xff]  ;;  %v1495_v46 = vmul.f32 %v1494_v37, %v1492_v40  ;;  %v1466_v62 = vadd.f32 %v1464_v52, %v1458_v43 }
 0x251   : > { %v1508_v9 = vld [vmem:[#allocation3 + $0x2] sm:$0xff]  ;;  %v1509_v51 = vld [vmem:[#allocation3 + $0xa] sm:$0xff]  ;;  %v1503_v25 = vmul.f32 %v1502_v28, %v1500_v41 }
 0x252   : > { %v1516_v49 = vld [vmem:[#allocation3 + $0x3] sm:$0xff]  ;;  %1567 = vst.msk [vmem:[#allocation3 - $0x5] sm:$0xe0] %vm534_vm11, %v1556_v34  ;;  %v1497_v53 = vadd.f32 %v1495_v46, %v1465_v45  ;;  %v1517_v48 = vld [vmem:[#allocation3 + $0xb] sm:$0xff]  ;;  %v1511_v1 = vmul.f32 %v1510_v50, %v1508_v9  ;;  %v1512_v24 = vmul.f32 %v1510_v50, %v1509_v51  ;;  %v1590_v45 = vstv %s3100_s28  ;;  %v1642_v50 = vpop.permute.xlu0 %1641  ;;  %s3219_s28 = smov 64  }
 0x253   : > { %v1493_v23 = vld [vmem:[#allocation3 + $0x8] sm:$0xff]  ;;  %v1519_v15 = vmul.f32 %v1518_v32, %v1516_v49  ;;  %v1520_v3 = vmul.f32 %v1518_v32, %v1517_v48  ;;  %v1606_v32 = vstv %s3106_s11 }
 0x254   : > { %v1501_v42 = vld [vmem:[#allocation3 + $0x9] sm:$0xff]  ;;  %v1505_v63 = vadd.f32 %v1503_v25, %v1497_v53  ;;  %v1496_v8 = vmul.f32 %v1494_v37, %v1493_v23  ;;  %v1640_v23 = vpop.permute.xlu2 %1639  ;;  %v1598_v53 = vstv %s3103_s21 }
 0x255   : > { %v1524_v57 = vld [vmem:[#allocation3 + $0x4] sm:$0xff]  ;;  %v1525_v47 = vld [vmem:[#allocation3 + $0xc] sm:$0xff]  ;;  %v1504_v21 = vmul.f32 %v1502_v28, %v1501_v42 }
 0x256   : > { %v1532_v22 = vld [vmem:[#allocation3 + $0x5] sm:$0xff]  ;;  %v1533_v60 = vld [vmem:[#allocation3 + $0xd] sm:$0xff]  ;;  %v1513_v14 = vadd.f32 %v1511_v1, %v1505_v63  ;;  %v1498_v16 = vadd.f32 %v1496_v8, %v1466_v62  ;;  %v1527_v59 = vmul.f32 %v1526_v56, %v1524_v57  ;;  %v1528_v34 = vmul.f32 %v1526_v56, %v1525_v47 }
 0x257   : > { %v1540_v55 = vld [vmem:[#allocation3 + $0x6] sm:$0xff]  ;;  %v1541_v2 = vld [vmem:[#allocation3 + $0xe] sm:$0xff]  ;;  %v1535_v29 = vmul.f32 %v1534_v54, %v1532_v22  ;;  %v1536_v12 = vmul.f32 %v1534_v54, %v1533_v60  ;;  %v1614_v62 = vstv %s3110_s5  ;;  %s3222_s5 = sshll.u32 %s2431_s4, 3 }
 0x258   : > { %1568 = vst.msk [vmem:[#allocation3 + $0x3] sm:$0xff] %vm536_vm15, %v1558_v39  ;;  %v1521_v20 = vadd.f32 %v1519_v15, %v1513_v14  ;;  %v1506_v19 = vadd.f32 %v1504_v21, %v1498_v16  ;;  %v1543_v0 = vmul.f32 %v1542_v26, %v1540_v55  ;;  %v1544_v51 = vmul.f32 %v1542_v26, %v1541_v2 }
 0x259   : > { %1569 = vst.msk [vmem:[#allocation3 + $0xb] sm:$0xff] %vm536_vm15, %v1560_v61  ;;  %v1654_v16 = vstv %s3117_s22 }
 0x25a   : > { %1570 = vst.msk [vmem:[#allocation3 + $0x13] sm:$0x7] %vm539_vm12, %v1562_v58  ;;  %v1514_v17 = vadd.f32 %v1512_v24, %v1506_v19  ;;  %v1529_v6 = vadd.f32 %v1527_v59, %v1521_v20  ;;  %v1622_v58 = vstv %s3113_s6  ;;  %v1662_v59 = vstv %s3122_s9  ;;  %s203_s6 = scalar_lea.vmem [#allocation11], %s3222_s5 }
 0x25b   : > { %s1870_s22 = sshll.u32 %s203_s6, 4  ;;  %s1871_s22 = int_to_ptr.vmem [resolvable:$true] %s1870_s22 }
 0x25c   : > { %v1522_v33 = vadd.f32 %v1520_v3, %v1514_v17  ;;  %v1537_v35 = vadd.f32 %v1535_v29, %v1529_v6 }
 0x25e   : > { %v1530_v11 = vadd.f32 %v1528_v34, %v1522_v33  ;;  %v1545_v28 = vadd.f32 %v1543_v0, %v1537_v35  ;;  %v1678_v0 = vstv %s3128_s12 }
 0x25f   : > { %v1572_v27 = vld [vmem:[#allocation3] sm:$0xff] }
 0x260   : > { %v1580_v30 = vld [vmem:[#allocation3 + $0x1] sm:$0xff]  ;;  %v1581_v39 = vld [vmem:[#allocation3 + $0x9] sm:$0xff]  ;;  %v1575_v40 = vmul.f32 %v1574_v10, %v1572_v27  ;;  %v1538_v42 = vadd.f32 %v1536_v12, %v1530_v11  ;;  %v1686_v11 = vstv %s3131_s23 }
 0x261   : > { %v1588_v31 = vld [vmem:[#allocation3 + $0x2] sm:$0xff]  ;;  %v1589_v18 = vld [vmem:[#allocation3 + $0xa] sm:$0xff]  ;;  %v1583_v52 = vmul.f32 %v1582_v5, %v1580_v30  ;;  %v1584_v60 = vmul.f32 %v1582_v5, %v1581_v39 }
 0x262   : > { %v1573_v4 = vld [vmem:[#allocation3 + $0x8] sm:$0xff]  ;;  %1647 = vst.msk [vmem:[#allocation3 - $0x5] sm:$0xe0] %vm534_vm11, %v1636_v13  ;;  %v1577_v43 = vadd.f32 %v1575_v40, %v1545_v28  ;;  %v1546_v25 = vadd.f32 %v1544_v51, %v1538_v42  ;;  %v1591_v47 = vmul.f32 %v1590_v45, %v1588_v31  ;;  %v1592_v1 = vmul.f32 %v1590_v45, %v1589_v18 }
 0x263   : > { %v1596_v37 = vld [vmem:[#allocation3 + $0x3] sm:$0xff]  ;;  %v1597_v7 = vld [vmem:[#allocation3 + $0xb] sm:$0xff]  ;;  %v1576_v48 = vmul.f32 %v1574_v10, %v1573_v4  ;;  %v1670_v10 = vstv %s3125_s19  ;;  %v1702_v42 = vstv %s3137_s27  ;;  %vm1772_vm11 = vcmask 516480  }
 0x264   : > { %v1604_v38 = vld [vmem:[#allocation3 + $0x4] sm:$0xff]  ;;  %v1605_v41 = vld [vmem:[#allocation3 + $0xc] sm:$0xff]  ;;  %v1585_v57 = vadd.f32 %v1583_v52, %v1577_v43  ;;  %v1599_v61 = vmul.f32 %v1598_v53, %v1596_v37  ;;  %v1600_v13 = vmul.f32 %v1598_v53, %v1597_v7 }
 0x265   : > { %v1612_v9 = vld [vmem:[#allocation3 + $0x5] sm:$0xff]  ;;  %v1613_v44 = vld [vmem:[#allocation3 + $0xd] sm:$0xff]  ;;  %v1578_v22 = vadd.f32 %v1576_v48, %v1546_v25  ;;  %v1607_v2 = vmul.f32 %v1606_v32, %v1604_v38  ;;  %v1608_v20 = vmul.f32 %v1606_v32, %v1605_v41 }
 0x266   : > { %v1620_v46 = vld [vmem:[#allocation3 + $0x6] sm:$0xff]  ;;  %v1621_v49 = vld [vmem:[#allocation3 + $0xe] sm:$0xff]  ;;  %v1593_v55 = vadd.f32 %v1591_v47, %v1585_v57  ;;  %v1615_v15 = vmul.f32 %v1614_v62, %v1612_v9  ;;  %v1616_v3 = vmul.f32 %v1614_v62, %v1613_v44  ;;  %v1694_v44 = vstv %s3134_s26  ;;  %s2244_s26 = scalar_lea.hbm %s3204_s3, 16 }
 0x267   : > { %1648 = vst.msk [vmem:[#allocation3 + $0x3] sm:$0xff] %vm536_vm15, %v1638_v36  ;;  %v1586_v63 = vadd.f32 %v1584_v60, %v1578_v22  ;;  %v1623_v24 = vmul.f32 %v1622_v58, %v1620_v46  ;;  %v1624_v33 = vmul.f32 %v1622_v58, %v1621_v49 }
 0x268   : > { %1649 = vst.msk [vmem:[#allocation3 + $0xb] sm:$0xff] %vm536_vm15, %v1640_v23  ;;  %v1601_v8 = vadd.f32 %v1599_v61, %v1593_v55  ;;  %v1708_v55 = vstv %s3141_s7 }
 0x269   : > { %1650 = vst.msk [vmem:[#allocation3 + $0x13] sm:$0x7] %vm539_vm12, %v1642_v50  ;;  %v1594_v56 = vadd.f32 %v1592_v1, %v1586_v63  ;;  %vm1779_vm12 = vcmask 647680  }
 0x26a   : > { %v1609_v14 = vadd.f32 %v1607_v2, %v1601_v8 }
 0x26b   : > { %v1602_v54 = vadd.f32 %v1600_v13, %v1594_v56 }
 0x26c   : > { %v1617_v19 = vadd.f32 %v1615_v15, %v1609_v14 }
 0x26d   : > { %v1610_v17 = vadd.f32 %v1608_v20, %v1602_v54 }
 0x26e   : > { %v1652_v21 = vld [vmem:[#allocation3] sm:$0xff]  ;;  %v1625_v6 = vadd.f32 %v1623_v24, %v1617_v19 }
 0x26f   : > { %v1660_v26 = vld [vmem:[#allocation3 + $0x1] sm:$0xff]  ;;  %v1655_v29 = vmul.f32 %v1654_v16, %v1652_v21  ;;  %v1618_v31 = vadd.f32 %v1616_v3, %v1610_v17  ;;  %v1661_v4 = vld [vmem:[#allocation3 + $0x9] sm:$0xff] }
 0x270   : > { %v1653_v27 = vld [vmem:[#allocation3 + $0x8] sm:$0xff]  ;;  %v1663_v35 = vmul.f32 %v1662_v59, %v1660_v26  ;;  %v1664_v40 = vmul.f32 %v1662_v59, %v1661_v4 }
 0x271   : > { %v1668_v30 = vld [vmem:[#allocation3 + $0x2] sm:$0xff]  ;;  %v1657_v34 = vadd.f32 %v1655_v29, %v1625_v6  ;;  %v1626_v18 = vadd.f32 %v1624_v33, %v1618_v31  ;;  %v1656_v5 = vmul.f32 %v1654_v16, %v1653_v27  ;;  %v1669_v38 = vld [vmem:[#allocation3 + $0xa] sm:$0xff] }
 0x272   : > { %v1676_v39 = vld [vmem:[#allocation3 + $0x3] sm:$0xff]  ;;  %v1671_v7 = vmul.f32 %v1670_v10, %v1668_v30  ;;  %v1677_v36 = vld [vmem:[#allocation3 + $0xb] sm:$0xff]  ;;  %v1672_v49 = vmul.f32 %v1670_v10, %v1669_v38 }
 0x273   : > { %v1665_v37 = vadd.f32 %v1663_v35, %v1657_v34  ;;  %v1684_v12 = vld [vmem:[#allocation3 + $0x4] sm:$0xff]  ;;  %v1658_v28 = vadd.f32 %v1656_v5, %v1626_v18  ;;  %v1679_v9 = vmul.f32 %v1678_v0, %v1676_v39  ;;  %v1685_v51 = vld [vmem:[#allocation3 + $0xc] sm:$0xff]  ;;  %v1680_v53 = vmul.f32 %v1678_v0, %v1677_v36 }
 0x274   : > { %v1692_v45 = vld [vmem:[#allocation3 + $0x5] sm:$0xff]  ;;  %v1687_v23 = vmul.f32 %v1686_v11, %v1684_v12  ;;  %v1693_v57 = vld [vmem:[#allocation3 + $0xd] sm:$0xff]  ;;  %v1688_v32 = vmul.f32 %v1686_v11, %v1685_v51 }
 0x275   : > { %v1673_v41 = vadd.f32 %v1671_v7, %v1665_v37  ;;  %v1666_v46 = vadd.f32 %v1664_v40, %v1658_v28  ;;  %v1700_v43 = vld [vmem:[#allocation3 + $0x6] sm:$0xff]  ;;  %v1695_v48 = vmul.f32 %v1694_v44, %v1692_v45  ;;  %v1701_v61 = vld [vmem:[#allocation3 + $0xe] sm:$0xff]  ;;  %v1696_v63 = vmul.f32 %v1694_v44, %v1693_v57 }
 0x276   : > { %v1703_v60 = vmul.f32 %v1702_v42, %v1700_v43  ;;  %v1704_v2 = vmul.f32 %v1702_v42, %v1701_v61 }
 0x277   : > { %v1681_v50 = vadd.f32 %v1679_v9, %v1673_v41  ;;  %v1674_v52 = vadd.f32 %v1672_v49, %v1666_v46 }
 0x279   : > { %v1689_v25 = vadd.f32 %v1687_v23, %v1681_v50  ;;  %v1682_v47 = vadd.f32 %v1680_v53, %v1674_v52 }
 0x27b   : > { %v1697_v22 = vadd.f32 %v1695_v48, %v1689_v25  ;;  %v1690_v62 = vadd.f32 %v1688_v32, %v1682_v47 }
 0x27d   : > { %v1705_v1 = vadd.f32 %v1703_v60, %v1697_v22  ;;  %v1698_v8 = vadd.f32 %v1696_v63, %v1690_v62 }
 0x27f   : > { %v1709_v58 = vadd.f32 %v1708_v55, %v1705_v1  ;;  %v1706_v56 = vadd.f32 %v1704_v2, %v1698_v8  ;;  %v1847_v1 = vld [vmem:[%s2437_s8] sm:$0xff] }
 0x281   : > { %v2063_v13 = vmul.f32 -1.442695, %v1709_v58  ;;  %v1710_v14 = vadd.f32 %v1708_v55, %v1706_v56 }
 0x283   : > { %2171 = vpow2.f32 %v2063_v13  ;;  %v2064_v15 = vmul.f32 -1.442695, %v1710_v14 }
 0x285   : > { %2173 = vpow2.f32 %v2064_v15 }
 0x289   : > { %v2172_v16 = vpop.eup %2171 }
 0x28a   : > { %v1717_v21 = vadd.f32 1.0, %v2172_v16 }
 0x28b   : > { %v2174_v54 = vpop.eup %2173 }
 0x28c   : > { %2175 = vrcp.f32 %v1717_v21  ;;  %v1718_v20 = vadd.f32 1.0, %v2174_v54  ;;  %v1728_v17 = vand.u32 2147483647, %v1717_v21  ;;  %v1730_v3 = vand.u32 2147483648, %v1717_v21 }
 0x28d   : > { %vm1724_vm2 = vweird.f32 %v1717_v21 }
 0x28e   : > { %2177 = vrcp.f32 %v1718_v20  ;;  %vm1729_vm4 = vcmp.eq.f32.partialorder %v1728_v17, 8.507059e+37  ;;  %v1731_v30 = vor.u32 1.1754944e-38, %v1730_v3  ;;  %v1745_v31 = vand.u32 2147483648, %v1718_v20 }
 0x28f   : > { %v1743_v35 = vand.u32 2147483647, %v1718_v20  ;;  %vm1739_vm6 = vweird.f32 %v1718_v20 }
 0x290   : > { %v1746_v39 = vor.u32 1.1754944e-38, %v1745_v31 }
 0x291   : > { %vm1744_vm8 = vcmp.eq.f32.partialorder %v1743_v35, 8.507059e+37 }
 0x292   : > { %v2176_v19 = vpop.eup %2175 }
 0x293   : > { %v1720_v24 = vmul.f32 %v2176_v19, %v1717_v21  ;;  %vm1725_vm1 = vweird.f32 %v2176_v19 }
 0x294   : > { %v2178_v26 = vpop.eup %2177  ;;  %vm1726_vm3 = vmor %vm1724_vm2, %vm1725_vm1 }
 0x295   : > { %v1721_v59 = vsub.f32 1.0, %v1720_v24  ;;  %v1735_v29 = vmul.f32 %v2178_v26, %v1718_v20  ;;  %vm1740_vm5 = vweird.f32 %v2178_v26 }
 0x296   : > { %vm1741_vm7 = vmor %vm1739_vm6, %vm1740_vm5 }
 0x297   : > { %v1722_v6 = vmul.f32 %v2176_v19, %v1721_v59  ;;  %v1736_v27 = vsub.f32 1.0, %v1735_v29 }
 0x299   : > { %v1723_v10 = vadd.f32 %v2176_v19, %v1722_v6  ;;  %v1737_v34 = vmul.f32 %v2178_v26, %v1736_v27 }
 0x29b   : > { %v1727_v33 = vsel %vm1726_vm3, %v2176_v19, %v1723_v10  ;;  %v1738_v4 = vadd.f32 %v2178_v26, %v1737_v34 }
 0x29c   : > { %v1732_v0 = vsel %vm1729_vm4, %v1731_v30, %v1727_v33 }
 0x29d   : > { %1749 = vst.msk [vmem:[#allocation3] sm:$0xff] %vm536_vm15, %v1732_v0  ;;  %v1742_v18 = vsel %vm1741_vm7, %v2178_v26, %v1738_v4 }
 0x29e   : > { %v1747_v5 = vsel %vm1744_vm8, %v1746_v39, %v1742_v18 }
 0x29f   : > { %1750 = vst.msk [vmem:[#allocation3 + $0x8] sm:$0xff] %vm536_vm15, %v1747_v5  ;;  %vm1800_vm15 = vcmask 1041280  }
 0x2a4   : > { %v1760_v37 = vld [vmem:[#allocation3 + $0x2] sm:$0x1]  ;;  %v1753_v7 = vld [vmem:[#allocation3 + $0x1] sm:$0x1]  ;;  %v1751_v38 = vld [vmem:[#allocation3] sm:$0x1] }
 0x2a5   : > { %1762 = vrot.lane.b32.xlu0 %v1760_v37, %s2304_s13  ;;  %1755 = vrot.lane.b32.xlu1 %v1753_v7, %s2305_s18  ;;  %1752 = vst.msk [vmem:[#allocation4] sm:$0x1] %vm289_vm9, %v1751_v38  ;;  %v1767_v41 = vld [vmem:[#allocation3 + $0x3] sm:$0x1]  ;;  %v1781_v9 = vld [vmem:[#allocation3 + $0x5] sm:$0x1] }
 0x2a6   : > { %v1804_v11 = vld [vmem:[#allocation3 + $0x9] sm:$0x1]  ;;  %v1802_v12 = vld [vmem:[#allocation3 + $0x8] sm:$0x1]  ;;  %v1816_v28 = vld [vmem:[#allocation3 + $0xb] sm:$0x1] }
 0x2a7   : > { %1806 = vrot.lane.b32.xlu2 %v1804_v11, %s2305_s18  ;;  %1803 = vst.msk [vmem:[#allocation4 + $0x2] sm:$0x1] %vm289_vm9, %v1802_v12  ;;  %v1810_v40 = vld [vmem:[#allocation3 + $0xa] sm:$0x1]  ;;  %v1774_v44 = vld [vmem:[#allocation3 + $0x4] sm:$0x1] }
 0x2a8   : > { %v1822_v36 = vld [vmem:[#allocation3 + $0xc] sm:$0x1]  ;;  %v1834_v45 = vld [vmem:[#allocation3 + $0xe] sm:$0x1]  ;;  %v1828_v46 = vld [vmem:[#allocation3 + $0xd] sm:$0x1] }
 0x2a9   : > { %s3220_s18 = smov 96   ;;  %v1788_v49 = vld [vmem:[#allocation3 + $0x6] sm:$0x1]  ;;  %v1795_v50 = vld [vmem:[#allocation3 + $0x7] sm:$0x1]  ;;  %vm1758_vm9 = vcmask 254080  }
 0x2aa   : > { %v1840_v23 = vld [vmem:[#allocation3 + $0xf] sm:$0x1] }
 0x2ad   : > { %1818 = vrot.lane.b32.xlu0 %v1816_v28, %s2301_s10  ;;  %1812 = vrot.lane.b32.xlu1 %v1810_v40, %s2304_s13 }
 0x2af   : > { %1769 = vrot.lane.b32.xlu2 %v1767_v41, %s2301_s10  ;;  %s3221_s10 = smov 112  }
 0x2b5   : > { %1783 = vrot.lane.b32.xlu0 %v1781_v9, %s2299_s24  ;;  %1776 = vrot.lane.b32.xlu1 %v1774_v44, %s3219_s28 }
 0x2b7   : > { %1824 = vrot.lane.b32.xlu2 %v1822_v36, %s3219_s28 }
 0x2bd   : > { %1836 = vrot.lane.b32.xlu0 %v1834_v45, %s3220_s18  ;;  %1830 = vrot.lane.b32.xlu1 %v1828_v46, %s2299_s24  ;;  %s2071_s24 = sshll.u32 %s2355_s1, 3  ;;  %s1857_s1 = scalar_lea.sflag [#allocation8], %s2431_s4 }
 0x2be   : > { %s1868_s11 = scalar_lea.hbm %s3204_s3, %s2071_s24 }
 0x2bf   : > { %1790 = vrot.lane.b32.xlu2 %v1788_v49, %s3220_s18  ;;  %s1872_s9 = sshll.u32 %s1868_s11, 4  ;;  %s1873_s9 = int_to_ptr.hbm [resolvable:$true] %s1872_s9 }
 0x2c0   : > { %s2238_s19 = sshra.s32 %s1873_s9, 4  ;;  %s2239_s19 = int_to_ptr.hbm [resolvable:$true] %s2238_s19 }
 0x2c1   : > { %s2240_s12 = scalar_lea.hbm %s2239_s19, 8  ;;  %p2245_p9 = scmp.lt.s32.totalorder %s2239_s19, %s3204_s3 }
 0x2c2   : > { %p2241_p1 = scmp.ne.s32.totalorder %s2239_s19, %s2240_s12  ;;  %p2246_p10 = scmp.lt.s32.totalorder %s2244_s26, %s2240_s12 }
 0x2c4   : > { %p2242_p4 = pnand %p2241_p1, %p2400_p3  ;;  %p2247_p2 = por %p2246_p10, %p2245_p9 }
 0x2c5   : > { %1797 = vrot.lane.b32.xlu1 %v1795_v50, %s3221_s10 }
 0x2c6   : > { %p2243_p8 = pneg %p2242_p4 }
 0x2c7   : > { %1842 = vrot.lane.b32.xlu2 %v1840_v23, %s3221_s10 }
 0x2c8   : > { %p2248_p11 = pnand %p2247_p2, %p2243_p8 }
 0x301   : > { %v1807_v42 = vpop.permute.xlu2 %1806 }
 0x302   : > { %1809 = vst.msk [vmem:[#allocation4 + $0x2] sm:$0x1] %vm1758_vm9, %v1807_v42 }
 0x309   : > { %v1770_v51 = vpop.permute.xlu2 %1769 }
 0x311   : > { %v1825_v53 = vpop.permute.xlu2 %1824 }
 0x317   : > { %v1763_v43 = vpop.permute.xlu0 %1762  ;;  %v1756_v52 = vpop.permute.xlu1 %1755 }
 0x318   : > { %1759 = vst.msk [vmem:[#allocation4] sm:$0x1] %vm1758_vm9, %v1756_v52 }
 0x319   : > { %1766 = vst.msk [vmem:[#allocation4] sm:$0x1] %vm1765_vm10, %v1763_v43  ;;  %v1791_v57 = vpop.permute.xlu2 %1790 }
 0x31a   : > { %1773 = vst.msk [vmem:[#allocation4] sm:$0x1] %vm1772_vm11, %v1770_v51 }
 0x31f   : > { %v1819_v25 = vpop.permute.xlu0 %1818  ;;  %v1813_v48 = vpop.permute.xlu1 %1812 }
 0x320   : > { %1815 = vst.msk [vmem:[#allocation4 + $0x2] sm:$0x1] %vm1765_vm10, %v1813_v48 }
 0x321   : > { %1821 = vst.msk [vmem:[#allocation4 + $0x2] sm:$0x1] %vm1772_vm11, %v1819_v25  ;;  %v1843_v55 = vpop.permute.xlu2 %1842 }
 0x322   : > { %1827 = vst.msk [vmem:[#allocation4 + $0x2] sm:$0x1] %vm1779_vm12, %v1825_v53 }
 0x327   : > { %v1784_v47 = vpop.permute.xlu0 %1783  ;;  %v1777_v32 = vpop.permute.xlu1 %1776 }
 0x328   : > { %1780 = vst.msk [vmem:[#allocation4] sm:$0x1] %vm1779_vm12, %v1777_v32 }
 0x329   : > { %1787 = vst.msk [vmem:[#allocation4] sm:$0x1] %vm1786_vm13, %v1784_v47 }
 0x32a   : > { %1794 = vst.msk [vmem:[#allocation4] sm:$0x1] %vm1793_vm14, %v1791_v57 }
 0x32f   : > { %v1837_v22 = vpop.permute.xlu0 %1836  ;;  %v1831_v60 = vpop.permute.xlu1 %1830 }
 0x330   : > { %1833 = vst.msk [vmem:[#allocation4 + $0x2] sm:$0x1] %vm1786_vm13, %v1831_v60 }
 0x331   : > { %1839 = vst.msk [vmem:[#allocation4 + $0x2] sm:$0x1] %vm1793_vm14, %v1837_v22 }
 0x332   : > { %1845 = vst.msk [vmem:[#allocation4 + $0x2] sm:$0x1] %vm1800_vm15, %v1843_v55 }
 0x337   : > { %v1798_v61 = vpop.permute.xlu1 %1797 }
 0x338   : > { %1801 = vst.msk [vmem:[#allocation4] sm:$0x1] %vm1800_vm15, %v1798_v61 }
 0x33f   : > { %v1846_v62 = vld [vmem:[#allocation4] ss:$2 sm:$0x3] }
 0x340   : > { %v1850_v63 = vperm.slane %v1846_v62, 1  ;;  %v1849_v8 = vperm.slane %v1846_v62, 0 }
 0x342   : > { %v1851_v2 = vrot.slane %v1850_v63, 4 }
 0x344   : > { %v1852_v58 = vsel %vm211_vm0, %v1849_v8, %v1851_v2 }
 0x345   : > { %v1854_v56 = vmul.f32 %v1852_v58, %v1847_v1 }
 0x347   : > { %1855 = vst [vmem:[%s203_s6] sm:$0xff] %v1854_v56 }
 0x348   : > { %2251 = shalt.err (!%p2248_p11)
}
 0x349   : > { %2078 = dma.vmem_to_hbm [thread:$0]  (%p2400_p3), %s1871_s22, 128, %s1873_s9, %s1857_s1  }
 0x34a PF: > { %s1884_s4 = sand.u32 1, %s2282_s14   ;;  %p3223_p12 = scmp.ge.s32.totalorder %s2294_s17, 2 }
 0x34b   : > { %s1885_s28 = scalar_lea.sflag [#allocation8], %s1884_s4 }
 0x34c   : > { %p2089_p13 = pnand %p3223_p12, %p2369_p6 }
 0x34e   : > { %p2090_p0 = pneg %p2089_p13 }
 0x350   : > { %2277 = dma.done.wait (%p2090_p0), %s1885_s28, 128  }
 0x351   : > { %2279 = vsyncadd (%p2090_p0), %s1885_s28, 4294967168  ;;  %p18_p5 = scmp.ge.s32.totalorder %s2385_s25, 4   ;;  %s3224_s14 = smov %s2286_s15 }
 0x352   : > { %s3225_s15 = smov %s2290_s16  ;;  %s3226_s16 = smov %s2395_s29 }
 0x353   : > { %s3227_s17 = smov %s2385_s25  ;;  %20 = sbr.rel (!%p18_p5) target bundleno = 8 (0x8), region = 84 }
 0x358   :  { %1891 = vsyncpa [#allocation7], 1 }
 0x359   :  { %1893 = vsyncpa [#allocation7 + $0x1], 1 }
 0x35a   :  { %1894 = vsyncpa [#allocation8], 1 }
 0x35b   :  { %1896 = vsyncpa [#allocation8 + $0x1], 1 }
 0x35c   :  { %1897 = vsyncpa [#allocation9], 1 }
 0x35d   :  { %1899 = vsyncpa [#allocation9 + $0x1], 1 }

</bundles_post_ra>
